<compile_context>
chip_gen: v5e
topology: v5e:2x2
jax: 0.10.0
libtpu: 0.0.40
codegen_flags: <defaults>
</compile_context>

<pallas_src>
import functools

import jax
import jax.numpy as jnp
from jax import lax
from jax.experimental import pallas as pl
from jax.experimental.pallas import tpu as pltpu


def _round_up(n, m):
    return ((n + m - 1) // m) * m


def _bottleneck_kernel(x_ref, w1_ref, b1_ref, w2_ref, b2_ref, w3_ref, b3_ref,
                       o_ref, h1_buf, *, W, HW, HW_p, HALO):
    # Per grid step (one image):
    #   x_ref  : [HW_p, Cin_p]  bf16   (NHWC rows of one image, zero-padded)
    #   w1_ref : [Cin_p, Cmid_p] bf16  (conv1 1x1, BN1 scale folded)
    #   b1_ref : [1, Cmid_p] f32
    #   w2_ref : [3, 3*Cmid_p, Cmid_p] bf16 (per dy, the 3 dx taps stacked on K)
    #   b2_ref : [1, Cmid_p] f32
    #   w3_ref : [Cmid_p, Cexp_p] bf16 (conv3 1x1, BN3 scale folded)
    #   b3_ref : [1, Cexp_p] f32
    #   o_ref  : [HW_p, Cexp_p] f32
    #   h1_buf : VMEM scratch [2*HALO + HW_p, 3*Cmid_p] bf16 (zero-haloed)
    f32 = jnp.float32
    Cmid_p = w1_ref.shape[1]

    # ---- conv1 (1x1) + BN1 + ReLU : one bf16 MXU matmul, f32 accumulate ----
    h1 = jnp.dot(x_ref[...], w1_ref[...], preferred_element_type=f32)
    h1 = jnp.maximum(h1 + b1_ref[...], 0.0)

    # ---- stage h1 into the zero-haloed, lane-packed scratch ----------------
    # Halo rows absorb the dy = +/-1 image-boundary (block == one image, so
    # out-of-image rows are out-of-block).  Zeroed every step (safe with the
    # "parallel" grid axis; the middle region is rewritten below).
    zero_rows = jnp.zeros((HALO, 3 * Cmid_p), h1_buf.dtype)
    h1_buf[pl.ds(0, HALO), :] = zero_rows
    h1_buf[pl.ds(HALO + HW_p, HALO), :] = zero_rows

    row = lax.broadcasted_iota(jnp.int32, (HW_p, 1), 0)
    col = row % W
    in_img = row < HW
    zrow = jnp.zeros((1, Cmid_p), h1.dtype)
    for dxi, dx in enumerate((-1, 0, 1)):
        if dx == -1:
            u = jnp.concatenate([zrow, h1[:-1]], axis=0)     # u[q] = h1[q-1]
            valid = in_img & (col - 1 >= 0)
        elif dx == 1:
            u = jnp.concatenate([h1[1:], zrow], axis=0)      # u[q] = h1[q+1]
            valid = in_img & (col + 1 < W)
        else:
            u = h1
            valid = in_img if HW_p != HW else None
        if valid is not None:
            u = jnp.where(valid, u, 0.0)
        h1_buf[pl.ds(HALO, HW_p), pl.ds(dxi * Cmid_p, Cmid_p)] = (
            u.astype(h1_buf.dtype))

    # ---- conv2 (3x3) + BN2 + ReLU : 3 fat (K = 3*Cmid_p) matmuls -----------
    acc = None
    for dyi, dy in enumerate((-1, 0, 1)):
        t = h1_buf[pl.ds(HALO + dy * W, HW_p), :]            # [HW_p, 3*Cmid_p]
        d = jnp.dot(t, w2_ref[dyi], preferred_element_type=f32)
        acc = d if acc is None else acc + d
    h2 = jnp.maximum(acc + b2_ref[...], 0.0).astype(jnp.bfloat16)

    # ---- conv3 (1x1) + BN3, residual add, ReLU ------------------------------
    h3 = jnp.dot(h2, w3_ref[...], preferred_element_type=f32)
    o_ref[...] = jnp.maximum(
        h3 + b3_ref[...] + x_ref[...].astype(f32), 0.0).astype(o_ref.dtype)


def bottleneck_forward(x_nchw, p, *, eps=1e-5):
    """Bottleneck forward (stride=1, identity shortcut), NCHW in / NCHW out."""
    N, Cin, H, W = x_nchw.shape
    conv1_w = p["conv1_w"]          # [Cmid, Cin, 1, 1]
    conv2_w = p["conv2_w"]          # [Cmid, Cmid, 3, 3]
    conv3_w = p["conv3_w"]          # [Cexp, Cmid, 1, 1]
    Cmid = conv1_w.shape[0]
    Cexp = conv3_w.shape[0]
    assert Cexp == Cin, "identity shortcut requires in_channels == out_channels*expansion"

    def fold(name):
        s = p[f"{name}_gamma"] / jnp.sqrt(p[f"{name}_var"] + eps)
        return s, p[f"{name}_beta"] - p[f"{name}_mean"] * s

    s1, t1 = fold("bn1")
    s2, t2 = fold("bn2")
    s3, t3 = fold("bn3")

    LANE, SUB = 128, 16             # bf16 native tile is (16, 128)
    Cin_p = _round_up(Cin, LANE)
    Cmid_p = _round_up(Cmid, LANE)
    Cexp_p = _round_up(Cexp, LANE)
    assert Cin_p == Cexp_p
    HW = H * W
    HW_p = _round_up(HW, SUB)
    HALO = _round_up(W, SUB)        # halo >= W rows on each side of the image

    def pad2(a, r, c):
        return jnp.pad(a, ((0, r - a.shape[0]), (0, c - a.shape[1])))

    bf16 = jnp.bfloat16
    # matmul-layout weights [Cin_like, Cout_like]; BN scale folded into columns
    w1p = pad2(conv1_w[:, :, 0, 0].T * s1[None, :], Cin_p, Cmid_p).astype(bf16)
    w3p = pad2(conv3_w[:, :, 0, 0].T * s3[None, :], Cmid_p, Cexp_p).astype(bf16)
    # conv2: for each dy, stack the 3 dx taps along the contracting dim so the
    # kernel's lane-packed scratch read drives one K=3*Cmid_p matmul per dy.
    w2p = jnp.stack(
        [jnp.concatenate(
            [pad2(conv2_w[:, :, dy + 1, dx + 1].T * s2[None, :], Cmid_p, Cmid_p)
             for dx in (-1, 0, 1)], axis=0)
         for dy in (-1, 0, 1)], axis=0).astype(bf16)       # [3, 3*Cmid_p, Cmid_p]

    b1p = pad2(t1[None, :], 1, Cmid_p)                      # f32 biases
    b2p = pad2(t2[None, :], 1, Cmid_p)
    b3p = pad2(t3[None, :], 1, Cexp_p)

    # NHWC rows, padded per image so each grid block is one whole image.
    xb = jnp.transpose(x_nchw, (0, 2, 3, 1)).reshape(N, HW, Cin)
    xb = jnp.pad(xb, ((0, 0), (0, HW_p - HW), (0, Cin_p - Cin)))
    xb = xb.reshape(N * HW_p, Cin_p).astype(bf16)

    kernel = functools.partial(_bottleneck_kernel, W=W, HW=HW, HW_p=HW_p,
                               HALO=HALO)
    flops = 2 * N * HW_p * (Cin_p * Cmid_p + 9 * Cmid_p * Cmid_p
                            + Cmid_p * Cexp_p)
    bytes_accessed = (2 * (xb.size + w1p.size + w2p.size + w3p.size)
                      + 4 * (b1p.size + b2p.size + b3p.size
                             + N * HW_p * Cexp_p))

    out_p = pl.pallas_call(
        kernel,
        out_shape=jax.ShapeDtypeStruct((N * HW_p, Cexp_p), jnp.float32),
        grid_spec=pltpu.PrefetchScalarGridSpec(
            num_scalar_prefetch=0,
            grid=(N,),
            in_specs=[
                pl.BlockSpec((HW_p, Cin_p), lambda n: (n, 0)),           # x
                pl.BlockSpec((Cin_p, Cmid_p), lambda n: (0, 0)),         # w1
                pl.BlockSpec((1, Cmid_p), lambda n: (0, 0)),             # b1
                pl.BlockSpec((3, 3 * Cmid_p, Cmid_p),
                             lambda n: (0, 0, 0)),                       # w2
                pl.BlockSpec((1, Cmid_p), lambda n: (0, 0)),             # b2
                pl.BlockSpec((Cmid_p, Cexp_p), lambda n: (0, 0)),        # w3
                pl.BlockSpec((1, Cexp_p), lambda n: (0, 0)),             # b3
            ],
            out_specs=pl.BlockSpec((HW_p, Cexp_p), lambda n: (n, 0)),
            scratch_shapes=[pltpu.VMEM((2 * HALO + HW_p, 3 * Cmid_p), bf16)],
        ),
        compiler_params=pltpu.CompilerParams(
            dimension_semantics=("parallel",),
            vmem_limit_bytes=32 * 1024 * 1024),
        cost_estimate=pl.CostEstimate(flops=flops, transcendentals=0,
                                      bytes_accessed=bytes_accessed),
    )(xb, w1p, b1p, w2p, b2p, w3p, b3p)

    out = out_p.reshape(N, HW_p, Cexp_p)[:, :HW, :Cexp].reshape(N, H, W, Cexp)
    return jnp.transpose(out, (0, 3, 1, 2))                 # back to NCHW


def init_params(key, in_channels, mid_channels, expansion=4):
    """Deterministic params in PyTorch layouts (OIHW conv weights, per-channel BN)."""
    ks = jax.random.split(key, 6)
    Cexp = mid_channels * expansion

    def conv_init(k, cout, cin, kh, kw):
        std = (2.0 / (cin * kh * kw)) ** 0.5
        return std * jax.random.normal(k, (cout, cin, kh, kw), jnp.float32)

    p = {
        "conv1_w": conv_init(ks[0], mid_channels, in_channels, 1, 1),
        "conv2_w": conv_init(ks[1], mid_channels, mid_channels, 3, 3),
        "conv3_w": conv_init(ks[2], Cexp, mid_channels, 1, 1),
    }
    for i, (name, c) in enumerate([("bn1", mid_channels),
                                   ("bn2", mid_channels),
                                   ("bn3", Cexp)]):
        kg, kb, km, kv = jax.random.split(ks[3 + i], 4)
        p[f"{name}_gamma"] = jax.random.uniform(kg, (c,), jnp.float32, 0.5, 1.5)
        p[f"{name}_beta"] = 0.1 * jax.random.normal(kb, (c,), jnp.float32)
        p[f"{name}_mean"] = 0.1 * jax.random.normal(km, (c,), jnp.float32)
        p[f"{name}_var"] = jax.random.uniform(kv, (c,), jnp.float32, 0.5, 1.5)
    return p


def bottleneck_ref(x, p, eps=1e-5):
    """Plain-JAX reference (eval-mode BN), NCHW."""
    def conv(h, w, padding=0):
        return lax.conv_general_dilated(
            h, w, window_strides=(1, 1),
            padding=[(padding, padding), (padding, padding)],
            dimension_numbers=("NCHW", "OIHW", "NCHW"))

    def bn(h, name):
        s = p[f"{name}_gamma"] / jnp.sqrt(p[f"{name}_var"] + eps)
        b = p[f"{name}_beta"] - p[f"{name}_mean"] * s
        return h * s[None, :, None, None] + b[None, :, None, None]

    h = jax.nn.relu(bn(conv(x, p["conv1_w"]), "bn1"))
    h = jax.nn.relu(bn(conv(h, p["conv2_w"], padding=1), "bn2"))
    h = bn(conv(h, p["conv3_w"]), "bn3")
    return jax.nn.relu(h + x)


if __name__ == "__main__":
    key = jax.random.PRNGKey(0)
    kx, kp = jax.random.split(key)

    # Small shapes: batch=2, spatial=16x16, out_channels(mid)=4, expansion=4.
    # in_channels = mid * expansion = 16 so the identity shortcut applies.
    N, H, W = 2, 16, 16
    mid = 4
    Cin = mid * 4

    x = jax.random.normal(kx, (N, Cin, H, W), jnp.float32)
    params = init_params(kp, Cin, mid)

    out = bottleneck_forward(x, params)
    jax.block_until_ready(out)

    ref = bottleneck_ref(x, params)
    assert out.shape == ref.shape == (N, mid * 4, H, W)
    # bf16 MXU operands (f32 accumulation) -> looser tolerance than pure f32.
    assert jnp.allclose(out, ref, atol=1e-1, rtol=5e-2), float(
        jnp.max(jnp.abs(out - ref)))

    print("KERNEL_OK")
</pallas_src>

<mosaic_0001>
module attributes {stable_mosaic.version = 11 : i64} {
  func.func @_bottleneck_kernel(%arg0: i32, %arg1: memref<256x128xbf16, #tpu.memory_space<vmem>>, %arg2: memref<128x128xbf16, #tpu.memory_space<vmem>>, %arg3: memref<1x128xf32, #tpu.memory_space<vmem>>, %arg4: memref<3x384x128xbf16, #tpu.memory_space<vmem>>, %arg5: memref<1x128xf32, #tpu.memory_space<vmem>>, %arg6: memref<128x128xbf16, #tpu.memory_space<vmem>>, %arg7: memref<1x128xf32, #tpu.memory_space<vmem>>, %arg8: memref<256x128xf32, #tpu.memory_space<vmem>>, %arg9: memref<288x384xbf16, #tpu.memory_space<vmem>>) attributes {dimension_semantics = [#tpu.dimension_semantics<parallel>], iteration_bounds = array<i64: 2>, scalar_prefetch = 0 : i64, scratch_operands = 1 : i64, tpu.core_type = #tpu.core_type<tc>, window_params = [{transform_indices = @transform_0, window_bounds = array<i64: 256, 128>}, {pipeline_mode = #tpu.pipeline_mode<synchronous>, transform_indices = @transform_1, window_bounds = array<i64: 128, 128>}, {pipeline_mode = #tpu.pipeline_mode<synchronous>, transform_indices = @transform_2, window_bounds = array<i64: 1, 128>}, {pipeline_mode = #tpu.pipeline_mode<synchronous>, transform_indices = @transform_3, window_bounds = array<i64: 3, 384, 128>}, {pipeline_mode = #tpu.pipeline_mode<synchronous>, transform_indices = @transform_4, window_bounds = array<i64: 1, 128>}, {pipeline_mode = #tpu.pipeline_mode<synchronous>, transform_indices = @transform_5, window_bounds = array<i64: 128, 128>}, {pipeline_mode = #tpu.pipeline_mode<synchronous>, transform_indices = @transform_6, window_bounds = array<i64: 1, 128>}, {transform_indices = @transform_7, window_bounds = array<i64: 256, 128>}]} {
    %c0 = arith.constant 0 : index
    %c0_0 = arith.constant 0 : index
    %0 = vector.load %arg1[%c0, %c0_0] : memref<256x128xbf16, #tpu.memory_space<vmem>>, vector<256x128xbf16>
    %c0_1 = arith.constant 0 : index
    %c0_2 = arith.constant 0 : index
    %1 = vector.load %arg2[%c0_1, %c0_2] : memref<128x128xbf16, #tpu.memory_space<vmem>>, vector<128x128xbf16>
    %cst = arith.constant dense<0.000000e+00> : vector<256x128xf32>
    %2 = tpu.matmul %0, %1, %cst {dimension_numbers = #tpu.dot_dimension_numbers<[1], [0], [0], [1], [0, 0, 1, 1], [], []>} : vector<256x128xbf16>, vector<128x128xbf16>, vector<256x128xf32> -> vector<256x128xf32>
    %c0_3 = arith.constant 0 : index
    %c0_4 = arith.constant 0 : index
    %3 = vector.load %arg3[%c0_3, %c0_4] : memref<1x128xf32, #tpu.memory_space<vmem>>, vector<1x128xf32>
    %4 = vector.broadcast %3 : vector<1x128xf32> to vector<256x128xf32>
    %5 = arith.addf %2, %4 : vector<256x128xf32>
    %cst_5 = arith.constant 0.000000e+00 : f32
    %6 = vector.broadcast %cst_5 : f32 to vector<256x128xf32>
    %7 = arith.maximumf %5, %6 : vector<256x128xf32>
    %cst_6 = arith.constant 0.000000e+00 : bf16
    %8 = vector.broadcast %cst_6 : bf16 to vector<16x384xbf16>
    %c0_7 = arith.constant 0 : index
    %c0_8 = arith.constant 0 : index
    %9 = vector.load %arg9[%c0_7, %c0_8] : memref<288x384xbf16, #tpu.memory_space<vmem>>, vector<16x384xbf16>
    tpu.vector_store %arg9[%c0_7, %c0_8], %8 {strides = array<i32>} : memref<288x384xbf16, #tpu.memory_space<vmem>>, vector<16x384xbf16>,
    %c272 = arith.constant 272 : index
    %c0_9 = arith.constant 0 : index
    %10 = vector.load %arg9[%c272, %c0_9] : memref<288x384xbf16, #tpu.memory_space<vmem>>, vector<16x384xbf16>
    tpu.vector_store %arg9[%c272, %c0_9], %8 {strides = array<i32>} : memref<288x384xbf16, #tpu.memory_space<vmem>>, vector<16x384xbf16>,
    %11 = tpu.iota {dimensions = array<i32: 0>} : vector<256x1xi32>
    %c16_i32 = arith.constant 16 : i32
    %c0_i32 = arith.constant 0 : i32
    %12 = arith.cmpi eq, %c16_i32, %c0_i32 : i32
    %c1_i32 = arith.constant 1 : i32
    %13 = arith.select %12, %c1_i32, %c16_i32 : i32
    %14 = vector.broadcast %13 : i32 to vector<256x1xi32>
    %15 = arith.remsi %11, %14 : vector<256x1xi32>
    %c0_i32_10 = arith.constant 0 : i32
    %16 = vector.broadcast %c0_i32_10 : i32 to vector<256x1xi32>
    %17 = arith.cmpi ne, %15, %16 : vector<256x1xi32>
    %c0_i32_11 = arith.constant 0 : i32
    %18 = vector.broadcast %c0_i32_11 : i32 to vector<256x1xi32>
    %19 = arith.cmpi slt, %15, %18 : vector<256x1xi32>
    %c0_i32_12 = arith.constant 0 : i32
    %20 = arith.cmpi slt, %13, %c0_i32_12 : i32
    %21 = vector.broadcast %20 : i1 to vector<256x1xi1>
    %22 = vector.broadcast %21 : vector<256x1xi1> to vector<256x1xi1>
    %23 = arith.xori %19, %22 : vector<256x1xi1>
    %24 = arith.andi %23, %17 : vector<256x1xi1>
    %25 = vector.broadcast %13 : i32 to vector<256x1xi32>
    %26 = arith.addi %15, %25 : vector<256x1xi32>
    %27 = arith.select %24, %26, %15 : vector<256x1xi1>, vector<256x1xi32>
    %c256_i32 = arith.constant 256 : i32
    %28 = vector.broadcast %c256_i32 : i32 to vector<256x1xi32>
    %29 = arith.cmpi slt, %11, %28 : vector<256x1xi32>
    %cst_13 = arith.constant 0.000000e+00 : f32
    %30 = vector.broadcast %cst_13 : f32 to vector<1x128xf32>
    %31 = vector.extract_strided_slice %7 {offsets = [0, 0], sizes = [255, 128], strides = [1, 1]} : vector<256x128xf32> to vector<255x128xf32>
    %32 = tpu.concatenate %30, %31 in 0 : vector<1x128xf32>, vector<255x128xf32> -> vector<256x128xf32>
    %c1_i32_14 = arith.constant 1 : i32
    %33 = vector.broadcast %c1_i32_14 : i32 to vector<256x1xi32>
    %34 = arith.subi %27, %33 : vector<256x1xi32>
    %c0_i32_15 = arith.constant 0 : i32
    %35 = vector.broadcast %c0_i32_15 : i32 to vector<256x1xi32>
    %36 = arith.cmpi sge, %34, %35 : vector<256x1xi32>
    %37 = arith.andi %29, %36 : vector<256x1xi1>
    %cst_16 = arith.constant 0.000000e+00 : f32
    %38 = vector.shape_cast %37 : vector<256x1xi1> to vector<256x1xi1>
    %39 = vector.broadcast %38 : vector<256x1xi1> to vector<256x128xi1>
    %40 = vector.broadcast %cst_16 : f32 to vector<256x128xf32>
    %41 = arith.select %39, %32, %40 : vector<256x128xi1>, vector<256x128xf32>
    %42 = arith.truncf %41 : vector<256x128xf32> to vector<256x128xbf16>
    %c16 = arith.constant 16 : index
    %c0_17 = arith.constant 0 : index
    %43 = vector.load %arg9[%c16, %c0_17] : memref<288x384xbf16, #tpu.memory_space<vmem>>, vector<256x128xbf16>
    tpu.vector_store %arg9[%c16, %c0_17], %42 {strides = array<i32>} : memref<288x384xbf16, #tpu.memory_space<vmem>>, vector<256x128xbf16>,
    %44 = arith.truncf %7 : vector<256x128xf32> to vector<256x128xbf16>
    %c16_18 = arith.constant 16 : index
    %c128 = arith.constant 128 : index
    %45 = vector.load %arg9[%c16_18, %c128] : memref<288x384xbf16, #tpu.memory_space<vmem>>, vector<256x128xbf16>
    tpu.vector_store %arg9[%c16_18, %c128], %44 {strides = array<i32>} : memref<288x384xbf16, #tpu.memory_space<vmem>>, vector<256x128xbf16>,
    %46 = vector.extract_strided_slice %7 {offsets = [1, 0], sizes = [255, 128], strides = [1, 1]} : vector<256x128xf32> to vector<255x128xf32>
    %47 = tpu.concatenate %46, %30 in 0 : vector<255x128xf32>, vector<1x128xf32> -> vector<256x128xf32>
    %c1_i32_19 = arith.constant 1 : i32
    %48 = vector.broadcast %c1_i32_19 : i32 to vector<256x1xi32>
    %49 = arith.addi %27, %48 : vector<256x1xi32>
    %c16_i32_20 = arith.constant 16 : i32
    %50 = vector.broadcast %c16_i32_20 : i32 to vector<256x1xi32>
    %51 = arith.cmpi slt, %49, %50 : vector<256x1xi32>
    %52 = arith.andi %29, %51 : vector<256x1xi1>
    %cst_21 = arith.constant 0.000000e+00 : f32
    %53 = vector.shape_cast %52 : vector<256x1xi1> to vector<256x1xi1>
    %54 = vector.broadcast %53 : vector<256x1xi1> to vector<256x128xi1>
    %55 = vector.broadcast %cst_21 : f32 to vector<256x128xf32>
    %56 = arith.select %54, %47, %55 : vector<256x128xi1>, vector<256x128xf32>
    %57 = arith.truncf %56 : vector<256x128xf32> to vector<256x128xbf16>
    %c16_22 = arith.constant 16 : index
    %c256 = arith.constant 256 : index
    %58 = vector.load %arg9[%c16_22, %c256] : memref<288x384xbf16, #tpu.memory_space<vmem>>, vector<256x128xbf16>
    tpu.vector_store %arg9[%c16_22, %c256], %57 {strides = array<i32>} : memref<288x384xbf16, #tpu.memory_space<vmem>>, vector<256x128xbf16>,
    %c0_23 = arith.constant 0 : index
    %c0_24 = arith.constant 0 : index
    %59 = vector.load %arg9[%c0_23, %c0_24] : memref<288x384xbf16, #tpu.memory_space<vmem>>, vector<256x384xbf16>
    %c0_25 = arith.constant 0 : index
    %c0_26 = arith.constant 0 : index
    %c0_27 = arith.constant 0 : index
    %60 = vector.load %arg4[%c0_25, %c0_26, %c0_27] : memref<3x384x128xbf16, #tpu.memory_space<vmem>>, vector<1x384x128xbf16>
    %61 = vector.shape_cast %60 : vector<1x384x128xbf16> to vector<384x128xbf16>
    %cst_28 = arith.constant dense<0.000000e+00> : vector<256x128xf32>
    %62 = tpu.matmul %59, %61, %cst_28 {dimension_numbers = #tpu.dot_dimension_numbers<[1], [0], [0], [1], [0, 0, 1, 1], [], []>} : vector<256x384xbf16>, vector<384x128xbf16>, vector<256x128xf32> -> vector<256x128xf32>
    %c16_29 = arith.constant 16 : index
    %c0_30 = arith.constant 0 : index
    %63 = vector.load %arg9[%c16_29, %c0_30] : memref<288x384xbf16, #tpu.memory_space<vmem>>, vector<256x384xbf16>
    %c1 = arith.constant 1 : index
    %c0_31 = arith.constant 0 : index
    %c0_32 = arith.constant 0 : index
    %64 = vector.load %arg4[%c1, %c0_31, %c0_32] : memref<3x384x128xbf16, #tpu.memory_space<vmem>>, vector<1x384x128xbf16>
    %65 = vector.shape_cast %64 : vector<1x384x128xbf16> to vector<384x128xbf16>
    %cst_33 = arith.constant dense<0.000000e+00> : vector<256x128xf32>
    %66 = tpu.matmul %63, %65, %cst_33 {dimension_numbers = #tpu.dot_dimension_numbers<[1], [0], [0], [1], [0, 0, 1, 1], [], []>} : vector<256x384xbf16>, vector<384x128xbf16>, vector<256x128xf32> -> vector<256x128xf32>
    %67 = arith.addf %62, %66 : vector<256x128xf32>
    %c32 = arith.constant 32 : index
    %c0_34 = arith.constant 0 : index
    %68 = vector.load %arg9[%c32, %c0_34] : memref<288x384xbf16, #tpu.memory_space<vmem>>, vector<256x384xbf16>
    %c2 = arith.constant 2 : index
    %c0_35 = arith.constant 0 : index
    %c0_36 = arith.constant 0 : index
    %69 = vector.load %arg4[%c2, %c0_35, %c0_36] : memref<3x384x128xbf16, #tpu.memory_space<vmem>>, vector<1x384x128xbf16>
    %70 = vector.shape_cast %69 : vector<1x384x128xbf16> to vector<384x128xbf16>
    %cst_37 = arith.constant dense<0.000000e+00> : vector<256x128xf32>
    %71 = tpu.matmul %68, %70, %cst_37 {dimension_numbers = #tpu.dot_dimension_numbers<[1], [0], [0], [1], [0, 0, 1, 1], [], []>} : vector<256x384xbf16>, vector<384x128xbf16>, vector<256x128xf32> -> vector<256x128xf32>
    %72 = arith.addf %67, %71 : vector<256x128xf32>
    %c0_38 = arith.constant 0 : index
    %c0_39 = arith.constant 0 : index
    %73 = vector.load %arg5[%c0_38, %c0_39] : memref<1x128xf32, #tpu.memory_space<vmem>>, vector<1x128xf32>
    %74 = vector.broadcast %73 : vector<1x128xf32> to vector<256x128xf32>
    %75 = arith.addf %72, %74 : vector<256x128xf32>
    %cst_40 = arith.constant 0.000000e+00 : f32
    %76 = vector.broadcast %cst_40 : f32 to vector<256x128xf32>
    %77 = arith.maximumf %75, %76 : vector<256x128xf32>
    %78 = arith.truncf %77 : vector<256x128xf32> to vector<256x128xbf16>
    %c0_41 = arith.constant 0 : index
    %c0_42 = arith.constant 0 : index
    %79 = vector.load %arg6[%c0_41, %c0_42] : memref<128x128xbf16, #tpu.memory_space<vmem>>, vector<128x128xbf16>
    %cst_43 = arith.constant dense<0.000000e+00> : vector<256x128xf32>
    %80 = tpu.matmul %78, %79, %cst_43 {dimension_numbers = #tpu.dot_dimension_numbers<[1], [0], [0], [1], [0, 0, 1, 1], [], []>} : vector<256x128xbf16>, vector<128x128xbf16>, vector<256x128xf32> -> vector<256x128xf32>
    %c0_44 = arith.constant 0 : index
    %c0_45 = arith.constant 0 : index
    %81 = vector.load %arg7[%c0_44, %c0_45] : memref<1x128xf32, #tpu.memory_space<vmem>>, vector<1x128xf32>
    %82 = vector.broadcast %81 : vector<1x128xf32> to vector<256x128xf32>
    %83 = arith.addf %80, %82 : vector<256x128xf32>
    %c0_46 = arith.constant 0 : index
    %c0_47 = arith.constant 0 : index
    %84 = vector.load %arg1[%c0_46, %c0_47] : memref<256x128xbf16, #tpu.memory_space<vmem>>, vector<256x128xbf16>
    %85 = arith.extf %84 : vector<256x128xbf16> to vector<256x128xf32>
    %86 = arith.addf %83, %85 : vector<256x128xf32>
    %cst_48 = arith.constant 0.000000e+00 : f32
    %87 = vector.broadcast %cst_48 : f32 to vector<256x128xf32>
    %88 = arith.maximumf %86, %87 : vector<256x128xf32>
    %c0_49 = arith.constant 0 : index
    %c0_50 = arith.constant 0 : index
    %89 = vector.load %arg8[%c0_49, %c0_50] : memref<256x128xf32, #tpu.memory_space<vmem>>, vector<256x128xf32>
    tpu.vector_store %arg8[%c0_49, %c0_50], %88 {strides = array<i32>} : memref<256x128xf32, #tpu.memory_space<vmem>>, vector<256x128xf32>,
    return
  }
  func.func @transform_0(%arg0: i32) -> (i32, i32) {
    %c0_i32 = arith.constant 0 : i32
    %c0_i32_0 = arith.constant 0 : i32
    return %arg0, %c0_i32 : i32, i32
  }
  func.func @transform_1(%arg0: i32) -> (i32, i32) {
    %c0_i32 = arith.constant 0 : i32
    %c0_i32_0 = arith.constant 0 : i32
    %c0_i32_1 = arith.constant 0 : i32
    return %c0_i32, %c0_i32_0 : i32, i32
  }
  func.func @transform_2(%arg0: i32) -> (i32, i32) {
    %c0_i32 = arith.constant 0 : i32
    %c0_i32_0 = arith.constant 0 : i32
    %c0_i32_1 = arith.constant 0 : i32
    return %c0_i32, %c0_i32_0 : i32, i32
  }
  func.func @transform_3(%arg0: i32) -> (i32, i32, i32) {
    %c0_i32 = arith.constant 0 : i32
    %c0_i32_0 = arith.constant 0 : i32
    %c0_i32_1 = arith.constant 0 : i32
    %c0_i32_2 = arith.constant 0 : i32
    return %c0_i32, %c0_i32_0, %c0_i32_1 : i32, i32, i32
  }
  func.func @transform_4(%arg0: i32) -> (i32, i32) {
    %c0_i32 = arith.constant 0 : i32
    %c0_i32_0 = arith.constant 0 : i32
    %c0_i32_1 = arith.constant 0 : i32
    return %c0_i32, %c0_i32_0 : i32, i32
  }
  func.func @transform_5(%arg0: i32) -> (i32, i32) {
    %c0_i32 = arith.constant 0 : i32
    %c0_i32_0 = arith.constant 0 : i32
    %c0_i32_1 = arith.constant 0 : i32
    return %c0_i32, %c0_i32_0 : i32, i32
  }
  func.func @transform_6(%arg0: i32) -> (i32, i32) {
    %c0_i32 = arith.constant 0 : i32
    %c0_i32_0 = arith.constant 0 : i32
    %c0_i32_1 = arith.constant 0 : i32
    return %c0_i32, %c0_i32_0 : i32, i32
  }
  func.func @transform_7(%arg0: i32) -> (i32, i32) {
    %c0_i32 = arith.constant 0 : i32
    %c0_i32_0 = arith.constant 0 : i32
    return %arg0, %c0_i32 : i32, i32
  }
}

</mosaic_0001>

<bundles_post_ra>
// kernel: tpu_custom_call.1
= control target key start
LH: loop header
LB: loop body
LE: loop exit
PB: predicated region body
PF: predicated region fallthrough
CT: control target
= control target key end

     0   :  { %s7435_s0 = inlined_call_operand.hbm [shape: bf16[512,128], index: 0, kind: input, shape index: {}]   ;;  %s7436_s1 = inlined_call_operand.hbm [shape: bf16[128,128], index: 1, kind: input, shape index: {}]   ;;  %s7437_s2 = inlined_call_operand.vmem [shape: f32[1,128], index: 2, kind: input, shape index: {}]   ;;  %s7438_s3 = inlined_call_operand.hbm [shape: bf16[3,384,128], index: 3, kind: input, shape index: {}]   ;;  %s7439_s4 = inlined_call_operand.vmem [shape: f32[1,128], index: 4, kind: input, shape index: {}]   ;;  %s7440_s5 = inlined_call_operand.hbm [shape: bf16[128,128], index: 5, kind: input, shape index: {}]   ;;  %s7441_s6 = inlined_call_operand.vmem [shape: f32[1,128], index: 6, kind: input, shape index: {}]   ;;  %s7442_s7 = inlined_call_operand.hbm [shape: f32[512,128], index: 7, kind: output, shape index: {}]  }
   0x1   :  { %7445 = sst [smem:[#allocation90_spill]] %s7436_s1 }
   0x2   :  { %12 = vsyncpa [#allocation4], 0 }
   0x3   :  { %14 = vsyncpa [#allocation4 + $0x1], 0 }
   0x4   :  { %15 = vsyncpa [#allocation7], 0 }
   0x5   :  { %16 = vsyncpa [#allocation10], 0 }
   0x6   :  { %17 = vsyncpa [#allocation5], 0 }
   0x7   :  { %19 = vsyncpa [#allocation5 + $0x1], 0  ;;  %s6020_s24 = smov 0   ;;  %s6022_s25 = smov 0  }
   0x8   :  { %s6024_s26 = smov 0   ;;  %s6026_s27 = smov 0  }
   0x9 LB: > { %s6041_s28 = sadd.s32 4294967295, %s5970_s27   ;;  %s4518_s29 = sadd.s32 4294967294, %s5970_s27   ;;  %s5970_s27 = sphi %s6026_s27, %s7607_s27   ;;  %s5966_s26 = sphi %s6024_s26, %s7606_s26   ;;  %s5962_s25 = sphi %s6022_s25, %s7605_s25   ;;  %s5958_s24 = sphi %s6020_s24, %s7604_s24  }
   0xa   : > { %p45_p0 = scmp.ne.s32.totalorder %s5962_s25, %s5958_s24  ;;  %p46_p1 = scmp.eq.s32.totalorder %s6041_s28, 0 }
   0xb   : > { %p195_p2 = scmp.eq.s32.totalorder %s6041_s28, 1  ;;  %p201_p3 = scmp.eq.s32.totalorder %s4518_s29, 1 }
   0xc   : > { %p6050_p4 = por %p46_p1, %p45_p0  ;;  %p4519_p5 = scmp.ge.s32.totalorder %s5970_s27, 1 }
   0xd   : > { %p6055_p6 = por %p201_p3, %p45_p0  ;;  %p208_p7 = scmp.lt.s32.totalorder %s5970_s27, 3 }
   0xe   : > { %s7448_s1 = sld [smem:[#allocation90_spill]]  ;;  %s5972_s13 = smov [#allocation6]  }
   0xf   : > { %p6063_p8 = pnand %p4519_p5, %p208_p7  ;;  %s221_s14 = sshll.u32 %s5972_s13, 4  ;;  %s222_s14 = int_to_ptr.vmem [resolvable:$true] %s221_s14 }
  0x10   : > { %s236_s18 = sshll.u32 %s7438_s3, 4  ;;  %s7443_s19 = smov 64   ;;  %s237_s18 = int_to_ptr.hbm [resolvable:$true] %s236_s18 }
  0x11   : > { %p5706_p9 = pneg %p6063_p8  ;;  %s7444_s20 = smov 4  }
  0x12   : > { %s5975_s21 = smov [#allocation8]   ;;  %s253_s9 = sshll.u32 %s7440_s5, 4  ;;  %s254_s9 = int_to_ptr.hbm [resolvable:$true] %s253_s9 }
  0x13   : > { %p6071_p10 = pnand %p5706_p9, %p46_p1  ;;  %s238_s22 = sshll.u32 %s5975_s21, 4  ;;  %s239_s22 = int_to_ptr.vmem [resolvable:$true] %s238_s22 }
  0x14   : > { %s219_s11 = sshll.u32 %s7448_s1, 4  ;;  %s5976_s10 = smov [#allocation9]   ;;  %s220_s11 = int_to_ptr.hbm [resolvable:$true] %s219_s11 }
  0x15   : > { %5709 = dma.hbm_to_vmem [thread:$0]  (!%p6071_p10), %s220_s11, 1024, %s222_s14, [#allocation7], %s7443_s19, %s7443_s19, %s7444_s20  }
  0x16   : > { %5712 = dma.hbm_to_vmem [thread:$0]  (!%p6071_p10), %s237_s18, 9216, %s239_s22, [#allocation7], %s7443_s19, %s7443_s19, %s7444_s20  }
  0x17   : > { %s255_s11 = sshll.u32 %s5976_s10, 4  ;;  %s6093_s13 = sadd.s32 1, %s5970_s27   ;;  %s256_s11 = int_to_ptr.vmem [resolvable:$true] %s255_s11 }
  0x18   : > { %5715 = dma.hbm_to_vmem [thread:$0]  (!%p6071_p10), %s254_s9, 1024, %s256_s11, [#allocation10], %s7443_s19, %s7443_s19, %s7444_s20  }
  0x19   : > { %s29_s14 = ssub.s32 %s5970_s27, %s6093_s13  ;;  %s32_s16 = sadd.s32 1, %s5966_s26 }
  0x1a   : > { %p30_p12 = scmp.eq.s32.totalorder %s29_s14, 0  ;;  %p39_p13 = scmp.ne.s32.totalorder %s5966_s26, %s5962_s25 }
  0x1b   : > { %p40_p0 = scmp.eq.s32.totalorder %s5970_s27, 0  ;;  %p5727_p5 = scmp.lt.s32.totalorder %s5970_s27, 2 }
  0x1c   : > { %s6107_s17 = scalar_select %p30_p12, %s5966_s26, %s32_s16  }
  0x1d   : > { %p6111_p3 = por %p195_p2, %p39_p13  ;;  %s272_s21 = sand.u32 1, %s5966_s26  }
  0x1e   : > { %s5382_s15 = sshll.u32 %s5970_s27, 7  ;;  %p41_p7 = por %p40_p0, %p39_p13 }
  0x1f   : > { %s4524_s22 = sshll.u32 %s272_s21, 7  ;;  %s281_s9 = scalar_lea.hbm %s7435_s0, %s5382_s15 }
  0x20   : > { %s282_s10 = sshll.u32 %s281_s9, 4  ;;  %s276_s11 = scalar_lea.vmem [#allocation3], %s4524_s22  ;;  %s283_s10 = int_to_ptr.hbm [resolvable:$true] %s282_s10 }
  0x21   : > { %s284_s14 = sshll.u32 %s276_s11, 4  ;;  %p6121_p9 = pnand %p5727_p5, %p41_p7  ;;  %s285_s14 = int_to_ptr.vmem [resolvable:$true] %s284_s14 }
  0x22   : > { %s273_s19 = scalar_lea.sflag [#allocation4], %s272_s21  ;;  %s5866_s20 = sshra.s32 %s283_s10, 4  ;;  %s5867_s20 = int_to_ptr.hbm [resolvable:$true] %s5866_s20 }
  0x23   : > { %s5868_s1 = scalar_lea.hbm %s5867_s20, 128  ;;  %p5870_p10 = pneg %p6121_p9 }
  0x24   : > { %p5869_p2 = scmp.ne.s32.totalorder %s5867_s20, %s5868_s1  ;;  %s5873_s22 = scalar_lea.hbm %s7435_s0, 256 }
  0x25   : > { %p5874_p0 = scmp.lt.s32.totalorder %s5867_s20, %s7435_s0  ;;  %p5875_p5 = scmp.lt.s32.totalorder %s5873_s22, %s5868_s1 }
  0x26   : > { %p5871_p12 = pnand %p5870_p10, %p5869_p2 }
  0x27   : > { %p5876_p7 = por %p5875_p5, %p5874_p0 }
  0x28   : > { %p5872_p13 = pneg %p5871_p12 }
  0x2a   : > { %p5877_p11 = pnand %p5876_p7, %p5872_p13 }
  0x2c   : > { %5880 = shalt.err (!%p5877_p11)
}
  0x2d   : > { %s7453_s21 = smov 4   ;;  %s7454_s11 = smov 64  }
  0x2e   : > { %5719 = dma.hbm_to_vmem [thread:$0]  (!%p6121_p9), %s283_s10, 2048, %s285_s14, %s273_s19, %s7454_s11, %s7454_s11, %s7453_s21  }
  0x2f   : > { %296 = sbr.rel (%p6063_p8) target bundleno = 1348 (0x544), region = 48 }
  0x34   : > { %s6141_s15 = sand.u32 1, %s5962_s25  }
  0x35   : > { %s4528_s20 = sshll.u32 %s6141_s15, 7  ;;  %s299_s1 = scalar_lea.sflag [#allocation4], %s6141_s15 }
  0x36   : > { %s6145_s23 = scalar_lea.vmem [#allocation3], %s4528_s20 }
  0x37   : > { %5941 = dma.done.wait (%p6050_p4), %s299_s1, 2048  }
  0x38   : > { %5943 = vsyncadd (%p6050_p4), %s299_s1, 4294965248 }
  0x39   : > { %5945 = dma.done.wait (%p46_p1), [#allocation7], 10240  }
  0x3a   : > { %5947 = vsyncadd (%p46_p1), [#allocation7], 4294957056 }
  0x3b   : > { %5949 = dma.done.wait (%p46_p1), [#allocation10], 1024  }
  0x3c   : > { %5951 = vsyncadd (%p46_p1), [#allocation10], 4294966272  ;;  %v5406_v0 = vld [vmem:[#allocation6 + $0x38] sm:$0xff]  ;;  %v5405_v1 = vld [vmem:[#allocation6 + $0x30] sm:$0xff]  ;;  %v677_v30 = vlaneseq  ;;  %vm1158_vm0 = vcmask 1040384   ;;  %vm1575_vm2 = vcmask 1046528  }
  0x3d   : > { %548 = vmatpush.bf16.msra.mxu0 %v5406_v0  ;;  %5666 = vmatpush.bf16.msra.mxu3 %v5406_v0  ;;  %v5404_v2 = vld [vmem:[#allocation6 + $0x28] sm:$0xff]  ;;  %v5403_v3 = vld [vmem:[#allocation6 + $0x20] sm:$0xff]  ;;  %v5402_v4 = vld [vmem:[#allocation6 + $0x18] sm:$0xff]  ;;  %s4532_s9 = sshll.u32 %s6141_s15, 8  ;;  %s5586_s11 = sshll.u32 %s6041_s28, 8 }
  0x3e   : > { %v5401_v5 = vld [vmem:[#allocation6 + $0x10] sm:$0xff]  ;;  %v5400_v6 = vld [vmem:[#allocation6 + $0x8] sm:$0xff]  ;;  %v5399_v7 = vld [vmem:[#allocation6] sm:$0xff]  ;;  %v6177_v34 = vshrl.u32 %v677_v30, 7  ;;  %s7262_s21 = scalar_lea.vmem [#allocation11], %s4532_s9  ;;  %s4412_s30 = scalar_lea.hbm %s7442_s7, %s5586_s11 }
  0x3f   : > { %v5383_v8 = vld [vmem:[%s6145_s23] sm:$0xff]  ;;  %v5384_v9 = vld [vmem:[%s6145_s23 + $0x8] sm:$0xff]  ;;  %v5385_v10 = vld [vmem:[%s6145_s23 + $0x10] sm:$0xff]  ;;  %s4415_s12 = sshll.u32 %s4412_s30, 4  ;;  %s4401_s19 = scalar_lea.sflag [#allocation5], %s6141_s15  ;;  %s4416_s12 = int_to_ptr.hbm [resolvable:$true] %s4415_s12 }
  0x40   : > { %v5386_v11 = vld [vmem:[%s6145_s23 + $0x18] sm:$0xff]  ;;  %v5387_v12 = vld [vmem:[%s6145_s23 + $0x20] sm:$0xff]  ;;  %v5388_v13 = vld [vmem:[%s6145_s23 + $0x28] sm:$0xff]  ;;  %v714_v36 = vand.u32 15, %v6177_v34  ;;  %v679_v50 = vadd.s32 8, %v6177_v34  ;;  %v680_v51 = vadd.s32 16, %v6177_v34 }
  0x41   : > { %549 = vmatpush.bf16.msra.mxu0 %v5405_v1  ;;  %5667 = vmatpush.bf16.msra.mxu3 %v5405_v1  ;;  %v5497_v14 = vld [vmem:[#allocation8 + $0x138] sm:$0xff]  ;;  %v5496_v16 = vld [vmem:[#allocation8 + $0x130] sm:$0xff]  ;;  %v5495_v19 = vld [vmem:[#allocation8 + $0x128] sm:$0xff]  ;;  %s5910_s28 = sshra.s32 %s4416_s12, 4  ;;  %s5916_s22 = scalar_lea.hbm %s7442_s7, 512  ;;  %s5911_s28 = int_to_ptr.hbm [resolvable:$true] %s5910_s28 }
  0x42   : > { %v5489_v15 = vld [vmem:[#allocation8 + $0xf8] sm:$0xff]  ;;  %2582 = vmatpush.bf16.msra.mxu2 %v5497_v14  ;;  %v5389_v17 = vld [vmem:[%s6145_s23 + $0x30] sm:$0xff]  ;;  %v5487_v20 = vld [vmem:[#allocation8 + $0xe8] sm:$0xff]  ;;  %v4629_v40 = vadd.s32 4294967295, %v714_v36  ;;  %v721_v56 = vand.u32 15, %v679_v50  ;;  %v728_v57 = vand.u32 15, %v680_v51  ;;  %p5917_p11 = scmp.lt.s32.totalorder %s5911_s28, %s7442_s7 }
  0x43   : > { %2493 = vmatpush.bf16.msra.mxu1 %v5489_v15  ;;  %v5488_v18 = vld [vmem:[#allocation8 + $0xf0] sm:$0xff]  ;;  %v5494_v21 = vld [vmem:[#allocation8 + $0x120] sm:$0xff]  ;;  %v5493_v23 = vld [vmem:[#allocation8 + $0x118] sm:$0xff]  ;;  %s5912_s10 = scalar_lea.hbm %s5911_s28, 256 }
  0x44   : > { %v5486_v22 = vld [vmem:[#allocation8 + $0xe0] sm:$0xff]  ;;  %v5485_v24 = vld [vmem:[#allocation8 + $0xd8] sm:$0xff]  ;;  %v6166_v25 = vld [vmem:[#allocation8 + $0x110] sm:$0xff]  ;;  %vm1287_vm1 = vcmp.ge.s32.totalorder %v4629_v40, 0  ;;  %p5913_p1 = scmp.ne.s32.totalorder %s5911_s28, %s5912_s10  ;;  %p5918_p9 = scmp.lt.s32.totalorder %s5916_s22, %s5912_s10 }
  0x45   : > { %550 = vmatpush.bf16.msra.mxu0 %v5404_v2  ;;  %5668 = vmatpush.bf16.msra.mxu3 %v5404_v2  ;;  %v5390_v26 = vld [vmem:[%s6145_s23 + $0x38] sm:$0xff]  ;;  %v5484_v27 = vld [vmem:[#allocation8 + $0xd0] sm:$0xff]  ;;  %v6170_v28 = vld [vmem:[#allocation8 + $0x108] sm:$0xff] }
  0x46   : > { %2583 = vmatpush.bf16.msra.mxu2 %v5496_v16  ;;  %v5483_v29 = vld [vmem:[#allocation8 + $0xc8] sm:$0xff]  ;;  %v6173_v31 = vld [vmem:[#allocation8 + $0x100] sm:$0xff]  ;;  %v6182_v35 = vld [vmem:[%s7437_s2] ss:$0 sm:$0xff]  ;;  %p5914_p4 = pnand %p5913_p1, %p6111_p3  ;;  %p5919_p2 = por %p5918_p9, %p5917_p11 }
  0x47   : > { %2494 = vmatpush.bf16.msra.mxu1 %v5488_v18  ;;  %v5395_v32 = vld [vmem:[%s6145_s23 + $0x60] sm:$0xff]  ;;  %v5462_v42 = vld [vmem:[#allocation8 + $0x38] sm:$0xff]  ;;  %v5396_v45 = vld [vmem:[%s6145_s23 + $0x68] sm:$0xff] }
  0x48   : > { %v5482_v33 = vld [vmem:[#allocation8 + $0xc0] sm:$0xff]  ;;  %v5461_v47 = vld [vmem:[#allocation8 + $0x30] sm:$0xff]  ;;  %v5460_v55 = vld [vmem:[#allocation8 + $0x28] sm:$0xff]  ;;  %p5915_p8 = pneg %p5914_p4 }
  0x49   : > { %551 = vmatpush.bf16.msra.mxu0 %v5403_v3  ;;  %5669 = vmatpush.bf16.msra.mxu3 %v5403_v3  ;;  %v5391_v37 = vld [vmem:[%s6145_s23 + $0x40] sm:$0xff]  ;;  %v5392_v0 = vld [vmem:[%s6145_s23 + $0x48] sm:$0xff] }
  0x4a   : > { %2584 = vmatpush.bf16.msra.mxu2 %v5495_v19  ;;  %v5459_v1 = vld [vmem:[#allocation8 + $0x20] sm:$0xff]  ;;  %p5920_p10 = pnand %p5919_p2, %p5915_p8 }
  0x4b   : > { %2495 = vmatpush.bf16.msra.mxu1 %v5487_v20 }
  0x4d   : > { %552 = vmatpush.bf16.msra.mxu0 %v5402_v4  ;;  %5670 = vmatpush.bf16.msra.mxu3 %v5402_v4 }
  0x4e   : > { %2585 = vmatpush.bf16.msra.mxu2 %v5494_v21 }
  0x4f   : > { %2496 = vmatpush.bf16.msra.mxu1 %v5486_v22 }
  0x51   : > { %553 = vmatpush.bf16.msra.mxu0 %v5401_v5  ;;  %5671 = vmatpush.bf16.msra.mxu3 %v5401_v5  ;;  %v4631_v5 = vadd.s32 4294967295, %v728_v57 }
  0x52   : > { %2586 = vmatpush.bf16.msra.mxu2 %v5493_v23 }
  0x53   : > { %2497 = vmatpush.bf16.msra.mxu1 %v5485_v24  ;;  %vm1289_vm3 = vcmp.ge.s32.totalorder %v4631_v5, 0 }
  0x55   : > { %554 = vmatpush.bf16.msra.mxu0 %v5400_v6  ;;  %5672 = vmatpush.bf16.msra.mxu3 %v5400_v6 }
  0x56   : > { %2587 = vmatpush.bf16.msra.mxu2 %v6166_v25 }
  0x57   : > { %2498 = vmatpush.bf16.msra.mxu1 %v5484_v27 }
  0x59   : > { %555 = vmatpush.bf16.msra.mxu0 %v5399_v7  ;;  %5673 = vmatpush.bf16.msra.mxu3 %v5399_v7  ;;  %v1673_v7 = vadd.s32 1, %v721_v56 }
  0x5a   : > { %2588 = vmatpush.bf16.msra.mxu2 %v6170_v28 }
  0x5b   : > { %2499 = vmatpush.bf16.msra.mxu1 %v5483_v29  ;;  %vm1705_vm4 = vcmp.lt.s32.totalorder %v1673_v7, 16 }
  0x5c   : > { %556 = vmatmul.bf16.vlgmr.msra.gmra.mxu0 %v5383_v8  ;;  %616 = vmatmul.bf16.vlgmr.msra.gmra.mxu3 %v5395_v32 }
  0x5d   : > { %5674 = vmatpush.bf16.msrb.mxu3 %v5489_v15  ;;  %2920 = vmatpush.bf16.msrb.mxu0 %v5462_v42  ;;  %v5397_v15 = vld [vmem:[%s6145_s23 + $0x70] sm:$0xff] }
  0x5e   : > { %2589 = vmatpush.bf16.msra.mxu2 %v6173_v31 }
  0x5f   : > { %2500 = vmatpush.bf16.msra.mxu1 %v5482_v33 }
  0x61   : > { %5675 = vmatpush.bf16.msrb.mxu3 %v5488_v18  ;;  %2921 = vmatpush.bf16.msrb.mxu0 %v5461_v47 }
  0x65   : > { %5676 = vmatpush.bf16.msrb.mxu3 %v5487_v20  ;;  %2922 = vmatpush.bf16.msrb.mxu0 %v5460_v55 }
  0x69   : > { %5677 = vmatpush.bf16.msrb.mxu3 %v5486_v22  ;;  %2923 = vmatpush.bf16.msrb.mxu0 %v5459_v1 }
  0x6c   : > { %561 = vmatmul.bf16.gmra.mxu0 %v5384_v9  ;;  %621 = vmatmul.bf16.gmra.mxu3 %v5396_v45  ;;  %v5458_v9 = vld [vmem:[#allocation8 + $0x18] sm:$0xff] }
  0x6d   : > { %5678 = vmatpush.bf16.msrb.mxu3 %v5485_v24  ;;  %2924 = vmatpush.bf16.msrb.mxu0 %v5458_v9  ;;  %v682_v24 = vadd.s32 32, %v6177_v34 }
  0x6f   : > { %v742_v36 = vand.u32 15, %v682_v24 }
  0x71   : > { %5679 = vmatpush.bf16.msrb.mxu3 %v5484_v27 }
  0x75   : > { %5680 = vmatpush.bf16.msrb.mxu3 %v5483_v29 }
  0x79   : > { %5681 = vmatpush.bf16.msrb.mxu3 %v5482_v33  ;;  %v5456_v33 = vld [vmem:[#allocation8 + $0x8] sm:$0xff] }
  0x7c   : > { %566 = vmatmul.bf16.gmra.mxu0 %v5385_v10  ;;  %626 = vmatmul.bf16.gmra.mxu3 %v5397_v15 }
  0x7d   : > { %5682 = vmatpush.bf16.msra.mxu3 %v5497_v14 }
  0x81   : > { %5683 = vmatpush.bf16.msra.mxu3 %v5496_v16 }
  0x85   : > { %5684 = vmatpush.bf16.msra.mxu3 %v5495_v19  ;;  %v5457_v19 = vld [vmem:[#allocation8 + $0x10] sm:$0xff] }
  0x86   : > { %2925 = vmatpush.bf16.msrb.mxu0 %v5457_v19 }
  0x89   : > { %5685 = vmatpush.bf16.msra.mxu3 %v5494_v21 }
  0x8a   : > { %2926 = vmatpush.bf16.msrb.mxu0 %v5456_v33 }
  0x8c   : > { %571 = vmatmul.bf16.gmra.mxu0 %v5386_v11 }
  0x8d   : > { %5686 = vmatpush.bf16.msra.mxu3 %v5493_v23  ;;  %v681_v23 = vadd.s32 24, %v6177_v34 }
  0x8f   : > { %v735_v40 = vand.u32 15, %v681_v23 }
  0x91   : > { %5687 = vmatpush.bf16.msra.mxu3 %v6166_v25  ;;  %v1675_v50 = vadd.s32 1, %v735_v40 }
  0x93   : > { %vm1707_vm6 = vcmp.lt.s32.totalorder %v1675_v50, 16 }
  0x95   : > { %5688 = vmatpush.bf16.msra.mxu3 %v6170_v28 }
  0x99   : > { %5689 = vmatpush.bf16.msra.mxu3 %v6173_v31  ;;  %v5977_v31 = vmov 0  }
  0x9a   : > { %669 = vst [vmem:[#allocation2] sm:$0xff] %v5977_v31 }
  0x9b   : > { %671 = vst [vmem:[#allocation2 + $0xc] sm:$0xff] %v5977_v31 }
  0x9c   : > { %576 = vmatmul.bf16.gmra.mxu0 %v5387_v12  ;;  %670 = vst [vmem:[#allocation2 + $0x8] sm:$0xf] %v5977_v31 }
  0x9d   : > { %672 = vst [vmem:[#allocation2 + $0x14] sm:$0xf] %v5977_v31 }
  0x9e   : > { %673 = vst [vmem:[#allocation2 + $0x198] sm:$0xff] %v5977_v31 }
  0x9f   : > { %674 = vst [vmem:[#allocation2 + $0x1a0] sm:$0xf] %v5977_v31 }
  0xa0   : > { %675 = vst [vmem:[#allocation2 + $0x1a4] sm:$0xff] %v5977_v31 }
  0xa1   : > { %676 = vst [vmem:[#allocation2 + $0x1ac] sm:$0xf] %v5977_v31 }
  0xa2   : > { %v5408_v50 = vld [vmem:[#allocation2 + $0x8] sm:$0xf0] }
  0xac   : > { %581 = vmatmul.bf16.gmra.mxu0 %v5388_v13 }
  0xbc   : > { %586 = vmatmul.bf16.gmra.mxu0 %v5389_v17 }
  0xcc   : > { %591 = vmatmul.bf16.gmra.mxu0 %v5390_v26 }
  0xd9   : > { %v557_v38 = vpop.f32.mrf.mxu0 }
  0xda   : > { %v558_v39 = vadd.f32 %v6182_v35, %v557_v38 }
  0xdc   : > { %v637_v41 = vmax.f32 %v558_v39, 0.0  ;;  %596 = vmatmul.bf16.gmra.mxu0 %v5391_v37 }
  0xde   : > { %v1159_v43 = vrot.slane %v637_v41, 7  ;;  %v1511_v44 = vpack.c.bf16 %v637_v41, %v637_v41  ;;  %v1576_v58 = vrot.slane %v637_v41, 1 }
  0xe0   : > { %v1254_v46 = vsel %vm1158_vm0, 0.0, %v1159_v43  ;;  %1543 = vst [vmem:[#allocation2 + $0x1c] sm:$0xf] %v1511_v44  ;;  %v5455_v44 = vld [vmem:[#allocation8] sm:$0xff] }
  0xe1   : > { %v1415_v48 = vsel %vm1287_vm1, %v1254_v46, 0.0  ;;  %v559_v49 = vpop.f32.mrf.mxu0  ;;  %2927 = vmatpush.bf16.msrb.mxu0 %v5455_v44 }
  0xe2   : > { %v1447_v52 = vpack.c.bf16 %v1415_v48, %v1415_v48  ;;  %v560_v53 = vadd.f32 %v6182_v35, %v559_v49  ;;  %v4633_v48 = vadd.s32 4294967295, %v742_v36 }
  0xe4   : > { %1479 = vst [vmem:[#allocation2 + $0x18] sm:$0xf] %v1447_v52  ;;  %v638_v54 = vmax.f32 %v560_v53, 0.0  ;;  %vm1291_vm5 = vcmp.ge.s32.totalorder %v4633_v48, 0  ;;  %v4951_v48 = vld [vmem:[#allocation2] sm:$0xf] }
  0xe6   : > { %v1160_v59 = vrot.slane %v638_v54, 7  ;;  %v1512_v60 = vpack.c.bf16 %v638_v54, %v638_v54  ;;  %v1577_v61 = vrot.slane %v638_v54, 1 }
  0xe7   : > { %v5410_v13 = vld [vmem:[#allocation2 + $0x1c] sm:$0xf] }
  0xe8   : > { %v1161_v62 = vsel %vm1158_vm0, %v1159_v43, %v1160_v59  ;;  %1544 = vst [vmem:[#allocation2 + $0x28] sm:$0xf] %v1512_v60  ;;  %v1578_v63 = vsel %vm1575_vm2, %v1576_v58, %v1577_v61  ;;  %v5393_v43 = vld [vmem:[%s6145_s23 + $0x50] sm:$0xff]  ;;  %v5398_v60 = vld [vmem:[%s6145_s23 + $0x78] sm:$0xff] }
  0xe9   : > { %v1448_v2 = vpack.c.bf16 %v1161_v62, %v1161_v62  ;;  %v1864_v3 = vpack.c.bf16 %v1578_v63, %v1578_v63  ;;  %v562_v4 = vpop.f32.mrf.mxu0  ;;  %631 = vmatmul.bf16.gmra.mxu3 %v5398_v60 }
  0xea   : > { %v563_v6 = vadd.f32 %v6182_v35, %v562_v4 }
  0xeb   : > { %1480 = vst [vmem:[#allocation2 + $0x24] sm:$0xf] %v1448_v2  ;;  %v4663_v28 = vld [vmem:[#allocation2 + $0x18] sm:$0xf] }
  0xec   : > { %1896 = vst [vmem:[#allocation2 + $0x20] sm:$0xf] %v1864_v3  ;;  %v639_v8 = vmax.f32 %v563_v6, 0.0  ;;  %601 = vmatmul.bf16.gmra.mxu0 %v5392_v0  ;;  %v684_v0 = vadd.s32 48, %v6177_v34  ;;  %v683_v6 = vadd.s32 40, %v6177_v34 }
  0xee   : > { %v1162_v10 = vrot.slane %v639_v8, 7  ;;  %v1513_v11 = vpack.c.bf16 %v639_v8, %v639_v8  ;;  %v1579_v12 = vrot.slane %v639_v8, 1  ;;  %v756_v9 = vand.u32 15, %v684_v0 }
  0xef   : > { %v4665_v14 = vld [vmem:[#allocation2 + $0x24] sm:$0xf0] }
  0xf0   : > { %v1163_v16 = vsel %vm1158_vm0, %v1160_v59, %v1162_v10  ;;  %1545 = vst [vmem:[#allocation2 + $0x34] sm:$0xf] %v1513_v11  ;;  %v1580_v17 = vsel %vm1575_vm2, %v1577_v61, %v1579_v12  ;;  %v6201_v18 = vor.u32 %v5410_v13, %v4665_v14  ;;  %v749_v13 = vand.u32 15, %v683_v6 }
  0xf1   : > { %v1417_v20 = vsel %vm1289_vm3, %v1163_v16, 0.0  ;;  %v1833_v21 = vsel %vm1705_vm4, %v1580_v17, 0.0  ;;  %v564_v22 = vpop.f32.mrf.mxu0  ;;  %v5394_v16 = vld [vmem:[%s6145_s23 + $0x58] sm:$0xff] }
  0xf2   : > { %v1449_v25 = vpack.c.bf16 %v1417_v20, %v1417_v20  ;;  %v1865_v26 = vpack.c.bf16 %v1833_v21, %v1833_v21  ;;  %v565_v27 = vadd.f32 %v6182_v35, %v564_v22  ;;  %2590 = vmatmul.bf16.vlgmr.msra.gmra.mxu2 %v6201_v18  ;;  %v5411_v29 = vld [vmem:[#allocation2 + $0x20] sm:$0xf0]  ;;  %v4635_v21 = vadd.s32 4294967295, %v756_v9 }
  0xf3   : > { %v6208_v30 = vor.u32 %v5411_v29, %v4663_v28  ;;  %v1677_v23 = vadd.s32 1, %v749_v13 }
  0xf4   : > { %1481 = vst [vmem:[#allocation2 + $0x30] sm:$0xf] %v1449_v25  ;;  %v640_v32 = vmax.f32 %v565_v27, 0.0  ;;  %vm1293_vm7 = vcmp.ge.s32.totalorder %v4635_v21, 0  ;;  %v687_v21 = vadd.s32 72, %v6177_v34 }
  0xf5   : > { %1897 = vst [vmem:[#allocation2 + $0x2c] sm:$0xf] %v1865_v26  ;;  %2501 = vmatmul.bf16.vlgmr.msra.gmra.mxu1 %v6208_v30  ;;  %vm1709_vm8 = vcmp.lt.s32.totalorder %v1677_v23, 16 }
  0xf6   : > { %v1164_v37 = vrot.slane %v640_v32, 7  ;;  %v1514_v38 = vpack.c.bf16 %v640_v32, %v640_v32  ;;  %v1581_v39 = vrot.slane %v640_v32, 1 }
  0xf7   : > { %v5413_v55 = vld [vmem:[#allocation2 + $0x34] sm:$0xf] }
  0xf8   : > { %v1165_v41 = vsel %vm1158_vm0, %v1162_v10, %v1164_v37  ;;  %1546 = vst [vmem:[#allocation2 + $0x40] sm:$0xf] %v1514_v38  ;;  %v1582_v42 = vsel %vm1575_vm2, %v1579_v12, %v1581_v39 }
  0xf9   : > { %v1450_v45 = vpack.c.bf16 %v1165_v41, %v1165_v41  ;;  %v1866_v46 = vpack.c.bf16 %v1582_v42, %v1582_v42  ;;  %v567_v47 = vpop.f32.mrf.mxu0 }
  0xfa   : > { %v568_v49 = vadd.f32 %v6182_v35, %v567_v47 }
  0xfb   : > { %1482 = vst [vmem:[#allocation2 + $0x3c] sm:$0xf] %v1450_v45  ;;  %v4675_v4 = vld [vmem:[#allocation2 + $0x30] sm:$0xf]  ;;  %v685_v45 = vadd.s32 56, %v6177_v34 }
  0xfc   : > { %1898 = vst [vmem:[#allocation2 + $0x38] sm:$0xf] %v1866_v46  ;;  %v641_v51 = vmax.f32 %v568_v49, 0.0  ;;  %606 = vmatmul.bf16.gmra.mxu0 %v5393_v43 }
  0xfe   : > { %v1166_v52 = vrot.slane %v641_v51, 7  ;;  %v1515_v53 = vpack.c.bf16 %v641_v51, %v641_v51  ;;  %v1583_v54 = vrot.slane %v641_v51, 1 }
  0xff   : > { %v4677_v56 = vld [vmem:[#allocation2 + $0x3c] sm:$0xf0] }
 0x100   : > { %v1167_v57 = vsel %vm1158_vm0, %v1164_v37, %v1166_v52  ;;  %1547 = vst [vmem:[#allocation2 + $0x4c] sm:$0xf] %v1515_v53  ;;  %v1584_v58 = vsel %vm1575_vm2, %v1581_v39, %v1583_v54  ;;  %v6217_v59 = vor.u32 %v5413_v55, %v4677_v56  ;;  %v686_v39 = vadd.s32 64, %v6177_v34 }
 0x101   : > { %v1419_v61 = vsel %vm1291_vm5, %v1167_v57, 0.0  ;;  %v1835_v62 = vsel %vm1707_vm6, %v1584_v58, 0.0  ;;  %v569_v63 = vpop.f32.mrf.mxu0  ;;  %v4952_v57 = vor.u32 %v5408_v50, %v4951_v48 }
 0x102   : > { %v1451_v1 = vpack.c.bf16 %v1419_v61, %v1419_v61  ;;  %v1867_v2 = vpack.c.bf16 %v1835_v62, %v1835_v62  ;;  %v570_v3 = vadd.f32 %v6182_v35, %v569_v63  ;;  %2595 = vmatmul.bf16.gmra.mxu2 %v6217_v59  ;;  %v5414_v5 = vld [vmem:[#allocation2 + $0x38] sm:$0xf0]  ;;  %v770_v49 = vand.u32 15, %v686_v39 }
 0x103   : > { %v6224_v7 = vor.u32 %v5414_v5, %v4675_v4 }
 0x104   : > { %1483 = vst [vmem:[#allocation2 + $0x48] sm:$0xf] %v1451_v1  ;;  %v642_v8 = vmax.f32 %v570_v3, 0.0  ;;  %v4637_v62 = vadd.s32 4294967295, %v770_v49 }
 0x105   : > { %1899 = vst [vmem:[#allocation2 + $0x44] sm:$0xf] %v1867_v2  ;;  %2506 = vmatmul.bf16.gmra.mxu1 %v6224_v7 }
 0x106   : > { %v1168_v10 = vrot.slane %v642_v8, 7  ;;  %v1516_v11 = vpack.c.bf16 %v642_v8, %v642_v8  ;;  %v1585_v12 = vrot.slane %v642_v8, 1  ;;  %vm1295_vm9 = vcmp.ge.s32.totalorder %v4637_v62, 0 }
 0x107   : > { %v5416_v28 = vld [vmem:[#allocation2 + $0x4c] sm:$0xf] }
 0x108   : > { %v1169_v14 = vsel %vm1158_vm0, %v1166_v52, %v1168_v10  ;;  %1548 = vst [vmem:[#allocation2 + $0x58] sm:$0xf] %v1516_v11  ;;  %v1586_v15 = vsel %vm1575_vm2, %v1583_v54, %v1585_v12  ;;  %v763_v54 = vand.u32 15, %v685_v45 }
 0x109   : > { %v1452_v17 = vpack.c.bf16 %v1169_v14, %v1169_v14  ;;  %v1868_v19 = vpack.c.bf16 %v1586_v15, %v1586_v15  ;;  %v572_v20 = vpop.f32.mrf.mxu0  ;;  %v688_v14 = vadd.s32 80, %v6177_v34 }
 0x10a   : > { %v573_v22 = vadd.f32 %v6182_v35, %v572_v20  ;;  %v1679_v0 = vadd.s32 1, %v763_v54  ;;  %v690_v54 = vadd.s32 96, %v6177_v34 }
 0x10b   : > { %1484 = vst [vmem:[#allocation2 + $0x54] sm:$0xf] %v1452_v17  ;;  %v4687_v43 = vld [vmem:[#allocation2 + $0x48] sm:$0xf] }
 0x10c   : > { %1900 = vst [vmem:[#allocation2 + $0x50] sm:$0xf] %v1868_v19  ;;  %v643_v24 = vmax.f32 %v573_v22, 0.0  ;;  %611 = vmatmul.bf16.gmra.mxu0 %v5394_v16  ;;  %vm1711_vm10 = vcmp.lt.s32.totalorder %v1679_v0, 16 }
 0x10e   : > { %v1170_v25 = vrot.slane %v643_v24, 7  ;;  %v1517_v26 = vpack.c.bf16 %v643_v24, %v643_v24  ;;  %v1587_v27 = vrot.slane %v643_v24, 1  ;;  %v784_v24 = vand.u32 15, %v688_v14 }
 0x10f   : > { %v4689_v29 = vld [vmem:[#allocation2 + $0x54] sm:$0xf0] }
 0x110   : > { %v1171_v31 = vsel %vm1158_vm0, %v1168_v10, %v1170_v25  ;;  %1549 = vst [vmem:[#allocation2 + $0x64] sm:$0xf] %v1517_v26  ;;  %v1588_v32 = vsel %vm1575_vm2, %v1585_v12, %v1587_v27  ;;  %v6233_v33 = vor.u32 %v5416_v28, %v4689_v29  ;;  %v777_v28 = vand.u32 15, %v687_v21 }
 0x111   : > { %v1421_v36 = vsel %vm1293_vm7, %v1171_v31, 0.0  ;;  %v1837_v37 = vsel %vm1709_vm8, %v1588_v32, 0.0  ;;  %v574_v38 = vpop.f32.mrf.mxu0 }
 0x112   : > { %v1453_v40 = vpack.c.bf16 %v1421_v36, %v1421_v36  ;;  %v1869_v41 = vpack.c.bf16 %v1837_v37, %v1837_v37  ;;  %v575_v42 = vadd.f32 %v6182_v35, %v574_v38  ;;  %2600 = vmatmul.bf16.gmra.mxu2 %v6233_v33  ;;  %v5417_v44 = vld [vmem:[#allocation2 + $0x50] sm:$0xf0]  ;;  %v4639_v38 = vadd.s32 4294967295, %v784_v24 }
 0x113   : > { %v6239_v46 = vor.u32 %v5417_v44, %v4687_v43 }
 0x114   : > { %1485 = vst [vmem:[#allocation2 + $0x60] sm:$0xf] %v1453_v40  ;;  %v644_v47 = vmax.f32 %v575_v42, 0.0  ;;  %v1681_v40 = vadd.s32 1, %v777_v28  ;;  %vm1297_vm11 = vcmp.ge.s32.totalorder %v4639_v38, 0  ;;  %v692_v28 = vadd.s32 112, %v6177_v34 }
 0x115   : > { %1901 = vst [vmem:[#allocation2 + $0x5c] sm:$0xf] %v1869_v41  ;;  %2511 = vmatmul.bf16.gmra.mxu1 %v6239_v46 }
 0x116   : > { %v1172_v51 = vrot.slane %v644_v47, 7  ;;  %v1518_v52 = vpack.c.bf16 %v644_v47, %v644_v47  ;;  %v1589_v53 = vrot.slane %v644_v47, 1  ;;  %vm1713_vm12 = vcmp.lt.s32.totalorder %v1681_v40, 16 }
 0x117   : > { %v5419_v5 = vld [vmem:[#allocation2 + $0x64] sm:$0xf]  ;;  %v812_v40 = vand.u32 15, %v692_v28 }
 0x118   : > { %v1173_v55 = vsel %vm1158_vm0, %v1170_v25, %v1172_v51  ;;  %1550 = vst [vmem:[#allocation2 + $0x70] sm:$0xf] %v1518_v52  ;;  %v1590_v56 = vsel %vm1575_vm2, %v1587_v27, %v1589_v53 }
 0x119   : > { %v1454_v58 = vpack.c.bf16 %v1173_v55, %v1173_v55  ;;  %v1870_v60 = vpack.c.bf16 %v1590_v56, %v1590_v56  ;;  %v577_v61 = vpop.f32.mrf.mxu0 }
 0x11a   : > { %v578_v63 = vadd.f32 %v6182_v35, %v577_v61 }
 0x11b   : > { %1486 = vst [vmem:[#allocation2 + $0x6c] sm:$0xf] %v1454_v58  ;;  %v4699_v19 = vld [vmem:[#allocation2 + $0x60] sm:$0xf] }
 0x11c   : > { %1902 = vst [vmem:[#allocation2 + $0x68] sm:$0xf] %v1870_v60  ;;  %v645_v1 = vmax.f32 %v578_v63, 0.0  ;;  %2928 = vmatmul.bf16.vlgmr.msrb.gmra.mxu0 %v4952_v57  ;;  %v689_v60 = vadd.s32 88, %v6177_v34  ;;  %v798_v63 = vand.u32 15, %v690_v54 }
 0x11e   : > { %v1174_v2 = vrot.slane %v645_v1, 7  ;;  %v1519_v3 = vpack.c.bf16 %v645_v1, %v645_v1  ;;  %v1591_v4 = vrot.slane %v645_v1, 1 }
 0x11f   : > { %v4701_v6 = vld [vmem:[#allocation2 + $0x6c] sm:$0xf0] }
 0x120   : > { %v1175_v8 = vsel %vm1158_vm0, %v1172_v51, %v1174_v2  ;;  %1551 = vst [vmem:[#allocation2 + $0x7c] sm:$0xf] %v1519_v3  ;;  %v1592_v9 = vsel %vm1575_vm2, %v1589_v53, %v1591_v4  ;;  %v6247_v10 = vor.u32 %v5419_v5, %v4701_v6  ;;  %v791_v3 = vand.u32 15, %v689_v60 }
 0x121   : > { %v1423_v11 = vsel %vm1295_vm9, %v1175_v8, 0.0  ;;  %v1839_v12 = vsel %vm1711_vm10, %v1592_v9, 0.0  ;;  %v579_v13 = vpop.f32.mrf.mxu0 }
 0x122   : > { %v1455_v15 = vpack.c.bf16 %v1423_v11, %v1423_v11  ;;  %v1871_v16 = vpack.c.bf16 %v1839_v12, %v1839_v12  ;;  %v580_v17 = vadd.f32 %v6182_v35, %v579_v13  ;;  %2605 = vmatmul.bf16.gmra.mxu2 %v6247_v10  ;;  %v5420_v20 = vld [vmem:[#allocation2 + $0x68] sm:$0xf0]  ;;  %v4641_v11 = vadd.s32 4294967295, %v798_v63 }
 0x123   : > { %v6253_v22 = vor.u32 %v5420_v20, %v4699_v19  ;;  %v1683_v13 = vadd.s32 1, %v791_v3 }
 0x124   : > { %1487 = vst [vmem:[#allocation2 + $0x78] sm:$0xf] %v1455_v15  ;;  %v646_v23 = vmax.f32 %v580_v17, 0.0  ;;  %vm1299_vm13 = vcmp.ge.s32.totalorder %v4641_v11, 0 }
 0x125   : > { %1903 = vst [vmem:[#allocation2 + $0x74] sm:$0xf] %v1871_v16  ;;  %2516 = vmatmul.bf16.gmra.mxu1 %v6253_v22  ;;  %vm1715_vm14 = vcmp.lt.s32.totalorder %v1683_v13, 16 }
 0x126   : > { %v1176_v25 = vrot.slane %v646_v23, 7  ;;  %v1520_v26 = vpack.c.bf16 %v646_v23, %v646_v23  ;;  %v1593_v27 = vrot.slane %v646_v23, 1 }
 0x127   : > { %v5422_v45 = vld [vmem:[#allocation2 + $0x7c] sm:$0xf] }
 0x128   : > { %v1177_v29 = vsel %vm1158_vm0, %v1174_v2, %v1176_v25  ;;  %1552 = vst [vmem:[#allocation2 + $0x88] sm:$0xf] %v1520_v26  ;;  %v1594_v31 = vsel %vm1575_vm2, %v1591_v4, %v1593_v27 }
 0x129   : > { %v1456_v32 = vpack.c.bf16 %v1177_v29, %v1177_v29  ;;  %v1872_v36 = vpack.c.bf16 %v1594_v31, %v1594_v31  ;;  %v582_v37 = vpop.f32.mrf.mxu0 }
 0x12a   : > { %v583_v39 = vadd.f32 %v6182_v35, %v582_v37  ;;  %v691_v37 = vadd.s32 104, %v6177_v34 }
 0x12b   : > { %1488 = vst [vmem:[#allocation2 + $0x84] sm:$0xf] %v1456_v32  ;;  %v4711_v57 = vld [vmem:[#allocation2 + $0x78] sm:$0xf] }
 0x12c   : > { %1904 = vst [vmem:[#allocation2 + $0x80] sm:$0xf] %v1872_v36  ;;  %v647_v41 = vmax.f32 %v583_v39, 0.0  ;;  %2933 = vmatmul.bf16.gmra.mxu0 %v6208_v30 }
 0x12e   : > { %v1178_v42 = vrot.slane %v647_v41, 7  ;;  %v1521_v43 = vpack.c.bf16 %v647_v41, %v647_v41  ;;  %v1595_v44 = vrot.slane %v647_v41, 1 }
 0x12f   : > { %v4713_v47 = vld [vmem:[#allocation2 + $0x84] sm:$0xf0] }
 0x130   : > { %v1179_v48 = vsel %vm1158_vm0, %v1176_v25, %v1178_v42  ;;  %1553 = vst [vmem:[#allocation2 + $0x94] sm:$0xf] %v1521_v43  ;;  %v1596_v49 = vsel %vm1575_vm2, %v1593_v27, %v1595_v44  ;;  %v6262_v50 = vor.u32 %v5422_v45, %v4713_v47 }
 0x131   : > { %v1425_v51 = vsel %vm1297_vm11, %v1179_v48, 0.0  ;;  %v1841_v52 = vsel %vm1713_vm12, %v1596_v49, 0.0  ;;  %v584_v53 = vpop.f32.mrf.mxu0 }
 0x132   : > { %v1457_v30 = vpack.c.bf16 %v1425_v51, %v1425_v51  ;;  %v1873_v55 = vpack.c.bf16 %v1841_v52, %v1841_v52  ;;  %v585_v56 = vadd.f32 %v6182_v35, %v584_v53  ;;  %2610 = vmatmul.bf16.gmra.mxu2 %v6262_v50  ;;  %v5423_v58 = vld [vmem:[#allocation2 + $0x80] sm:$0xf0]  ;;  %v4643_v52 = vadd.s32 4294967295, %v812_v40 }
 0x133   : > { %v6268_v61 = vor.u32 %v5423_v58, %v4711_v57  ;;  %v695_v40 = vadd.s32 136, %v6177_v34 }
 0x134   : > { %1489 = vst [vmem:[#allocation2 + $0x90] sm:$0xf] %v1457_v30  ;;  %v648_v62 = vmax.f32 %v585_v56, 0.0  ;;  %vm1301_vm15 = vcmp.ge.s32.totalorder %v4643_v52, 0 }
 0x135   : > { %1905 = vst [vmem:[#allocation2 + $0x8c] sm:$0xf] %v1873_v55  ;;  %2521 = vmatmul.bf16.gmra.mxu1 %v6268_v61 }
 0x136   : > { %v1180_v0 = vrot.slane %v648_v62, 7  ;;  %v1522_v1 = vpack.c.bf16 %v648_v62, %v648_v62  ;;  %v1597_v2 = vrot.slane %v648_v62, 1 }
 0x137   : > { %v5425_v19 = vld [vmem:[#allocation2 + $0x94] sm:$0xf] }
 0x138   : > { %v1181_v4 = vsel %vm1158_vm0, %v1178_v42, %v1180_v0  ;;  %1554 = vst [vmem:[#allocation2 + $0xa0] sm:$0xf] %v1522_v1  ;;  %v1598_v5 = vsel %vm1575_vm2, %v1595_v44, %v1597_v2  ;;  %v805_v44 = vand.u32 15, %v691_v37 }
 0x139   : > { %v1458_v6 = vpack.c.bf16 %v1181_v4, %v1181_v4  ;;  %v1874_v8 = vpack.c.bf16 %v1598_v5, %v1598_v5  ;;  %v587_v9 = vpop.f32.mrf.mxu0  ;;  %v693_v4 = vadd.s32 120, %v6177_v34 }
 0x13a   : > { %v588_v12 = vadd.f32 %v6182_v35, %v587_v9  ;;  %v1685_v54 = vadd.s32 1, %v805_v44 }
 0x13b   : > { %1490 = vst [vmem:[#allocation2 + $0x9c] sm:$0xf] %v1458_v6  ;;  %v4723_v32 = vld [vmem:[#allocation2 + $0x90] sm:$0xf] }
 0x13c   : > { %1906 = vst [vmem:[#allocation2 + $0x98] sm:$0xf] %v1874_v8  ;;  %v649_v14 = vmax.f32 %v588_v12, 0.0  ;;  %2938 = vmatmul.bf16.gmra.mxu0 %v6224_v7  ;;  %vm1717_vm1 = vcmp.lt.s32.totalorder %v1685_v54, 16 }
 0x13e   : > { %v1182_v15 = vrot.slane %v649_v14, 7  ;;  %v1523_v16 = vpack.c.bf16 %v649_v14, %v649_v14  ;;  %v1599_v17 = vrot.slane %v649_v14, 1  ;;  %v617_v14 = vpop.f32.mrf.mxu3 }
 0x13f   : > { %v4725_v20 = vld [vmem:[#allocation2 + $0x9c] sm:$0xf0]  ;;  %v618_v37 = vadd.f32 %v6182_v35, %v617_v14 }
 0x140   : > { %v1183_v21 = vsel %vm1158_vm0, %v1180_v0, %v1182_v15  ;;  %1555 = vst [vmem:[#allocation2 + $0xac] sm:$0xf] %v1523_v16  ;;  %v1600_v23 = vsel %vm1575_vm2, %v1597_v2, %v1599_v17  ;;  %v6277_v24 = vor.u32 %v5425_v19, %v4725_v20 }
 0x141   : > { %v1427_v25 = vsel %vm1299_vm13, %v1183_v21, 0.0  ;;  %v1843_v26 = vsel %vm1715_vm14, %v1600_v23, 0.0  ;;  %v589_v27 = vpop.f32.mrf.mxu0  ;;  %v6308_v44 = vmax.f32 %v618_v37, 0.0 }
 0x142   : > { %v1459_v7 = vpack.c.bf16 %v1427_v25, %v1427_v25  ;;  %v1875_v29 = vpack.c.bf16 %v1843_v26, %v1843_v26  ;;  %v590_v31 = vadd.f32 %v6182_v35, %v589_v27  ;;  %2615 = vmatmul.bf16.gmra.mxu2 %v6277_v24  ;;  %v5426_v36 = vld [vmem:[#allocation2 + $0x98] sm:$0xf0] }
 0x143   : > { %v6283_v38 = vor.u32 %v5426_v36, %v4723_v32  ;;  %v696_v36 = vadd.s32 144, %v6177_v34 }
 0x144   : > { %1491 = vst [vmem:[#allocation2 + $0xa8] sm:$0xf] %v1459_v7  ;;  %v650_v39 = vmax.f32 %v590_v31, 0.0 }
 0x145   : > { %1907 = vst [vmem:[#allocation2 + $0xa4] sm:$0xf] %v1875_v29  ;;  %2526 = vmatmul.bf16.gmra.mxu1 %v6283_v38 }
 0x146   : > { %v1184_v41 = vrot.slane %v650_v39, 7  ;;  %v1524_v42 = vpack.c.bf16 %v650_v39, %v650_v39  ;;  %v1601_v43 = vrot.slane %v650_v39, 1  ;;  %v619_v39 = vpop.f32.mrf.mxu3 }
 0x147   : > { %v5428_v58 = vld [vmem:[#allocation2 + $0xac] sm:$0xf] }
 0x148   : > { %v1185_v45 = vsel %vm1158_vm0, %v1182_v15, %v1184_v41  ;;  %1556 = vst [vmem:[#allocation2 + $0xb8] sm:$0xf] %v1524_v42  ;;  %v1602_v47 = vsel %vm1575_vm2, %v1599_v17, %v1601_v43  ;;  %v819_v15 = vand.u32 15, %v693_v4  ;;  %v5470_v17 = vld [vmem:[#allocation8 + $0x78] sm:$0xff] }
 0x149   : > { %v1460_v48 = vpack.c.bf16 %v1185_v45, %v1185_v45  ;;  %v1876_v49 = vpack.c.bf16 %v1602_v47, %v1602_v47  ;;  %v592_v51 = vpop.f32.mrf.mxu0  ;;  %3009 = vmatpush.bf16.msrb.mxu1 %v5470_v17 }
 0x14a   : > { %v593_v53 = vadd.f32 %v6182_v35, %v592_v51  ;;  %v1687_v29 = vadd.s32 1, %v819_v15  ;;  %v840_v51 = vand.u32 15, %v696_v36  ;;  %v703_v36 = vadd.s32 200, %v6177_v34 }
 0x14b   : > { %1492 = vst [vmem:[#allocation2 + $0xb4] sm:$0xf] %v1460_v48  ;;  %v4735_v9 = vld [vmem:[#allocation2 + $0xa8] sm:$0xf] }
 0x14c   : > { %1908 = vst [vmem:[#allocation2 + $0xb0] sm:$0xf] %v1876_v49  ;;  %v651_v30 = vmax.f32 %v593_v53, 0.0  ;;  %2943 = vmatmul.bf16.gmra.mxu0 %v6239_v46  ;;  %v694_v46 = vadd.s32 128, %v6177_v34  ;;  %vm1719_vm4 = vcmp.lt.s32.totalorder %v1687_v29, 16 }
 0x14e   : > { %v1186_v55 = vrot.slane %v651_v30, 7  ;;  %v1525_v56 = vpack.c.bf16 %v651_v30, %v651_v30  ;;  %v1603_v57 = vrot.slane %v651_v30, 1  ;;  %v826_v16 = vand.u32 15, %v694_v46  ;;  %v622_v4 = vpop.f32.mrf.mxu3 }
 0x14f   : > { %v4737_v60 = vld [vmem:[#allocation2 + $0xb4] sm:$0xf0]  ;;  %v833_v30 = vand.u32 15, %v695_v40 }
 0x150   : > { %v1187_v62 = vsel %vm1158_vm0, %v1184_v41, %v1186_v55  ;;  %1557 = vst [vmem:[#allocation2 + $0xc4] sm:$0xf] %v1525_v56  ;;  %v1604_v63 = vsel %vm1575_vm2, %v1601_v43, %v1603_v57  ;;  %v6292_v0 = vor.u32 %v5428_v58, %v4737_v60  ;;  %v4645_v7 = vadd.s32 4294967295, %v826_v16 }
 0x151   : > { %v1429_v1 = vsel %vm1301_vm15, %v1187_v62, 0.0  ;;  %v1845_v2 = vsel %vm1717_vm1, %v1604_v63, 0.0  ;;  %v594_v3 = vpop.f32.mrf.mxu0  ;;  %v1689_v46 = vadd.s32 1, %v833_v30 }
 0x152   : > { %v1461_v5 = vpack.c.bf16 %v1429_v1, %v1429_v1  ;;  %v1877_v6 = vpack.c.bf16 %v1845_v2, %v1845_v2  ;;  %v595_v8 = vadd.f32 %v6182_v35, %v594_v3  ;;  %2620 = vmatmul.bf16.gmra.mxu2 %v6292_v0  ;;  %v5429_v11 = vld [vmem:[#allocation2 + $0xb0] sm:$0xf0]  ;;  %vm1303_vm3 = vcmp.ge.s32.totalorder %v4645_v7, 0 }
 0x153   : > { %v6298_v12 = vor.u32 %v5429_v11, %v4735_v9  ;;  %v698_v1 = vadd.s32 160, %v6177_v34  ;;  %v6321_v3 = vadd.s32 4294967295, %v840_v51  ;;  %v6326_v11 = vadd.s32 152, %v6177_v34 }
 0x154   : > { %1493 = vst [vmem:[#allocation2 + $0xc0] sm:$0xf] %v1461_v5  ;;  %v652_v13 = vmax.f32 %v595_v8, 0.0  ;;  %v620_v5 = vadd.f32 %v6182_v35, %v619_v39  ;;  %vm1721_vm6 = vcmp.lt.s32.totalorder %v1689_v46, 16 }
 0x155   : > { %1909 = vst [vmem:[#allocation2 + $0xbc] sm:$0xf] %v1877_v6  ;;  %2531 = vmatmul.bf16.gmra.mxu1 %v6298_v12  ;;  %v854_v14 = vand.u32 15, %v698_v1  ;;  %vm1305_vm5 = vcmp.ge.s32.totalorder %v6321_v3, 0 }
 0x156   : > { %v1188_v19 = vrot.slane %v652_v13, 7  ;;  %v1526_v20 = vpack.c.bf16 %v652_v13, %v652_v13  ;;  %v1605_v21 = vrot.slane %v652_v13, 1  ;;  %v1206_v13 = vrot.slane %v6308_v44, 7 }
 0x157   : > { %v5431_v45 = vld [vmem:[#allocation2 + $0xc4] sm:$0xf]  ;;  %v6329_v15 = vmax.f32 %v620_v5, 0.0  ;;  %v6341_v29 = vadd.s32 4294967295, %v854_v14  ;;  %v699_v14 = vadd.s32 168, %v6177_v34 }
 0x158   : > { %v1189_v23 = vsel %vm1158_vm0, %v1186_v55, %v1188_v19  ;;  %1558 = vst [vmem:[#allocation2 + $0xd0] sm:$0xf] %v1526_v20  ;;  %v1606_v25 = vsel %vm1575_vm2, %v1603_v57, %v1605_v21  ;;  %v1535_v55 = vpack.c.bf16 %v6308_v44, %v6308_v44 }
 0x159   : > { %v1462_v26 = vpack.c.bf16 %v1189_v23, %v1189_v23  ;;  %v1878_v27 = vpack.c.bf16 %v1606_v25, %v1606_v25  ;;  %v597_v28 = vpop.f32.mrf.mxu0  ;;  %v1208_v25 = vrot.slane %v6329_v15, 7  ;;  %v1625_v7 = vrot.slane %v6329_v15, 1 }
 0x15a   : > { %v598_v31 = vadd.f32 %v6182_v35, %v597_v28  ;;  %1567 = vst [vmem:[#allocation2 + $0x13c] sm:$0xf] %v1535_v55  ;;  %v847_v28 = vand.u32 15, %v6326_v11  ;;  %vm1307_vm9 = vcmp.ge.s32.totalorder %v6341_v29, 0 }
 0x15b   : > { %1494 = vst [vmem:[#allocation2 + $0xcc] sm:$0xf] %v1462_v26  ;;  %v4747_v60 = vld [vmem:[#allocation2 + $0xc0] sm:$0xf]  ;;  %v1536_v26 = vpack.c.bf16 %v6329_v15, %v6329_v15 }
 0x15c   : > { %1910 = vst [vmem:[#allocation2 + $0xc8] sm:$0xf] %v1878_v27  ;;  %v653_v32 = vmax.f32 %v598_v31, 0.0  ;;  %2948 = vmatmul.bf16.gmra.mxu0 %v6253_v22  ;;  %v1209_v31 = vsel %vm1158_vm0, %v1206_v13, %v1208_v25 }
 0x15d   : > { %v1472_v39 = vpack.c.bf16 %v1209_v31, %v1209_v31  ;;  %1568 = vst [vmem:[#allocation2 + $0x148] sm:$0xf] %v1536_v26 }
 0x15e   : > { %v1190_v41 = vrot.slane %v653_v32, 7  ;;  %v1527_v42 = vpack.c.bf16 %v653_v32, %v653_v32  ;;  %v1607_v43 = vrot.slane %v653_v32, 1  ;;  %v623_v32 = vadd.f32 %v6182_v35, %v622_v4 }
 0x15f   : > { %v4749_v47 = vld [vmem:[#allocation2 + $0xcc] sm:$0xf0]  ;;  %1504 = vst [vmem:[#allocation2 + $0x144] sm:$0xf] %v1472_v39 }
 0x160   : > { %v1191_v48 = vsel %vm1158_vm0, %v1188_v19, %v1190_v41  ;;  %1559 = vst [vmem:[#allocation2 + $0xdc] sm:$0xf] %v1527_v42  ;;  %v1608_v22 = vsel %vm1575_vm2, %v1605_v21, %v1607_v43  ;;  %v6312_v49 = vor.u32 %v5431_v45, %v4749_v47  ;;  %v1623_v19 = vrot.slane %v6308_v44, 1  ;;  %v5469_v42 = vld [vmem:[#allocation8 + $0x70] sm:$0xff] }
 0x161   : > { %v1431_v52 = vsel %vm1303_vm3, %v1191_v48, 0.0  ;;  %v1847_v53 = vsel %vm1719_vm4, %v1608_v22, 0.0  ;;  %v599_v54 = vpop.f32.mrf.mxu0  ;;  %v6355_v48 = vmax.f32 %v623_v32, 0.0  ;;  %v889_v22 = vand.u32 15, %v703_v36  ;;  %3010 = vmatpush.bf16.msrb.mxu1 %v5469_v42 }
 0x162   : > { %v1463_v56 = vpack.c.bf16 %v1431_v52, %v1431_v52  ;;  %v1879_v57 = vpack.c.bf16 %v1847_v53, %v1847_v53  ;;  %v600_v58 = vadd.f32 %v6182_v35, %v599_v54  ;;  %2625 = vmatmul.bf16.gmra.mxu2 %v6312_v49  ;;  %v5432_v62 = vld [vmem:[#allocation2 + $0xc8] sm:$0xf0]  ;;  %v1626_v40 = vsel %vm1575_vm2, %v1623_v19, %v1625_v7 }
 0x163   : > { %v6318_v63 = vor.u32 %v5432_v62, %v4747_v60  ;;  %v1888_v47 = vpack.c.bf16 %v1626_v40, %v1626_v40  ;;  %v1210_v30 = vrot.slane %v6355_v48, 7  ;;  %v1537_v55 = vpack.c.bf16 %v6355_v48, %v6355_v48 }
 0x164   : > { %1495 = vst [vmem:[#allocation2 + $0xd8] sm:$0xf] %v1463_v56  ;;  %v654_v2 = vmax.f32 %v600_v58, 0.0  ;;  %v1627_v56 = vrot.slane %v6355_v48, 1  ;;  %v6390_v36 = vadd.s32 1, %v847_v28  ;;  %v702_v28 = vadd.s32 192, %v6177_v34 }
 0x165   : > { %1911 = vst [vmem:[#allocation2 + $0xd4] sm:$0xf] %v1879_v57  ;;  %2536 = vmatmul.bf16.gmra.mxu1 %v6318_v63 }
 0x166   : > { %v1192_v6 = vrot.slane %v654_v2, 7  ;;  %v1528_v8 = vpack.c.bf16 %v654_v2, %v654_v2  ;;  %v1609_v9 = vrot.slane %v654_v2, 1  ;;  %1920 = vst [vmem:[#allocation2 + $0x140] sm:$0xf] %v1888_v47  ;;  %vm1723_vm10 = vcmp.lt.s32.totalorder %v6390_v36, 16 }
 0x167   : > { %v5434_v45 = vld [vmem:[#allocation2 + $0xdc] sm:$0xf]  ;;  %1569 = vst [vmem:[#allocation2 + $0x154] sm:$0xf] %v1537_v55 }
 0x168   : > { %v1193_v16 = vsel %vm1158_vm0, %v1190_v41, %v1192_v6  ;;  %1560 = vst [vmem:[#allocation2 + $0xe8] sm:$0xf] %v1528_v8  ;;  %v1610_v17 = vsel %vm1575_vm2, %v1607_v43, %v1609_v9  ;;  %v704_v41 = vadd.s32 208, %v6177_v34  ;;  %v624_v43 = vpop.f32.mrf.mxu3  ;;  %v1211_v8 = vsel %vm1158_vm0, %v1208_v25, %v1210_v30  ;;  %v5478_v25 = vld [vmem:[#allocation8 + $0xb8] sm:$0xff] }
 0x169   : > { %v1464_v20 = vpack.c.bf16 %v1193_v16, %v1193_v16  ;;  %v1880_v21 = vpack.c.bf16 %v1610_v17, %v1610_v17  ;;  %v602_v23 = vpop.f32.mrf.mxu0  ;;  %v625_v57 = vadd.f32 %v6182_v35, %v624_v43  ;;  %3098 = vmatpush.bf16.msrb.mxu2 %v5478_v25  ;;  %v861_v43 = vand.u32 15, %v699_v14  ;;  %v5476_v14 = vld [vmem:[#allocation8 + $0xa8] sm:$0xff] }
 0x16a   : > { %v603_v27 = vadd.f32 %v6182_v35, %v602_v23  ;;  %v896_v53 = vand.u32 15, %v704_v41  ;;  %v700_v23 = vadd.s32 176, %v6177_v34 }
 0x16b   : > { %1496 = vst [vmem:[#allocation2 + $0xe4] sm:$0xf] %v1464_v20  ;;  %v6385_v31 = vmax.f32 %v625_v57, 0.0 }
 0x16c   : > { %1912 = vst [vmem:[#allocation2 + $0xe0] sm:$0xf] %v1880_v21  ;;  %v6348_v37 = vmax.f32 %v603_v27, 0.0  ;;  %2953 = vmatmul.bf16.gmra.mxu0 %v6268_v61  ;;  %v4655_v1 = vadd.s32 4294967295, %v896_v53  ;;  %v1697_v21 = vadd.s32 1, %v889_v22  ;;  %v5477_v53 = vld [vmem:[#allocation8 + $0xb0] sm:$0xff] }
 0x16d   : > { %v1212_v11 = vrot.slane %v6385_v31, 7  ;;  %3099 = vmatpush.bf16.msrb.mxu2 %v5477_v53 }
 0x16e   : > { %v1194_v51 = vrot.slane %v6348_v37, 7  ;;  %v1529_v61 = vpack.c.bf16 %v6348_v37, %v6348_v37  ;;  %v1611_v52 = vrot.slane %v6348_v37, 1  ;;  %vm1313_vm7 = vcmp.ge.s32.totalorder %v4655_v1, 0 }
 0x16f   : > { %v4761_v54 = vld [vmem:[#allocation2 + $0xe4] sm:$0xf0]  ;;  %v1441_v46 = vsel %vm1313_vm7, %v1211_v8, 0.0  ;;  %vm1729_vm8 = vcmp.lt.s32.totalorder %v1697_v21, 16  ;;  %v882_v8 = vand.u32 15, %v702_v28 }
 0x170   : > { %v1195_v58 = vsel %vm1158_vm0, %v1192_v6, %v1194_v51  ;;  %1561 = vst [vmem:[#allocation2 + $0xf4] sm:$0xf] %v1529_v61  ;;  %v1612_v60 = vsel %vm1575_vm2, %v1609_v9, %v1611_v52  ;;  %v6368_v62 = vor.u32 %v5434_v45, %v4761_v54  ;;  %v4759_v9 = vld [vmem:[#allocation2 + $0xd8] sm:$0xf]  ;;  %v1473_v27 = vpack.c.bf16 %v1441_v46, %v1441_v46  ;;  %v627_v37 = vpop.f32.mrf.mxu3 }
 0x171   : > { %v1433_v2 = vsel %vm1305_vm5, %v1195_v58, 0.0  ;;  %v1849_v4 = vsel %vm1721_vm6, %v1612_v60, 0.0  ;;  %v604_v5 = vpop.f32.mrf.mxu0  ;;  %v868_v61 = vand.u32 15, %v700_v23  ;;  %v1213_v58 = vsel %vm1158_vm0, %v1210_v30, %v1212_v11  ;;  %3100 = vmatpush.bf16.msrb.mxu2 %v5476_v14 }
 0x172   : > { %v1465_v15 = vpack.c.bf16 %v1433_v2, %v1433_v2  ;;  %v1881_v16 = vpack.c.bf16 %v1849_v4, %v1849_v4  ;;  %v605_v6 = vadd.f32 %v6182_v35, %v604_v5  ;;  %v2502_v17 = vpop.f32.mrf.mxu1  ;;  %2630 = vmatmul.bf16.gmra.mxu2 %v6368_v62  ;;  %v5435_v20 = vld [vmem:[#allocation2 + $0xe0] sm:$0xf0]  ;;  %v1628_v35 = vsel %vm1575_vm2, %v1625_v7, %v1627_v56 }
 0x173   : > { %v6377_v3 = vor.u32 %v5435_v20, %v4759_v9  ;;  %1505 = vst [vmem:[#allocation2 + $0x150] sm:$0xf] %v1473_v27  ;;  %v1857_v42 = vsel %vm1729_vm8, %v1628_v35, 0.0  ;;  %v6407_v60 = vadd.s32 184, %v6177_v34  ;;  %v1474_v2 = vpack.c.bf16 %v1213_v58, %v1213_v58  ;;  %v5468_v35 = vld [vmem:[#allocation8 + $0x68] sm:$0xff] }
 0x174   : > { %1497 = vst [vmem:[#allocation2 + $0xf0] sm:$0xf] %v1465_v15  ;;  %v6380_v26 = vmax.f32 %v605_v6, 0.0  ;;  %v1889_v22 = vpack.c.bf16 %v1857_v42, %v1857_v42  ;;  %v1538_v4 = vpack.c.bf16 %v6385_v31, %v6385_v31  ;;  %v1629_v5 = vrot.slane %v6385_v31, 1  ;;  %v5475_v42 = vld [vmem:[#allocation8 + $0xa0] sm:$0xff]  ;;  %3011 = vmatpush.bf16.msrb.mxu1 %v5468_v35  ;;  %v5466_v31 = vld [vmem:[#allocation8 + $0x58] sm:$0xff] }
 0x175   : > { %1913 = vst [vmem:[#allocation2 + $0xec] sm:$0xf] %v1881_v16  ;;  %2541 = vmatmul.bf16.gmra.mxu1 %v6377_v3  ;;  %v2591_v32 = vpop.f32.mrf.mxu2  ;;  %v6419_v30 = vadd.s32 1, %v861_v43  ;;  %v6424_v16 = vadd.s32 4294967295, %v868_v61  ;;  %v875_v21 = vand.u32 15, %v6407_v60  ;;  %v705_v23 = vadd.s32 216, %v6177_v34  ;;  %3101 = vmatpush.bf16.msrb.mxu2 %v5475_v42 }
 0x176   : > { %v1196_v39 = vrot.slane %v6380_v26, 7  ;;  %v1530_v40 = vpack.c.bf16 %v6380_v26, %v6380_v26  ;;  %v1613_v7 = vrot.slane %v6380_v26, 1  ;;  %v6396_v41 = vadd.f32 %v2591_v32, %v2502_v17  ;;  %1921 = vst [vmem:[#allocation2 + $0x14c] sm:$0xf] %v1889_v22 }
 0x177   : > { %v1630_v6 = vsel %vm1575_vm2, %v1627_v56, %v1629_v5  ;;  %v5437_v20 = vld [vmem:[#allocation2 + $0xf4] sm:$0xf]  ;;  %1506 = vst [vmem:[#allocation2 + $0x15c] sm:$0xf] %v1474_v2  ;;  %v708_v35 = vadd.s32 240, %v6177_v34  ;;  %vm1725_vm12 = vcmp.lt.s32.totalorder %v6419_v30, 16 }
 0x178   : > { %v1197_v45 = vsel %vm1158_vm0, %v1194_v51, %v1196_v39  ;;  %1562 = vst [vmem:[#allocation2 + $0x100] sm:$0xf] %v1530_v40  ;;  %v1614_v47 = vsel %vm1575_vm2, %v1611_v52, %v1613_v7  ;;  %v6412_v51 = vld [vmem:[%s7437_s2] ss:$0 sm:$0xff]  ;;  %v1890_v46 = vpack.c.bf16 %v1630_v6, %v1630_v6  ;;  %v629_v25 = vpop.f32.mrf.mxu3  ;;  %v5474_v6 = vld [vmem:[#allocation8 + $0x98] sm:$0xff]  ;;  %vm1309_vm14 = vcmp.ge.s32.totalorder %v6424_v16, 0 }
 0x179   : > { %v1466_v54 = vpack.c.bf16 %v1197_v45, %v1197_v45  ;;  %v1882_v55 = vpack.c.bf16 %v1614_v47, %v1614_v47  ;;  %v607_v57 = vpop.f32.mrf.mxu0  ;;  %v628_v17 = vadd.f32 %v6412_v51, %v627_v37  ;;  %1570 = vst [vmem:[#allocation2 + $0x160] sm:$0xf] %v1538_v4  ;;  %v6441_v37 = vadd.s32 4294967295, %v882_v8  ;;  %v5467_v4 = vld [vmem:[#allocation8 + $0x60] sm:$0xff]  ;;  %3102 = vmatpush.bf16.msrb.mxu2 %v5474_v6  ;;  %v5472_v6 = vld [vmem:[#allocation8 + $0x88] sm:$0xff] }
 0x17a   : > { %v608_v52 = vadd.f32 %v6412_v51, %v607_v57  ;;  %v2504_v1 = vpop.f32.mrf.mxu1  ;;  %1922 = vst [vmem:[#allocation2 + $0x158] sm:$0xf] %v1890_v46  ;;  %v630_v40 = vadd.f32 %v6412_v51, %v629_v25  ;;  %3012 = vmatpush.bf16.msrb.mxu1 %v5467_v4  ;;  %v5465_v4 = vld [vmem:[#allocation8 + $0x50] sm:$0xff]  ;;  %v5463_v30 = vld [vmem:[#allocation8 + $0x40] sm:$0xff] }
 0x17b   : > { %1498 = vst [vmem:[#allocation2 + $0xfc] sm:$0xf] %v1466_v54  ;;  %v6452_v47 = vmax.f32 %v628_v17, 0.0  ;;  %v903_v54 = vand.u32 15, %v705_v23  ;;  %vm1311_vm15 = vcmp.ge.s32.totalorder %v6441_v37, 0 }
 0x17c   : > { %1914 = vst [vmem:[#allocation2 + $0xf8] sm:$0xf] %v1882_v55  ;;  %v6421_v15 = vmax.f32 %v608_v52, 0.0  ;;  %2958 = vmatmul.bf16.gmra.mxu0 %v6283_v38  ;;  %v706_v38 = vadd.s32 224, %v6177_v34  ;;  %v6471_v46 = vmax.f32 %v630_v40, 0.0 }
 0x17d   : > { %v2593_v9 = vpop.f32.mrf.mxu2  ;;  %v1214_v2 = vrot.slane %v6452_v47, 7  ;;  %v1539_v36 = vpack.c.bf16 %v6452_v47, %v6452_v47  ;;  %v1631_v14 = vrot.slane %v6452_v47, 1  ;;  %v5473_v47 = vld [vmem:[#allocation8 + $0x90] sm:$0xff] }
 0x17e   : > { %v1198_v26 = vrot.slane %v6421_v15, 7  ;;  %v1531_v48 = vpack.c.bf16 %v6421_v15, %v6421_v15  ;;  %v1615_v56 = vrot.slane %v6421_v15, 1  ;;  %v6439_v27 = vadd.f32 %v2593_v9, %v2504_v1  ;;  %3013 = vmatpush.bf16.msrb.mxu1 %v5466_v31  ;;  %3103 = vmatpush.bf16.msrb.mxu2 %v5473_v47  ;;  %v5471_v47 = vld [vmem:[#allocation8 + $0x80] sm:$0xff] }
 0x17f   : > { %v4773_v32 = vld [vmem:[#allocation2 + $0xfc] sm:$0xf0]  ;;  %v910_v55 = vand.u32 15, %v706_v38  ;;  %v1215_v9 = vsel %vm1158_vm0, %v1212_v11, %v1214_v2  ;;  %v1632_v38 = vsel %vm1575_vm2, %v1629_v5, %v1631_v14  ;;  %1571 = vst [vmem:[#allocation2 + $0x16c] sm:$0xf] %v1539_v36  ;;  %v1216_v5 = vrot.slane %v6471_v46, 7 }
 0x180   : > { %v1199_v43 = vsel %vm1158_vm0, %v1196_v39, %v1198_v26  ;;  %1563 = vst [vmem:[#allocation2 + $0x10c] sm:$0xf] %v1531_v48  ;;  %v1616_v28 = vsel %vm1575_vm2, %v1613_v7, %v1615_v56  ;;  %v6450_v45 = vor.u32 %v5437_v20, %v4773_v32  ;;  %v4771_v7 = vld [vmem:[#allocation2 + $0xf0] sm:$0xf]  ;;  %v1699_v20 = vadd.s32 1, %v903_v54  ;;  %v632_v25 = vpop.f32.mrf.mxu3 }
 0x181   : > { %v1435_v22 = vsel %vm1307_vm9, %v1199_v43, 0.0  ;;  %v1851_v61 = vsel %vm1723_vm10, %v1616_v28, 0.0  ;;  %v609_v53 = vpop.f32.mrf.mxu0  ;;  %v4657_v8 = vadd.s32 4294967295, %v910_v55  ;;  %v707_v48 = vadd.s32 232, %v6177_v34 }
 0x182   : > { %v1467_v39 = vpack.c.bf16 %v1435_v22, %v1435_v22  ;;  %v1883_v57 = vpack.c.bf16 %v1851_v61, %v1851_v61  ;;  %v610_v58 = vadd.f32 %v6412_v51, %v609_v53  ;;  %v2507_v52 = vpop.f32.mrf.mxu1  ;;  %2635 = vmatmul.bf16.gmra.mxu2 %v6450_v45  ;;  %v5438_v1 = vld [vmem:[#allocation2 + $0xf8] sm:$0xf0]  ;;  %vm1731_vm13 = vcmp.lt.s32.totalorder %v1699_v20, 16  ;;  %3014 = vmatpush.bf16.msrb.mxu1 %v5465_v4 }
 0x183   : > { %v6461_v29 = vor.u32 %v5438_v1, %v4771_v7  ;;  %vm1315_vm11 = vcmp.ge.s32.totalorder %v4657_v8, 0  ;;  %v1540_v28 = vpack.c.bf16 %v6471_v46, %v6471_v46  ;;  %v1859_v54 = vsel %vm1731_vm13, %v1632_v38, 0.0  ;;  %3104 = vmatpush.bf16.msrb.mxu2 %v5472_v6 }
 0x184   : > { %1499 = vst [vmem:[#allocation2 + $0x108] sm:$0xf] %v1467_v39  ;;  %v6466_v17 = vmax.f32 %v610_v58, 0.0  ;;  %v1443_v43 = vsel %vm1315_vm11, %v1215_v9, 0.0  ;;  %v1891_v58 = vpack.c.bf16 %v1859_v54, %v1859_v54  ;;  %v1633_v15 = vrot.slane %v6471_v46, 1 }
 0x185   : > { %1915 = vst [vmem:[#allocation2 + $0x104] sm:$0xf] %v1883_v57  ;;  %2546 = vmatmul.bf16.gmra.mxu1 %v6461_v29  ;;  %v2596_v23 = vpop.f32.mrf.mxu2  ;;  %v1475_v53 = vpack.c.bf16 %v1443_v43, %v1443_v43  ;;  %v917_v8 = vand.u32 15, %v707_v48  ;;  %v924_v36 = vand.u32 15, %v708_v35  ;;  %v6511_v9 = vadd.s32 1, %v875_v21 }
 0x186   : > { %v1200_v11 = vrot.slane %v6466_v17, 7  ;;  %v1532_v32 = vpack.c.bf16 %v6466_v17, %v6466_v17  ;;  %v1617_v40 = vrot.slane %v6466_v17, 1  ;;  %v6483_v42 = vadd.f32 %v2596_v23, %v2507_v52  ;;  %1572 = vst [vmem:[#allocation2 + $0x178] sm:$0xf] %v1540_v28  ;;  %v5464_v28 = vld [vmem:[#allocation8 + $0x48] sm:$0xff] }
 0x187   : > { %v1217_v52 = vsel %vm1158_vm0, %v1214_v2, %v1216_v5  ;;  %1507 = vst [vmem:[#allocation2 + $0x168] sm:$0xf] %v1475_v53  ;;  %v1634_v20 = vsel %vm1575_vm2, %v1631_v14, %v1633_v15  ;;  %v4659_v35 = vadd.s32 4294967295, %v924_v36  ;;  %3015 = vmatpush.bf16.msrb.mxu1 %v5464_v28  ;;  %3105 = vmatpush.bf16.msrb.mxu2 %v5471_v47  ;;  %vm1727_vm4 = vcmp.lt.s32.totalorder %v6511_v9, 16 }
 0x188   : > { %v1201_v22 = vsel %vm1158_vm0, %v1198_v26, %v1200_v11  ;;  %1564 = vst [vmem:[#allocation2 + $0x118] sm:$0xf] %v1532_v32  ;;  %v1618_v61 = vsel %vm1575_vm2, %v1615_v56, %v1617_v40  ;;  %v1476_v1 = vpack.c.bf16 %v1217_v52, %v1217_v52  ;;  %v633_v56 = vadd.f32 %v6412_v51, %v632_v25  ;;  %v5440_v25 = vld [vmem:[#allocation2 + $0x10c] sm:$0xf]  ;;  %v634_v31 = vpop.f32.mrf.mxu3 }
 0x189   : > { %v1468_v55 = vpack.c.bf16 %v1201_v22, %v1201_v22  ;;  %v1884_v39 = vpack.c.bf16 %v1618_v61, %v1618_v61  ;;  %v612_v57 = vpop.f32.mrf.mxu0  ;;  %1923 = vst [vmem:[#allocation2 + $0x164] sm:$0xf] %v1891_v58  ;;  %v1892_v48 = vpack.c.bf16 %v1634_v20, %v1634_v20  ;;  %v1701_v32 = vadd.s32 1, %v917_v8 }
 0x18a   : > { %v613_v26 = vadd.f32 %v6412_v51, %v612_v57  ;;  %v2509_v7 = vpop.f32.mrf.mxu1  ;;  %v6516_v23 = vmax.f32 %v633_v56, 0.0  ;;  %1508 = vst [vmem:[#allocation2 + $0x174] sm:$0xf] %v1476_v1  ;;  %vm1317_vm1 = vcmp.ge.s32.totalorder %v4659_v35, 0  ;;  %v635_v53 = vadd.f32 %v6412_v51, %v634_v31 }
 0x18b   : > { %1500 = vst [vmem:[#allocation2 + $0x114] sm:$0xf] %v1468_v55  ;;  %vm1733_vm3 = vcmp.lt.s32.totalorder %v1701_v32, 16  ;;  %v4783_v56 = vld [vmem:[#allocation2 + $0x108] sm:$0xf]  ;;  %3016 = vmatpush.bf16.msrb.mxu1 %v5463_v30 }
 0x18c   : > { %1916 = vst [vmem:[#allocation2 + $0x110] sm:$0xf] %v1884_v39  ;;  %v6506_v2 = vmax.f32 %v613_v26, 0.0  ;;  %2963 = vmatmul.bf16.gmra.mxu0 %v6298_v12  ;;  %v6519_v12 = vadd.s32 248, %v6177_v34  ;;  %v1218_v61 = vrot.slane %v6516_v23, 7  ;;  %v1541_v34 = vpack.c.bf16 %v6516_v23, %v6516_v23 }
 0x18d   : > { %v2598_v38 = vpop.f32.mrf.mxu2  ;;  %1924 = vst [vmem:[#allocation2 + $0x170] sm:$0xf] %v1892_v48  ;;  %v1635_v57 = vrot.slane %v6516_v23, 1  ;;  %v668_v6 = vmax.f32 %v635_v53, 0.0 }
 0x18e   : > { %v1202_v60 = vrot.slane %v6506_v2, 7  ;;  %v1533_v21 = vpack.c.bf16 %v6506_v2, %v6506_v2  ;;  %v1619_v14 = vrot.slane %v6506_v2, 1  ;;  %v6525_v43 = vadd.f32 %v2598_v38, %v2509_v7  ;;  %1573 = vst [vmem:[#allocation2 + $0x184] sm:$0xf] %v1541_v34 }
 0x18f   : > { %v4785_v22 = vld [vmem:[#allocation2 + $0x114] sm:$0xf0]  ;;  %v931_v23 = vand.u32 15, %v6519_v12  ;;  %v1220_v48 = vrot.slane %v668_v6, 7  ;;  %v1542_v46 = vpack.c.bf16 %v668_v6, %v668_v6  ;;  %v1637_v35 = vrot.slane %v668_v6, 1 }
 0x190   : > { %v1203_v54 = vsel %vm1158_vm0, %v1200_v11, %v1202_v60  ;;  %1565 = vst [vmem:[#allocation2 + $0x124] sm:$0xf] %v1533_v21  ;;  %v1620_v55 = vsel %vm1575_vm2, %v1617_v40, %v1619_v14  ;;  %v6542_v39 = vor.u32 %v5440_v25, %v4785_v22  ;;  %v1219_v11 = vsel %vm1158_vm0, %v1216_v5, %v1218_v61 }
 0x191   : > { %v1437_v58 = vsel %vm1309_vm14, %v1203_v54, 0.0  ;;  %v1853_v52 = vsel %vm1725_vm12, %v1620_v55, 0.0  ;;  %v614_v26 = vpop.f32.mrf.mxu0  ;;  %v1445_v4 = vsel %vm1317_vm1, %v1219_v11, 0.0  ;;  %v1636_v5 = vsel %vm1575_vm2, %v1633_v15, %v1635_v57  ;;  %1574 = vst [vmem:[#allocation2 + $0x190] sm:$0xf] %v1542_v46 }
 0x192   : > { %v1469_v17 = vpack.c.bf16 %v1437_v58, %v1437_v58  ;;  %v1885_v40 = vpack.c.bf16 %v1853_v52, %v1853_v52  ;;  %v615_v7 = vadd.f32 %v6412_v51, %v614_v26  ;;  %v2512_v1 = vpop.f32.mrf.mxu1  ;;  %2640 = vmatmul.bf16.gmra.mxu2 %v6542_v39  ;;  %v5441_v16 = vld [vmem:[#allocation2 + $0x110] sm:$0xf0]  ;;  %v1477_v36 = vpack.c.bf16 %v1445_v4, %v1445_v4 }
 0x193   : > { %v6555_v8 = vor.u32 %v5441_v16, %v4783_v56  ;;  %v1861_v51 = vsel %vm1733_vm3, %v1636_v5, 0.0  ;;  %v1221_v32 = vsel %vm1158_vm0, %v1218_v61, %v1220_v48  ;;  %v1638_v12 = vsel %vm1575_vm2, %v1635_v57, %v1637_v35 }
 0x194   : > { %1501 = vst [vmem:[#allocation2 + $0x120] sm:$0xf] %v1469_v17  ;;  %v660_v20 = vmax.f32 %v615_v7, 0.0  ;;  %v1893_v25 = vpack.c.bf16 %v1861_v51, %v1861_v51  ;;  %v1671_v47 = vsel %vm1575_vm2, %v1637_v35, 0.0  ;;  %v1703_v22 = vadd.s32 1, %v931_v23 }
 0x195   : > { %1917 = vst [vmem:[#allocation2 + $0x11c] sm:$0xf] %v1885_v40  ;;  %2551 = vmatmul.bf16.gmra.mxu1 %v6555_v8  ;;  %v2601_v38 = vpop.f32.mrf.mxu2 }
 0x196   : > { %v1204_v15 = vrot.slane %v660_v20, 7  ;;  %v1534_v31 = vpack.c.bf16 %v660_v20, %v660_v20  ;;  %v1621_v21 = vrot.slane %v660_v20, 1  ;;  %v6564_v28 = vadd.f32 %v2601_v38, %v2512_v1  ;;  %1509 = vst [vmem:[#allocation2 + $0x180] sm:$0xf] %v1477_v36  ;;  %v5447_v36 = vld [vmem:[#allocation2 + $0x140] sm:$0xf0] }
 0x197   : > { %1925 = vst [vmem:[#allocation2 + $0x17c] sm:$0xf] %v1893_v25  ;;  %v5443_v17 = vld [vmem:[#allocation2 + $0x124] sm:$0xf]  ;;  %v4959_v38 = vld [vmem:[#allocation2 + $0x8] sm:$0xf] }
 0x198   : > { %v1205_v34 = vsel %vm1158_vm0, %v1202_v60, %v1204_v15  ;;  %v1207_v53 = vsel %vm1158_vm0, %v1204_v15, %v1206_v13  ;;  %1566 = vst [vmem:[#allocation2 + $0x130] sm:$0xf] %v1534_v31  ;;  %v1622_v54 = vsel %vm1575_vm2, %v1619_v14, %v1621_v21  ;;  %v1624_v61 = vsel %vm1575_vm2, %v1621_v21, %v1623_v19  ;;  %v5409_v25 = vld [vmem:[#allocation2 + $0x10] sm:$0xf0]  ;;  %v5407_v15 = vld [vmem:[#allocation2 + $0x4] sm:$0xf] }
 0x199   : > { %v1439_v55 = vsel %vm1311_vm15, %v1207_v53, 0.0  ;;  %v1470_v57 = vpack.c.bf16 %v1205_v34, %v1205_v34  ;;  %v1855_v60 = vsel %vm1727_vm4, %v1624_v61, 0.0  ;;  %v1886_v58 = vpack.c.bf16 %v1622_v54, %v1622_v54  ;;  %v6585_v52 = vpop.f32.mrf.mxu0  ;;  %v4953_v31 = vld [vmem:[#allocation2 + $0xc] sm:$0xf0] }
 0x19a   : > { %v1471_v13 = vpack.c.bf16 %v1439_v55, %v1439_v55  ;;  %v1887_v26 = vpack.c.bf16 %v1855_v60, %v1855_v60  ;;  %v2514_v2 = vpop.f32.mrf.mxu1  ;;  %vm1735_vm0 = vcmp.lt.s32.totalorder %v1703_v22, 16  ;;  %v1478_v14 = vpack.c.bf16 %v1221_v32, %v1221_v32 }
 0x19b   : > { %1502 = vst [vmem:[#allocation2 + $0x12c] sm:$0xf] %v1470_v57  ;;  %v1863_v44 = vsel %vm1735_vm0, %v1671_v47, 0.0  ;;  %v1894_v19 = vpack.c.bf16 %v1638_v12, %v1638_v12  ;;  %v4960_v35 = vor.u32 %v5409_v25, %v4959_v38  ;;  %v4956_v32 = vor.u32 %v5407_v15, %v4953_v31  ;;  %v4819_v12 = vld [vmem:[#allocation2 + $0x150] sm:$0xf]  ;;  %v5503_v15 = vld [vmem:[#allocation8 + $0x168] sm:$0xff] }
 0x19c   : > { %1503 = vst [vmem:[#allocation2 + $0x138] sm:$0xf] %v1471_v13  ;;  %2968 = vmatmul.bf16.gmra.mxu0 %v6318_v63  ;;  %v1895_v11 = vpack.c.bf16 %v1863_v44, %v1863_v44  ;;  %v4795_v63 = vld [vmem:[#allocation2 + $0x120] sm:$0xf]  ;;  %v5450_v47 = vld [vmem:[#allocation2 + $0x158] sm:$0xf0] }
 0x19d   : > { %1918 = vst [vmem:[#allocation2 + $0x128] sm:$0xf] %v1886_v58  ;;  %v2603_v37 = vpop.f32.mrf.mxu2  ;;  %v6610_v34 = vor.u32 %v5450_v47, %v4819_v12  ;;  %v5412_v57 = vld [vmem:[#allocation2 + $0x28] sm:$0xf0]  ;;  %v4671_v58 = vld [vmem:[#allocation2 + $0x20] sm:$0xf] }
 0x19e   : > { %1919 = vst [vmem:[#allocation2 + $0x134] sm:$0xf] %v1887_v26  ;;  %v6588_v9 = vadd.f32 %v2603_v37, %v2514_v2  ;;  %v6620_v13 = vor.u32 %v5412_v57, %v4671_v58  ;;  %v4831_v2 = vld [vmem:[#allocation2 + $0x168] sm:$0xf]  ;;  %v5418_v47 = vld [vmem:[#allocation2 + $0x58] sm:$0xf0] }
 0x19f   : > { %v4797_v40 = vld [vmem:[#allocation2 + $0x12c] sm:$0xf0]  ;;  %1510 = vst [vmem:[#allocation2 + $0x18c] sm:$0xf] %v1478_v14  ;;  %v5453_v14 = vld [vmem:[#allocation2 + $0x170] sm:$0xf0] }
 0x1a0   : > { %v6590_v7 = vor.u32 %v5443_v17, %v4797_v40  ;;  %1926 = vst [vmem:[#allocation2 + $0x188] sm:$0xf] %v1894_v19  ;;  %v6625_v19 = vor.u32 %v5453_v14, %v4831_v2  ;;  %v4809_v58 = vld [vmem:[#allocation2 + $0x144] sm:$0xf0]  ;;  %v5568_v2 = vld [vmem:[#allocation8 + $0x1f0] sm:$0xff] }
 0x1a1   : > { %v6592_v1 = vpop.f32.mrf.mxu0  ;;  %1927 = vst [vmem:[#allocation2 + $0x194] sm:$0xf] %v1895_v11  ;;  %v5505_v11 = vld [vmem:[#allocation8 + $0x178] sm:$0xff] }
 0x1a2   : > { %v2517_v56 = vpop.f32.mrf.mxu1  ;;  %2645 = vmatmul.bf16.gmra.mxu2 %v6590_v7  ;;  %v5444_v16 = vld [vmem:[#allocation2 + $0x128] sm:$0xf0] }
 0x1a3   : > { %v6595_v4 = vor.u32 %v5444_v16, %v4795_v63  ;;  %v4807_v30 = vld [vmem:[#allocation2 + $0x138] sm:$0xf]  ;;  %v5415_v63 = vld [vmem:[#allocation2 + $0x40] sm:$0xf0] }
 0x1a4   : > { %v6597_v5 = vor.u32 %v5447_v36, %v4807_v30  ;;  %v5504_v30 = vld [vmem:[#allocation8 + $0x170] sm:$0xff]  ;;  %v4683_v36 = vld [vmem:[#allocation2 + $0x38] sm:$0xf] }
 0x1a5   : > { %2556 = vmatmul.bf16.gmra.mxu1 %v6595_v4  ;;  %v2606_v6 = vpop.f32.mrf.mxu2 }
 0x1a6   : > { %v6600_v20 = vadd.f32 %v2606_v6, %v2517_v56  ;;  %2561 = vmatmul.bf16.vlgmr.msrb.gmra.mxu3 %v6597_v5  ;;  %v6636_v6 = vor.u32 %v5415_v63, %v4683_v36  ;;  %v5480_v38 = vld [vmem:[#allocation2 + $0x188] sm:$0xf0]  ;;  %v5566_v63 = vld [vmem:[#allocation8 + $0x1e0] sm:$0xff] }
 0x1a7   : > { %2671 = vmatpush.bf16.msrb.mxu3 %v5505_v11  ;;  %v5567_v11 = vld [vmem:[#allocation8 + $0x1e8] sm:$0xff] }
 0x1a9   : > { %v6603_v51 = vpop.f32.mrf.mxu0 }
 0x1aa   : > { %v2519_v23 = vpop.f32.mrf.mxu1 }
 0x1ab   : > { %2672 = vmatpush.bf16.msrb.mxu3 %v5504_v30 }
 0x1ac   : > { %2973 = vmatmul.bf16.gmra.mxu0 %v6377_v3 }
 0x1ad   : > { %v2608_v48 = vpop.f32.mrf.mxu2 }
 0x1ae   : > { %v6606_v46 = vadd.f32 %v2608_v48, %v2519_v23  ;;  %v4843_v23 = vld [vmem:[#allocation2 + $0x180] sm:$0xf] }
 0x1af   : > { %v4844_v48 = vor.u32 %v5480_v38, %v4843_v23  ;;  %2673 = vmatpush.bf16.msrb.mxu3 %v5503_v15  ;;  %v5421_v23 = vld [vmem:[#allocation2 + $0x70] sm:$0xf0]  ;;  %v5565_v38 = vld [vmem:[#allocation8 + $0x1d8] sm:$0xff] }
 0x1b1   : > { %v6608_v21 = vpop.f32.mrf.mxu0 }
 0x1b2   : > { %7455 = vst [vmem:[#allocation16_spill] sm:$0xff] %v6608_v21  ;;  %v2522_v22 = vpop.f32.mrf.mxu1  ;;  %3106 = vmatmul.bf16.vlgmr.msrb.gmra.mxu2 %v4960_v35 }
 0x1b5   : > { %v2611_v53 = vpop.f32.mrf.mxu2  ;;  %3017 = vmatmul.bf16.vlgmr.msrb.gmra.mxu1 %v4956_v32 }
 0x1b6   : > { %v6612_v54 = vadd.f32 %v2611_v53, %v2522_v22  ;;  %2566 = vmatmul.bf16.gmra.mxu3 %v6610_v34  ;;  %v5569_v22 = vld [vmem:[#allocation8 + $0x1f8] sm:$0xff] }
 0x1b7   : > { %3789 = vmatpush.bf16.msra.mxu0 %v5569_v22 }
 0x1b9   : > { %v6615_v3 = vpop.f32.mrf.mxu0 }
 0x1ba   : > { %7456 = vst [vmem:[#allocation17_spill] sm:$0xff] %v6615_v3  ;;  %v2524_v61 = vpop.f32.mrf.mxu1  ;;  %v5574_v3 = vld [vmem:[#allocation8 + $0x220] sm:$0xff] }
 0x1bb   : > { %3790 = vmatpush.bf16.msra.mxu0 %v5568_v2 }
 0x1bc   : > { %2978 = vmatmul.bf16.gmra.mxu0 %v6461_v29 }
 0x1bd   : > { %v2613_v55 = vpop.f32.mrf.mxu2 }
 0x1be   : > { %v6618_v60 = vadd.f32 %v2613_v55, %v2524_v61  ;;  %v5502_v61 = vld [vmem:[#allocation8 + $0x160] sm:$0xff] }
 0x1bf   : > { %v4695_v55 = vld [vmem:[#allocation2 + $0x50] sm:$0xf]  ;;  %2674 = vmatpush.bf16.msrb.mxu3 %v5502_v61  ;;  %3791 = vmatpush.bf16.msra.mxu0 %v5567_v11 }
 0x1c0   : > { %v6649_v57 = vor.u32 %v5418_v47, %v4695_v55  ;;  %v5564_v47 = vld [vmem:[#allocation8 + $0x1d0] sm:$0xff]  ;;  %v5563_v55 = vld [vmem:[#allocation8 + $0x1c8] sm:$0xff] }
 0x1c1   : > { %v6622_v26 = vpop.f32.mrf.mxu0 }
 0x1c2   : > { %7457 = vst [vmem:[#allocation18_spill] sm:$0xff] %v6622_v26  ;;  %v2527_v44 = vpop.f32.mrf.mxu1  ;;  %3111 = vmatmul.bf16.gmra.mxu2 %v6620_v13 }
 0x1c3   : > { %3792 = vmatpush.bf16.msra.mxu0 %v5566_v63 }
 0x1c5   : > { %v2616_v37 = vpop.f32.mrf.mxu2  ;;  %3022 = vmatmul.bf16.gmra.mxu1 %v6201_v18 }
 0x1c6   : > { %v6628_v29 = vadd.f32 %v2616_v37, %v2527_v44  ;;  %2571 = vmatmul.bf16.gmra.mxu3 %v6625_v19 }
 0x1c7   : > { %3793 = vmatpush.bf16.msra.mxu0 %v5565_v38  ;;  %v4833_v38 = vld [vmem:[#allocation2 + $0x174] sm:$0xf0] }
 0x1c9   : > { %v6631_v17 = vpop.f32.mrf.mxu0 }
 0x1ca   : > { %7458 = vst [vmem:[#allocation19_spill] sm:$0xff] %v6631_v17  ;;  %v2529_v40 = vpop.f32.mrf.mxu1 }
 0x1cb   : > { %3794 = vmatpush.bf16.msra.mxu0 %v5564_v47  ;;  %v5561_v47 = vld [vmem:[#allocation8 + $0x1b8] sm:$0xff] }
 0x1cc   : > { %2983 = vmatmul.bf16.gmra.mxu0 %v6555_v8 }
 0x1cd   : > { %v2618_v56 = vpop.f32.mrf.mxu2 }
 0x1ce   : > { %v6634_v16 = vadd.f32 %v2618_v56, %v2529_v40  ;;  %v5501_v56 = vld [vmem:[#allocation8 + $0x158] sm:$0xff] }
 0x1cf   : > { %2675 = vmatpush.bf16.msrb.mxu3 %v5501_v56  ;;  %3795 = vmatpush.bf16.msra.mxu0 %v5563_v55  ;;  %v5424_v56 = vld [vmem:[#allocation2 + $0x88] sm:$0xf0] }
 0x1d1   : > { %v6638_v18 = vpop.f32.mrf.mxu0 }
 0x1d2   : > { %7459 = vst [vmem:[#allocation20_spill] sm:$0xff] %v6638_v18  ;;  %v2532_v25 = vpop.f32.mrf.mxu1  ;;  %3116 = vmatmul.bf16.gmra.mxu2 %v6636_v6 }
 0x1d5   : > { %v2621_v35 = vpop.f32.mrf.mxu2  ;;  %3027 = vmatmul.bf16.gmra.mxu1 %v6217_v59  ;;  %v5446_v59 = vld [vmem:[#allocation2 + $0x13c] sm:$0xf] }
 0x1d6   : > { %v6642_v8 = vadd.f32 %v2621_v35, %v2532_v25  ;;  %2576 = vmatmul.bf16.gmra.mxu3 %v4844_v48  ;;  %v4707_v35 = vld [vmem:[#allocation2 + $0x68] sm:$0xf] }
 0x1d7   : > { %v6665_v15 = vor.u32 %v5421_v23, %v4707_v35  ;;  %v5452_v23 = vld [vmem:[#allocation2 + $0x16c] sm:$0xf] }
 0x1d9   : > { %v6644_v31 = vpop.f32.mrf.mxu0 }
 0x1da   : > { %7460 = vst [vmem:[#allocation21_spill] sm:$0xff] %v6644_v31  ;;  %v2534_v32 = vpop.f32.mrf.mxu1 }
 0x1dc   : > { %2988 = vmatmul.bf16.gmra.mxu0 %v6595_v4  ;;  %v6654_v4 = vor.u32 %v5446_v59, %v4809_v58  ;;  %v5499_v58 = vld [vmem:[#allocation8 + $0x148] sm:$0xff] }
 0x1dd   : > { %v2623_v12 = vpop.f32.mrf.mxu2 }
 0x1de   : > { %v6647_v53 = vadd.f32 %v2623_v12, %v2534_v32  ;;  %v5449_v32 = vld [vmem:[#allocation2 + $0x154] sm:$0xf]  ;;  %v4821_v12 = vld [vmem:[#allocation2 + $0x15c] sm:$0xf0] }
 0x1e1   : > { %v6652_v44 = vpop.f32.mrf.mxu0 }
 0x1e2   : > { %v2537_v14 = vpop.f32.mrf.mxu1  ;;  %3121 = vmatmul.bf16.gmra.mxu2 %v6649_v57  ;;  %7461 = vst [vmem:[#allocation22_spill] sm:$0xff] %v6652_v44  ;;  %v4779_v44 = vld [vmem:[#allocation2 + $0xf8] sm:$0xf] }
 0x1e5   : > { %v2626_v37 = vpop.f32.mrf.mxu2  ;;  %3032 = vmatmul.bf16.gmra.mxu1 %v6233_v33  ;;  %v5500_v33 = vld [vmem:[#allocation8 + $0x150] sm:$0xff] }
 0x1e6   : > { %v6657_v40 = vadd.f32 %v2626_v37, %v2537_v14  ;;  %2650 = vmatmul.bf16.vlgmr.msra.gmra.mxu3 %v6654_v4  ;;  %v5562_v14 = vld [vmem:[#allocation8 + $0x1c0] sm:$0xff] }
 0x1e7   : > { %2676 = vmatpush.bf16.msrb.mxu3 %v5500_v33  ;;  %3796 = vmatpush.bf16.msra.mxu0 %v5562_v14 }
 0x1e9   : > { %v6661_v25 = vpop.f32.mrf.mxu0 }
 0x1ea   : > { %v2539_v30 = vpop.f32.mrf.mxu1  ;;  %7462 = vst [vmem:[#allocation23_spill] sm:$0xff] %v6661_v25  ;;  %v5575_v25 = vld [vmem:[#allocation8 + $0x228] sm:$0xff] }
 0x1eb   : > { %2677 = vmatpush.bf16.msrb.mxu3 %v5499_v58  ;;  %v5427_v58 = vld [vmem:[#allocation2 + $0xa0] sm:$0xf0] }
 0x1ec   : > { %2993 = vmatmul.bf16.gmra.mxu0 %v6597_v5  ;;  %v6668_v5 = vor.u32 %v5449_v32, %v4821_v12  ;;  %v6684_v32 = vor.u32 %v5452_v23, %v4833_v38 }
 0x1ed   : > { %v2628_v36 = vpop.f32.mrf.mxu2 }
 0x1ee   : > { %v6663_v48 = vadd.f32 %v2628_v36, %v2539_v30  ;;  %v4719_v30 = vld [vmem:[#allocation2 + $0x80] sm:$0xf] }
 0x1ef   : > { %v6679_v36 = vor.u32 %v5424_v56, %v4719_v30 }
 0x1f1   : > { %v6674_v2 = vpop.f32.mrf.mxu0 }
 0x1f2   : > { %v2542_v22 = vpop.f32.mrf.mxu1  ;;  %3126 = vmatmul.bf16.gmra.mxu2 %v6665_v15  ;;  %7463 = vst [vmem:[#allocation24_spill] sm:$0xff] %v6674_v2 }
 0x1f5   : > { %v2631_v61 = vpop.f32.mrf.mxu2  ;;  %3037 = vmatmul.bf16.gmra.mxu1 %v6247_v10  ;;  %v5498_v10 = vld [vmem:[#allocation8 + $0x140] sm:$0xff] }
 0x1f6   : > { %v6671_v59 = vadd.f32 %v2631_v61, %v2542_v22  ;;  %2655 = vmatmul.bf16.gmra.mxu3 %v6668_v5 }
 0x1f7   : > { %2678 = vmatpush.bf16.msrb.mxu3 %v5498_v10  ;;  %v4845_v10 = vld [vmem:[#allocation2 + $0x18c] sm:$0xf0] }
 0x1f9   : > { %v6681_v33 = vpop.f32.mrf.mxu0 }
 0x1fa   : > { %v2544_v37 = vpop.f32.mrf.mxu1  ;;  %7464 = vst [vmem:[#allocation25_spill] sm:$0xff] %v6681_v33 }
 0x1fb   : > { %3700 = vmatpush.bf16.msra.mxu3 %v5561_v47  ;;  %v5506_v47 = vld [vmem:[#allocation2 + $0x34] sm:$0xf] }
 0x1fc   : > { %2998 = vmatmul.bf16.gmra.mxu0 %v6610_v34 }
 0x1fd   : > { %v2633_v11 = vpop.f32.mrf.mxu2 }
 0x1fe   : > { %v6677_v63 = vadd.f32 %v2633_v11, %v2544_v37  ;;  %v5577_v37 = vld [vmem:[#allocation8 + $0x238] sm:$0xff]  ;;  %v4731_v11 = vld [vmem:[#allocation2 + $0x98] sm:$0xf] }
 0x1ff   : > { %v6695_v56 = vor.u32 %v5427_v58, %v4731_v11  ;;  %3878 = vmatpush.bf16.msra.mxu1 %v5577_v37  ;;  %v5430_v37 = vld [vmem:[#allocation2 + $0xb8] sm:$0xf0] }
 0x201   : > { %v6690_v61 = vpop.f32.mrf.mxu0 }
 0x202   : > { %v2547_v35 = vpop.f32.mrf.mxu1  ;;  %3131 = vmatmul.bf16.gmra.mxu2 %v6679_v36  ;;  %7465 = vst [vmem:[#allocation26_spill] sm:$0xff] %v6690_v61  ;;  %v4743_v61 = vld [vmem:[#allocation2 + $0xb0] sm:$0xf] }
 0x205   : > { %v2636_v12 = vpop.f32.mrf.mxu2  ;;  %3042 = vmatmul.bf16.gmra.mxu1 %v6262_v50  ;;  %v5479_v50 = vld [vmem:[#allocation2 + $0x184] sm:$0xf] }
 0x206   : > { %v6687_v34 = vadd.f32 %v2636_v12, %v2547_v35  ;;  %2660 = vmatmul.bf16.gmra.mxu3 %v6684_v32  ;;  %v4848_v23 = vor.u32 %v5479_v50, %v4845_v10  ;;  %v5061_v12 = vld [vmem:[#allocation2 + $0x3c] sm:$0xf0]  ;;  %v6707_v50 = vor.u32 %v5430_v37, %v4743_v61  ;;  %v5433_v37 = vld [vmem:[#allocation2 + $0xd0] sm:$0xf0] }
 0x209   : > { %v6699_v35 = vpop.f32.mrf.mxu0 }
 0x20a   : > { %v2549_v22 = vpop.f32.mrf.mxu1  ;;  %7466 = vst [vmem:[#allocation27_spill] sm:$0xff] %v6699_v35 }
 0x20c   : > { %3003 = vmatmul.bf16.gmra.mxu0 %v6625_v19 }
 0x20d   : > { %v2638_v55 = vpop.f32.mrf.mxu2 }
 0x20e   : > { %v6693_v14 = vadd.f32 %v2638_v55, %v2549_v22  ;;  %v5064_v55 = vor.u32 %v5506_v47, %v5061_v12  ;;  %v5509_v47 = vld [vmem:[#allocation2 + $0x4c] sm:$0xf] }
 0x211   : > { %v6705_v33 = vpop.f32.mrf.mxu0 }
 0x212   : > { %v2552_v30 = vpop.f32.mrf.mxu1  ;;  %3136 = vmatmul.bf16.gmra.mxu2 %v6695_v56  ;;  %7467 = vst [vmem:[#allocation28_spill] sm:$0xff] %v6705_v33  ;;  %v5576_v33 = vld [vmem:[#allocation8 + $0x230] sm:$0xff] }
 0x213   : > { %3879 = vmatpush.bf16.msra.mxu1 %v5576_v33 }
 0x215   : > { %v2641_v38 = vpop.f32.mrf.mxu2  ;;  %3047 = vmatmul.bf16.gmra.mxu1 %v6277_v24 }
 0x216   : > { %v6701_v19 = vadd.f32 %v2641_v38, %v2552_v30  ;;  %2665 = vmatmul.bf16.gmra.mxu3 %v4848_v23  ;;  %v5560_v23 = vld [vmem:[#allocation8 + $0x1b0] sm:$0xff]  ;;  %v5073_v38 = vld [vmem:[#allocation2 + $0x54] sm:$0xf0] }
 0x217   : > { %3701 = vmatpush.bf16.msra.mxu3 %v5560_v23  ;;  %3880 = vmatpush.bf16.msra.mxu1 %v5575_v25 }
 0x21a   : > { %v2554_v22 = vpop.f32.mrf.mxu1 }
 0x21b   : > { %3881 = vmatpush.bf16.msra.mxu1 %v5574_v3 }
 0x21c   : > { %3797 = vmatmul.bf16.vlgmr.msra.gmra.mxu0 %v5064_v55  ;;  %v5076_v55 = vor.u32 %v5509_v47, %v5073_v38  ;;  %v5085_v38 = vld [vmem:[#allocation2 + $0x6c] sm:$0xf0] }
 0x21d   : > { %v2643_v58 = vpop.f32.mrf.mxu2 }
 0x21e   : > { %v6703_v11 = vadd.f32 %v2643_v58, %v2554_v22  ;;  %v6716_v22 = vpop.f32.mrf.mxu0 }
 0x21f   : > { %7468 = vst [vmem:[#allocation29_spill] sm:$0xff] %v6716_v22 }
 0x222   : > { %v2557_v24 = vpop.f32.mrf.mxu1  ;;  %3141 = vmatmul.bf16.gmra.mxu2 %v6707_v50 }
 0x225   : > { %v2646_v10 = vpop.f32.mrf.mxu2  ;;  %3052 = vmatmul.bf16.gmra.mxu1 %v6292_v0  ;;  %v4755_v0 = vld [vmem:[#allocation2 + $0xc8] sm:$0xf] }
 0x226   : > { %v6711_v30 = vadd.f32 %v2646_v10, %v2557_v24  ;;  %2679 = vmatmul.bf16.vlgmr.msrb.gmra.mxu3 %v6620_v13  ;;  %v6720_v24 = vor.u32 %v5433_v37, %v4755_v0  ;;  %v6727_v23 = vpop.f32.mrf.mxu0  ;;  %v4767_v0 = vld [vmem:[#allocation2 + $0xe0] sm:$0xf] }
 0x227   : > { %7469 = vst [vmem:[#allocation30_spill] sm:$0xff] %v6727_v23 }
 0x229   : > { %v6714_v12 = vpop.f32.mrf.mxu3 }
 0x22a   : > { %v2559_v61 = vpop.f32.mrf.mxu1 }
 0x22c   : > { %3802 = vmatmul.bf16.gmra.mxu0 %v5076_v55 }
 0x22d   : > { %v2648_v58 = vpop.f32.mrf.mxu2 }
 0x22e   : > { %v6718_v35 = vadd.f32 %v2648_v58, %v2559_v61  ;;  %v5512_v61 = vld [vmem:[#allocation2 + $0x64] sm:$0xf]  ;;  %v5436_v58 = vld [vmem:[#allocation2 + $0xe8] sm:$0xf0]  ;;  %v6735_v37 = vpop.f32.mrf.mxu0 }
 0x22f   : > { %v5088_v33 = vor.u32 %v5512_v61, %v5085_v38  ;;  %7470 = vst [vmem:[#allocation31_spill] sm:$0xff] %v6735_v37  ;;  %v6737_v22 = vor.u32 %v5436_v58, %v4767_v0  ;;  %v5439_v37 = vld [vmem:[#allocation2 + $0x100] sm:$0xf0] }
 0x230   : > { %v6752_v31 = vor.u32 %v5439_v37, %v4779_v44 }
 0x231   : > { %v6722_v13 = vpop.f32.mrf.mxu3 }
 0x232   : > { %v6724_v10 = vpop.f32.mrf.mxu1  ;;  %3146 = vmatmul.bf16.gmra.mxu2 %v6720_v24 }
 0x235   : > { %3057 = vmatmul.bf16.gmra.mxu1 %v6312_v49  ;;  %v5559_v49 = vld [vmem:[#allocation8 + $0x1a8] sm:$0xff]  ;;  %v6767_v25 = vpop.f32.mrf.mxu2 }
 0x236   : > { %2684 = vmatmul.bf16.gmra.mxu3 %v6636_v6  ;;  %v5097_v6 = vld [vmem:[#allocation2 + $0x84] sm:$0xf0]  ;;  %v6746_v38 = vpop.f32.mrf.mxu0 }
 0x237   : > { %7471 = vst [vmem:[#allocation32_spill] sm:$0xff] %v6746_v38  ;;  %3702 = vmatpush.bf16.msra.mxu3 %v5559_v49  ;;  %v5109_v49 = vld [vmem:[#allocation2 + $0x9c] sm:$0xf0]  ;;  %v4791_v38 = vld [vmem:[#allocation2 + $0x110] sm:$0xf] }
 0x239   : > { %v6731_v47 = vpop.f32.mrf.mxu3 }
 0x23a   : > { %v6733_v55 = vpop.f32.mrf.mxu1 }
 0x23c   : > { %3807 = vmatmul.bf16.gmra.mxu0 %v5088_v33  ;;  %v5515_v33 = vld [vmem:[#allocation2 + $0x7c] sm:$0xf] }
 0x23d   : > { %v5100_v0 = vor.u32 %v5515_v33, %v5097_v6  ;;  %v5518_v33 = vld [vmem:[#allocation2 + $0x94] sm:$0xf] }
 0x23e   : > { %v5112_v44 = vor.u32 %v5518_v33, %v5109_v49  ;;  %v5558_v33 = vld [vmem:[#allocation8 + $0x1a0] sm:$0xff] }
 0x23f   : > { %3703 = vmatpush.bf16.msra.mxu3 %v5558_v33 }
 0x241   : > { %v6739_v2 = vpop.f32.mrf.mxu3 }
 0x242   : > { %v6741_v23 = vpop.f32.mrf.mxu1  ;;  %3151 = vmatmul.bf16.gmra.mxu2 %v6737_v22 }
 0x245   : > { %3062 = vmatmul.bf16.gmra.mxu1 %v6368_v62 }
 0x246   : > { %2689 = vmatmul.bf16.gmra.mxu3 %v6649_v57  ;;  %v6756_v57 = vpop.f32.mrf.mxu0 }
 0x247   : > { %7473 = vst [vmem:[#allocation34_spill] sm:$0xff] %v6756_v57  ;;  %v5442_v57 = vld [vmem:[#allocation2 + $0x118] sm:$0xf0] }
 0x248   : > { %v6771_v17 = vor.u32 %v5442_v57, %v4791_v38  ;;  %v5521_v38 = vld [vmem:[#allocation2 + $0xac] sm:$0xf] }
 0x249   : > { %v6748_v61 = vpop.f32.mrf.mxu3 }
 0x24a   : > { %v6750_v58 = vpop.f32.mrf.mxu1 }
 0x24b   : > { %7472 = vst [vmem:[#allocation33_spill] sm:$0xff] %v6750_v58 }
 0x24c   : > { %3812 = vmatmul.bf16.gmra.mxu0 %v5100_v0 }
 0x24e   : > { %v6769_v37 = vpop.f32.mrf.mxu0 }
 0x24f   : > { %7476 = vst [vmem:[#allocation37_spill] sm:$0xff] %v6769_v37 }
 0x251   : > { %v6754_v62 = vpop.f32.mrf.mxu3 }
 0x252   : > { %v6758_v18 = vpop.f32.mrf.mxu1  ;;  %3156 = vmatmul.bf16.gmra.mxu2 %v6752_v31 }
 0x253   : > { %7474 = vst [vmem:[#allocation35_spill] sm:$0xff] %v6758_v18  ;;  %v4803_v18 = vld [vmem:[#allocation2 + $0x128] sm:$0xf] }
 0x255   : > { %3067 = vmatmul.bf16.gmra.mxu1 %v6450_v45 }
 0x256   : > { %2694 = vmatmul.bf16.gmra.mxu3 %v6665_v15  ;;  %v6779_v15 = vpop.f32.mrf.mxu2  ;;  %v6781_v49 = vpop.f32.mrf.mxu0 }
 0x257   : > { %7478 = vst [vmem:[#allocation39_spill] sm:$0xff] %v6781_v49 }
 0x259   : > { %v6763_v6 = vpop.f32.mrf.mxu3 }
 0x25a   : > { %v6765_v0 = vpop.f32.mrf.mxu1 }
 0x25b   : > { %7475 = vst [vmem:[#allocation36_spill] sm:$0xff] %v6765_v0 }
 0x25c   : > { %3817 = vmatmul.bf16.gmra.mxu0 %v5112_v44  ;;  %v5121_v44 = vld [vmem:[#allocation2 + $0xb4] sm:$0xf0] }
 0x25e   : > { %v6789_v58 = vpop.f32.mrf.mxu2  ;;  %v6791_v49 = vpop.f32.mrf.mxu0 }
 0x25f   : > { %7480 = vst [vmem:[#allocation41_spill] sm:$0xff] %v6791_v49  ;;  %v5448_v49 = vld [vmem:[#allocation2 + $0x148] sm:$0xf0] }
 0x261   : > { %v6773_v26 = vpop.f32.mrf.mxu3 }
 0x262   : > { %v6775_v45 = vpop.f32.mrf.mxu1  ;;  %3161 = vmatmul.bf16.gmra.mxu2 %v6771_v17 }
 0x263   : > { %7477 = vst [vmem:[#allocation38_spill] sm:$0xff] %v6775_v45  ;;  %v5124_v45 = vor.u32 %v5521_v38, %v5121_v44 }
 0x265   : > { %3072 = vmatmul.bf16.gmra.mxu1 %v6542_v39  ;;  %v5445_v39 = vld [vmem:[#allocation2 + $0x130] sm:$0xf0] }
 0x266   : > { %2699 = vmatmul.bf16.gmra.mxu3 %v6679_v36  ;;  %v6793_v36 = vor.u32 %v5445_v39, %v4803_v18  ;;  %v6803_v44 = vpop.f32.mrf.mxu2  ;;  %v6805_v38 = vpop.f32.mrf.mxu0 }
 0x267   : > { %7482 = vst [vmem:[#allocation43_spill] sm:$0xff] %v6803_v44 }
 0x268   : > { %7483 = vst [vmem:[#allocation44_spill] sm:$0xff] %v6805_v38 }
 0x269   : > { %v2651_v37 = vpop.f32.mrf.mxu3 }
 0x26a   : > { %v6785_v57 = vadd.f32 %v2651_v37, %v6714_v12  ;;  %v6787_v0 = vpop.f32.mrf.mxu1  ;;  %v5133_v37 = vld [vmem:[#allocation2 + $0xcc] sm:$0xf0] }
 0x26b   : > { %7479 = vst [vmem:[#allocation40_spill] sm:$0xff] %v6787_v0 }
 0x26c   : > { %3822 = vmatmul.bf16.gmra.mxu0 %v5124_v45  ;;  %v5524_v45 = vld [vmem:[#allocation2 + $0xc4] sm:$0xf] }
 0x26e   : > { %v6818_v0 = vpop.f32.mrf.mxu2  ;;  %v6820_v38 = vpop.f32.mrf.mxu0 }
 0x26f   : > { %7485 = vst [vmem:[#allocation46_spill] sm:$0xff] %v6818_v0 }
 0x270   : > { %7486 = vst [vmem:[#allocation47_spill] sm:$0xff] %v6820_v38  ;;  %v5451_v38 = vld [vmem:[#allocation2 + $0x160] sm:$0xf0] }
 0x271   : > { %v2653_v33 = vpop.f32.mrf.mxu3 }
 0x272   : > { %v6796_v21 = vadd.f32 %v2653_v33, %v6722_v13  ;;  %3166 = vmatmul.bf16.gmra.mxu2 %v6793_v36  ;;  %v6799_v12 = vpop.f32.mrf.mxu1  ;;  %v5136_v13 = vor.u32 %v5524_v45, %v5133_v37  ;;  %v4815_v33 = vld [vmem:[#allocation2 + $0x140] sm:$0xf]  ;;  %v5573_v37 = vld [vmem:[#allocation8 + $0x218] sm:$0xff] }
 0x273   : > { %7481 = vst [vmem:[#allocation42_spill] sm:$0xff] %v6799_v12  ;;  %v6812_v12 = vor.u32 %v5448_v49, %v4815_v33  ;;  %v5145_v49 = vld [vmem:[#allocation2 + $0xe4] sm:$0xf0]  ;;  %3882 = vmatpush.bf16.msra.mxu1 %v5573_v37 }
 0x275   : > { %3077 = vmatmul.bf16.gmra.mxu1 %v6590_v7 }
 0x276   : > { %2704 = vmatmul.bf16.gmra.mxu3 %v6695_v56 }
 0x279   : > { %v2656_v3 = vpop.f32.mrf.mxu3 }
 0x27a   : > { %v6808_v18 = vadd.f32 %v2656_v3, %v6731_v47  ;;  %v6810_v39 = vpop.f32.mrf.mxu1  ;;  %v5557_v47 = vld [vmem:[#allocation8 + $0x198] sm:$0xff] }
 0x27b   : > { %7484 = vst [vmem:[#allocation45_spill] sm:$0xff] %v6810_v39  ;;  %3704 = vmatpush.bf16.msra.mxu3 %v5557_v47  ;;  %v6829_v39 = vpop.f32.mrf.mxu2 }
 0x27c   : > { %3827 = vmatmul.bf16.gmra.mxu0 %v5136_v13 }
 0x281   : > { %v2658_v7 = vpop.f32.mrf.mxu3 }
 0x282   : > { %v6815_v56 = vadd.f32 %v2658_v7, %v6739_v2  ;;  %3171 = vmatmul.bf16.gmra.mxu2 %v6812_v12  ;;  %v6824_v3 = vpop.f32.mrf.mxu1  ;;  %v5527_v2 = vld [vmem:[#allocation2 + $0xdc] sm:$0xf]  ;;  %v4827_v7 = vld [vmem:[#allocation2 + $0x158] sm:$0xf] }
 0x283   : > { %7487 = vst [vmem:[#allocation48_spill] sm:$0xff] %v6824_v3  ;;  %v5148_v33 = vor.u32 %v5527_v2, %v5145_v49  ;;  %v6833_v0 = vor.u32 %v5451_v38, %v4827_v7  ;;  %v5571_v3 = vld [vmem:[#allocation8 + $0x208] sm:$0xff]  ;;  %v5157_v49 = vld [vmem:[#allocation2 + $0xfc] sm:$0xf0] }
 0x285   : > { %3082 = vmatmul.bf16.gmra.mxu1 %v6654_v4  ;;  %v6831_v4 = vpop.f32.mrf.mxu0 }
 0x286   : > { %2709 = vmatmul.bf16.gmra.mxu3 %v6707_v50  ;;  %7488 = vst [vmem:[#allocation49_spill] sm:$0xff] %v6831_v4  ;;  %v5572_v50 = vld [vmem:[#allocation8 + $0x210] sm:$0xff] }
 0x287   : > { %3883 = vmatpush.bf16.msra.mxu1 %v5572_v50 }
 0x289   : > { %v2661_v45 = vpop.f32.mrf.mxu3 }
 0x28a   : > { %v6827_v13 = vadd.f32 %v2661_v45, %v6748_v61  ;;  %v6835_v47 = vpop.f32.mrf.mxu1  ;;  %v5570_v61 = vld [vmem:[#allocation8 + $0x200] sm:$0xff]  ;;  %v6843_v45 = vpop.f32.mrf.mxu2 }
 0x28b   : > { %7489 = vst [vmem:[#allocation50_spill] sm:$0xff] %v6835_v47  ;;  %3884 = vmatpush.bf16.msra.mxu1 %v5571_v3  ;;  %v4839_v3 = vld [vmem:[#allocation2 + $0x170] sm:$0xf] }
 0x28c   : > { %3832 = vmatmul.bf16.gmra.mxu0 %v5148_v33  ;;  %v5530_v33 = vld [vmem:[#allocation2 + $0xf4] sm:$0xf] }
 0x28d   : > { %v6845_v38 = vpop.f32.mrf.mxu0 }
 0x28e   : > { %7490 = vst [vmem:[#allocation51_spill] sm:$0xff] %v6845_v38 }
 0x28f   : > { %3885 = vmatpush.bf16.msra.mxu1 %v5570_v61 }
 0x291   : > { %v2663_v37 = vpop.f32.mrf.mxu3 }
 0x292   : > { %v6838_v44 = vadd.f32 %v2663_v37, %v6754_v62  ;;  %3176 = vmatmul.bf16.gmra.mxu2 %v6833_v0  ;;  %v5160_v62 = vor.u32 %v5530_v33, %v5157_v49  ;;  %v6850_v50 = vpop.f32.mrf.mxu1  ;;  %v5585_v37 = vld [vmem:[#allocation9 + $0x38] sm:$0xff]  ;;  %v6854_v47 = vpop.f32.mrf.mxu2  ;;  %v5556_v49 = vld [vmem:[#allocation8 + $0x190] sm:$0xff] }
 0x293   : > { %7491 = vst [vmem:[#allocation52_spill] sm:$0xff] %v6850_v50  ;;  %4151 = vmatpush.bf16.msra.mxu2 %v5585_v37  ;;  %3705 = vmatpush.bf16.msra.mxu3 %v5556_v49 }
 0x295   : > { %3087 = vmatmul.bf16.gmra.mxu1 %v6668_v5  ;;  %v5454_v5 = vld [vmem:[#allocation2 + $0x178] sm:$0xf0]  ;;  %v6856_v38 = vpop.f32.mrf.mxu0 }
 0x296   : > { %2714 = vmatmul.bf16.gmra.mxu3 %v6720_v24  ;;  %v6852_v24 = vor.u32 %v5454_v5, %v4839_v3  ;;  %7492 = vst [vmem:[#allocation53_spill] sm:$0xff] %v6856_v38 }
 0x299   : > { %v2666_v2 = vpop.f32.mrf.mxu3 }
 0x29a   : > { %v6848_v7 = vadd.f32 %v2666_v2, %v6763_v6  ;;  %v6862_v6 = vpop.f32.mrf.mxu1  ;;  %v5169_v2 = vld [vmem:[#allocation2 + $0x114] sm:$0xf0] }
 0x29b   : > { %7493 = vst [vmem:[#allocation54_spill] sm:$0xff] %v6862_v6 }
 0x29c   : > { %3837 = vmatmul.bf16.gmra.mxu0 %v5160_v62  ;;  %v5533_v62 = vld [vmem:[#allocation2 + $0x10c] sm:$0xf] }
 0x29d   : > { %v5172_v5 = vor.u32 %v5533_v62, %v5169_v2  ;;  %v6869_v37 = vpop.f32.mrf.mxu0  ;;  %v5536_v62 = vld [vmem:[#allocation2 + $0x124] sm:$0xf] }
 0x29e   : > { %7494 = vst [vmem:[#allocation55_spill] sm:$0xff] %v6869_v37 }
 0x2a1   : > { %v2668_v4 = vpop.f32.mrf.mxu3 }
 0x2a2   : > { %v6859_v61 = vadd.f32 %v2668_v4, %v6773_v26  ;;  %3181 = vmatmul.bf16.gmra.mxu2 %v6852_v24  ;;  %v6871_v26 = vpop.f32.mrf.mxu1  ;;  %v5508_v4 = vld [vmem:[#allocation2 + $0x40] sm:$0xf0] }
 0x2a3   : > { %7495 = vst [vmem:[#allocation56_spill] sm:$0xff] %v6871_v26  ;;  %v5584_v26 = vld [vmem:[#allocation9 + $0x30] sm:$0xff] }
 0x2a4   : > { %4152 = vmatpush.bf16.msra.mxu2 %v5584_v26 }
 0x2a5   : > { %3092 = vmatmul.bf16.gmra.mxu1 %v6684_v32  ;;  %v6876_v49 = vpop.f32.mrf.mxu0 }
 0x2a6   : > { %2719 = vmatmul.bf16.gmra.mxu3 %v6737_v22  ;;  %v5067_v22 = vld [vmem:[#allocation2 + $0x38] sm:$0xf]  ;;  %7496 = vst [vmem:[#allocation57_spill] sm:$0xff] %v6876_v49 }
 0x2a7   : > { %v5068_v6 = vor.u32 %v5508_v4, %v5067_v22 }
 0x2a9   : > { %v2680_v33 = vpop.f32.mrf.mxu3 }
 0x2aa   : > { %v6867_v3 = vadd.f32 %v2680_v33, %v6396_v41  ;;  %v5181_v41 = vld [vmem:[#allocation2 + $0x12c] sm:$0xf0]  ;;  %v6879_v33 = vpop.f32.mrf.mxu1 }
 0x2ab   : > { %7497 = vst [vmem:[#allocation58_spill] sm:$0xff] %v6879_v33  ;;  %v5184_v37 = vor.u32 %v5536_v62, %v5181_v41  ;;  %v5193_v41 = vld [vmem:[#allocation2 + $0x144] sm:$0xf0] }
 0x2ac   : > { %3842 = vmatmul.bf16.gmra.mxu0 %v5172_v5 }
 0x2b1   : > { %v2682_v38 = vpop.f32.mrf.mxu3 }
 0x2b2   : > { %v6874_v32 = vadd.f32 %v2682_v38, %v6439_v27  ;;  %v6884_v27 = vpop.f32.mrf.mxu0  ;;  %v5511_v38 = vld [vmem:[#allocation2 + $0x58] sm:$0xf0]  ;;  %v6889_v22 = vpop.f32.mrf.mxu1 }
 0x2b3   : > { %7498 = vst [vmem:[#allocation59_spill] sm:$0xff] %v6884_v27 }
 0x2b4   : > { %7499 = vst [vmem:[#allocation60_spill] sm:$0xff] %v6889_v22 }
 0x2b5   : > { %3886 = vmatmul.bf16.vlgmr.msra.gmra.mxu1 %v5068_v6 }
 0x2b6   : > { %2724 = vmatmul.bf16.gmra.mxu3 %v6752_v31  ;;  %v5079_v31 = vld [vmem:[#allocation2 + $0x50] sm:$0xf] }
 0x2b7   : > { %v5080_v49 = vor.u32 %v5511_v38, %v5079_v31 }
 0x2b9   : > { %v2685_v2 = vpop.f32.mrf.mxu3 }
 0x2ba   : > { %v6882_v5 = vadd.f32 %v2685_v2, %v6483_v42  ;;  %v5555_v42 = vld [vmem:[#allocation8 + $0x188] sm:$0xff]  ;;  %v6892_v62 = vpop.f32.mrf.mxu0 }
 0x2bb   : > { %v5539_v2 = vld [vmem:[#allocation2 + $0x13c] sm:$0xf]  ;;  %3706 = vmatpush.bf16.msra.mxu3 %v5555_v42 }
 0x2bc   : > { %3847 = vmatmul.bf16.gmra.mxu0 %v5184_v37  ;;  %v5196_v27 = vor.u32 %v5539_v2, %v5193_v41 }
 0x2c1   : > { %v2687_v6 = vpop.f32.mrf.mxu3 }
 0x2c2   : > { %v6887_v4 = vadd.f32 %v2687_v6, %v6525_v43  ;;  %v6897_v43 = vpop.f32.mrf.mxu1  ;;  %v5514_v6 = vld [vmem:[#allocation2 + $0x70] sm:$0xf0]  ;;  %v6902_v31 = vpop.f32.mrf.mxu0 }
 0x2c3   : > { %7500 = vst [vmem:[#allocation61_spill] sm:$0xff] %v6897_v43 }
 0x2c5   : > { %3891 = vmatmul.bf16.gmra.mxu1 %v5080_v49 }
 0x2c6   : > { %2729 = vmatmul.bf16.gmra.mxu3 %v6771_v17  ;;  %v5091_v17 = vld [vmem:[#allocation2 + $0x68] sm:$0xf] }
 0x2c7   : > { %v5092_v38 = vor.u32 %v5514_v6, %v5091_v17 }
 0x2c9   : > { %v2690_v37 = vpop.f32.mrf.mxu3 }
 0x2ca   : > { %v6895_v26 = vadd.f32 %v2690_v37, %v6564_v28  ;;  %v6905_v42 = vpop.f32.mrf.mxu1  ;;  %v5542_v28 = vld [vmem:[#allocation2 + $0x154] sm:$0xf]  ;;  %v5205_v37 = vld [vmem:[#allocation2 + $0x15c] sm:$0xf0]  ;;  %v6910_v43 = vpop.f32.mrf.mxu0 }
 0x2cb   : > { %7501 = vst [vmem:[#allocation62_spill] sm:$0xff] %v6905_v42  ;;  %v5208_v41 = vor.u32 %v5542_v28, %v5205_v37  ;;  %v5217_v28 = vld [vmem:[#allocation2 + $0x174] sm:$0xf0] }
 0x2cc   : > { %3852 = vmatmul.bf16.gmra.mxu0 %v5196_v27 }
 0x2d1   : > { %v2692_v22 = vpop.f32.mrf.mxu3 }
 0x2d2   : > { %v6900_v49 = vadd.f32 %v2692_v22, %v6588_v9  ;;  %v5583_v9 = vld [vmem:[#allocation9 + $0x28] sm:$0xff]  ;;  %v5517_v22 = vld [vmem:[#allocation2 + $0x88] sm:$0xf0]  ;;  %v6912_v6 = vpop.f32.mrf.mxu1  ;;  %v6918_v37 = vpop.f32.mrf.mxu0 }
 0x2d3   : > { %4153 = vmatpush.bf16.msra.mxu2 %v5583_v9  ;;  %7502 = vst [vmem:[#allocation63_spill] sm:$0xff] %v6912_v6 }
 0x2d5   : > { %3896 = vmatmul.bf16.gmra.mxu1 %v5092_v38  ;;  %v5103_v38 = vld [vmem:[#allocation2 + $0x80] sm:$0xf] }
 0x2d6   : > { %2734 = vmatmul.bf16.gmra.mxu3 %v6793_v36  ;;  %v5104_v42 = vor.u32 %v5517_v22, %v5103_v38 }
 0x2d9   : > { %v2695_v2 = vpop.f32.mrf.mxu3 }
 0x2da   : > { %v6908_v27 = vadd.f32 %v2695_v2, %v6600_v20  ;;  %v5554_v20 = vld [vmem:[#allocation8 + $0x180] sm:$0xff]  ;;  %v5545_v2 = vld [vmem:[#allocation2 + $0x16c] sm:$0xf]  ;;  %v6923_v33 = vpop.f32.mrf.mxu1  ;;  %v6925_v22 = vpop.f32.mrf.mxu0 }
 0x2db   : > { %3707 = vmatpush.bf16.msra.mxu3 %v5554_v20  ;;  %v5220_v6 = vor.u32 %v5545_v2, %v5217_v28  ;;  %7503 = vst [vmem:[#allocation64_spill] sm:$0xff] %v6923_v33  ;;  %v5229_v20 = vld [vmem:[#allocation2 + $0x18c] sm:$0xf0] }
 0x2dc   : > { %3857 = vmatmul.bf16.gmra.mxu0 %v5208_v41  ;;  %v5582_v33 = vld [vmem:[#allocation9 + $0x20] sm:$0xff] }
 0x2dd   : > { %4154 = vmatpush.bf16.msra.mxu2 %v5582_v33 }
 0x2e1   : > { %v2697_v17 = vpop.f32.mrf.mxu3 }
 0x2e2   : > { %v6915_v36 = vadd.f32 %v2697_v17, %v6606_v46  ;;  %v5520_v46 = vld [vmem:[#allocation2 + $0xa0] sm:$0xf0]  ;;  %v6930_v50 = vpop.f32.mrf.mxu1 }
 0x2e3   : > { %7504 = vst [vmem:[#allocation65_spill] sm:$0xff] %v6930_v50  ;;  %v5481_v50 = vld [vmem:[#allocation2 + $0x190] sm:$0xf0] }
 0x2e5   : > { %3901 = vmatmul.bf16.gmra.mxu1 %v5104_v42  ;;  %v5115_v42 = vld [vmem:[#allocation2 + $0x98] sm:$0xf] }
 0x2e6   : > { %2739 = vmatmul.bf16.gmra.mxu3 %v6812_v12  ;;  %v5116_v38 = vor.u32 %v5520_v46, %v5115_v42 }
 0x2e9   : > { %v2700_v41 = vpop.f32.mrf.mxu3 }
 0x2ea   : > { %v6921_v9 = vadd.f32 %v2700_v41, %v6612_v54  ;;  %v5548_v54 = vld [vmem:[#allocation2 + $0x184] sm:$0xf]  ;;  %v6936_v41 = vpop.f32.mrf.mxu0 }
 0x2ec   : > { %3862 = vmatmul.bf16.gmra.mxu0 %v5220_v6  ;;  %v5232_v6 = vor.u32 %v5548_v54, %v5229_v20 }
 0x2f1   : > { %v2702_v17 = vpop.f32.mrf.mxu3 }
 0x2f2   : > { %v6928_v12 = vadd.f32 %v2702_v17, %v6618_v60  ;;  %v6938_v60 = vpop.f32.mrf.mxu1  ;;  %v5523_v17 = vld [vmem:[#allocation2 + $0xb8] sm:$0xf0] }
 0x2f3   : > { %7505 = vst [vmem:[#allocation66_spill] sm:$0xff] %v6938_v60  ;;  %v4851_v60 = vld [vmem:[#allocation2 + $0x188] sm:$0xf] }
 0x2f5   : > { %3906 = vmatmul.bf16.gmra.mxu1 %v5116_v38 }
 0x2f6   : > { %2744 = vmatmul.bf16.gmra.mxu3 %v6833_v0  ;;  %v5127_v0 = vld [vmem:[#allocation2 + $0xb0] sm:$0xf] }
 0x2f7   : > { %v5128_v38 = vor.u32 %v5523_v17, %v5127_v0  ;;  %v4852_v0 = vor.u32 %v5481_v50, %v4851_v60 }
 0x2f9   : > { %v2705_v2 = vpop.f32.mrf.mxu3 }
 0x2fa   : > { %v6934_v28 = vadd.f32 %v2705_v2, %v6628_v29  ;;  %v6944_v29 = vpop.f32.mrf.mxu1  ;;  %v5526_v2 = vld [vmem:[#allocation2 + $0xd0] sm:$0xf0] }
 0x2fb   : > { %7507 = vst [vmem:[#allocation68_spill] sm:$0xff] %v6944_v29  ;;  %v5529_v29 = vld [vmem:[#allocation2 + $0xe8] sm:$0xf0] }
 0x2fc   : > { %3867 = vmatmul.bf16.gmra.mxu0 %v5232_v6 }
 0x301   : > { %v2707_v46 = vpop.f32.mrf.mxu3 }
 0x302   : > { %v6941_v42 = vadd.f32 %v2707_v46, %v6634_v16  ;;  %v5139_v16 = vld [vmem:[#allocation2 + $0xc8] sm:$0xf]  ;;  %v6952_v46 = vpop.f32.mrf.mxu1 }
 0x303   : > { %7509 = vst [vmem:[#allocation70_spill] sm:$0xff] %v6952_v46  ;;  %v5140_v17 = vor.u32 %v5526_v2, %v5139_v16  ;;  %v5059_v2 = vld [vmem:[#allocation2 + $0x30] sm:$0xf] }
 0x304   : > { %7506 = vst [vmem:[#allocation67_spill] sm:$0xff] %v6941_v42  ;;  %v5507_v42 = vld [vmem:[#allocation2 + $0x38] sm:$0xf0] }
 0x305   : > { %3911 = vmatmul.bf16.gmra.mxu1 %v5128_v38  ;;  %v5060_v50 = vor.u32 %v5507_v42, %v5059_v2 }
 0x306   : > { %2749 = vmatmul.bf16.gmra.mxu3 %v6852_v24 }
 0x309   : > { %v2710_v54 = vpop.f32.mrf.mxu3 }
 0x30a   : > { %v6947_v20 = vadd.f32 %v2710_v54, %v6642_v8  ;;  %v6957_v8 = vpop.f32.mrf.mxu1  ;;  %v5581_v54 = vld [vmem:[#allocation9 + $0x18] sm:$0xff] }
 0x30b   : > { %7510 = vst [vmem:[#allocation71_spill] sm:$0xff] %v6957_v8  ;;  %4155 = vmatpush.bf16.msra.mxu2 %v5581_v54  ;;  %v5510_v54 = vld [vmem:[#allocation2 + $0x50] sm:$0xf0]  ;;  %v5516_v8 = vld [vmem:[#allocation2 + $0x80] sm:$0xf0] }
 0x30c   : > { %7508 = vst [vmem:[#allocation69_spill] sm:$0xff] %v6947_v20 }
 0x311   : > { %v2712_v6 = vpop.f32.mrf.mxu3 }
 0x312   : > { %v6950_v33 = vadd.f32 %v2712_v6, %v6647_v53  ;;  %v5151_v6 = vld [vmem:[#allocation2 + $0xe0] sm:$0xf]  ;;  %v6962_v60 = vpop.f32.mrf.mxu1 }
 0x313   : > { %v5152_v46 = vor.u32 %v5529_v29, %v5151_v6  ;;  %7511 = vst [vmem:[#allocation72_spill] sm:$0xff] %v6962_v60  ;;  %v5071_v6 = vld [vmem:[#allocation2 + $0x48] sm:$0xf]  ;;  %v5513_v60 = vld [vmem:[#allocation2 + $0x68] sm:$0xf0] }
 0x314   : > { %v5072_v42 = vor.u32 %v5510_v54, %v5071_v6 }
 0x315   : > { %3916 = vmatmul.bf16.gmra.mxu1 %v5140_v17  ;;  %v5532_v17 = vld [vmem:[#allocation2 + $0x100] sm:$0xf0] }
 0x316   : > { %2754 = vmatmul.bf16.gmra.mxu3 %v4852_v0 }
 0x319   : > { %v2715_v24 = vpop.f32.mrf.mxu3 }
 0x31a   : > { %v6955_v38 = vadd.f32 %v2715_v24, %v6657_v40  ;;  %v6967_v0 = vpop.f32.mrf.mxu1 }
 0x31b   : > { %7512 = vst [vmem:[#allocation73_spill] sm:$0xff] %v6967_v0 }
 0x321   : > { %v2717_v20 = vpop.f32.mrf.mxu3 }
 0x322   : > { %v6960_v53 = vadd.f32 %v2717_v20, %v6663_v48  ;;  %v5163_v20 = vld [vmem:[#allocation2 + $0xf8] sm:$0xf] }
 0x323   : > { %v5164_v29 = vor.u32 %v5532_v17, %v5163_v20  ;;  %v5083_v20 = vld [vmem:[#allocation2 + $0x60] sm:$0xf] }
 0x324   : > { %v5084_v54 = vor.u32 %v5513_v60, %v5083_v20 }
 0x325   : > { %3921 = vmatmul.bf16.gmra.mxu1 %v5152_v46 }
 0x326   : > { %3708 = vmatmul.bf16.vlgmr.msra.gmra.mxu3 %v5060_v50  ;;  %v5580_v50 = vld [vmem:[#allocation9 + $0x10] sm:$0xff] }
 0x327   : > { %4156 = vmatpush.bf16.msra.mxu2 %v5580_v50  ;;  %v5538_v50 = vld [vmem:[#allocation2 + $0x130] sm:$0xf0] }
 0x329   : > { %v2720_v40 = vpop.f32.mrf.mxu3 }
 0x32a   : > { %v6965_v16 = vadd.f32 %v2720_v40, %v6671_v59  ;;  %v6975_v59 = vpop.f32.mrf.mxu1  ;;  %v5535_v40 = vld [vmem:[#allocation2 + $0x118] sm:$0xf0] }
 0x32b   : > { %7514 = vst [vmem:[#allocation75_spill] sm:$0xff] %v6975_v59 }
 0x331   : > { %v2722_v24 = vpop.f32.mrf.mxu3 }
 0x332   : > { %v6970_v48 = vadd.f32 %v2722_v24, %v6677_v63  ;;  %v5175_v24 = vld [vmem:[#allocation2 + $0x110] sm:$0xf] }
 0x333   : > { %v5176_v17 = vor.u32 %v5535_v40, %v5175_v24  ;;  %v5095_v40 = vld [vmem:[#allocation2 + $0x78] sm:$0xf] }
 0x334   : > { %v5096_v24 = vor.u32 %v5516_v8, %v5095_v40 }
 0x335   : > { %3926 = vmatmul.bf16.gmra.mxu1 %v5164_v29  ;;  %v6980_v29 = vpop.f32.mrf.mxu1 }
 0x336   : > { %3713 = vmatmul.bf16.gmra.mxu3 %v5072_v42  ;;  %7516 = vst [vmem:[#allocation77_spill] sm:$0xff] %v6980_v29  ;;  %v5541_v29 = vld [vmem:[#allocation2 + $0x148] sm:$0xf0] }
 0x339   : > { %v2725_v46 = vpop.f32.mrf.mxu3 }
 0x33a   : > { %v6973_v2 = vadd.f32 %v2725_v46, %v6687_v34  ;;  %v5187_v46 = vld [vmem:[#allocation2 + $0x128] sm:$0xf] }
 0x33b   : > { %v5188_v60 = vor.u32 %v5538_v50, %v5187_v46 }
 0x33c   : > { %7513 = vst [vmem:[#allocation74_spill] sm:$0xff] %v6973_v2 }
 0x33d   : > { %v6985_v42 = vpop.f32.mrf.mxu1 }
 0x33e   : > { %7518 = vst [vmem:[#allocation79_spill] sm:$0xff] %v6985_v42  ;;  %v5199_v42 = vld [vmem:[#allocation2 + $0x140] sm:$0xf] }
 0x33f   : > { %v5200_v50 = vor.u32 %v5541_v29, %v5199_v42 }
 0x341   : > { %v2727_v0 = vpop.f32.mrf.mxu3 }
 0x342   : > { %v6978_v63 = vadd.f32 %v2727_v0, %v6693_v14  ;;  %v6990_v0 = vpop.f32.mrf.mxu2 }
 0x344   : > { %7515 = vst [vmem:[#allocation76_spill] sm:$0xff] %v6978_v63 }
 0x345   : > { %3931 = vmatmul.bf16.gmra.mxu1 %v5176_v17  ;;  %v6992_v17 = vpop.f32.mrf.mxu1 }
 0x346   : > { %3718 = vmatmul.bf16.gmra.mxu3 %v5084_v54  ;;  %7520 = vst [vmem:[#allocation81_spill] sm:$0xff] %v6992_v17 }
 0x349   : > { %v2730_v34 = vpop.f32.mrf.mxu3 }
 0x34a   : > { %v6983_v6 = vadd.f32 %v2730_v34, %v6701_v19  ;;  %v6997_v54 = vpop.f32.mrf.mxu2  ;;  %v5579_v34 = vld [vmem:[#allocation9 + $0x8] sm:$0xff] }
 0x34b   : > { %4157 = vmatpush.bf16.msra.mxu2 %v5579_v34  ;;  %v5211_v34 = vld [vmem:[#allocation2 + $0x158] sm:$0xf] }
 0x34c   : > { %7517 = vst [vmem:[#allocation78_spill] sm:$0xff] %v6983_v6  ;;  %v5547_v6 = vld [vmem:[#allocation2 + $0x178] sm:$0xf0] }
 0x34d   : > { %v7002_v8 = vpop.f32.mrf.mxu1 }
 0x351   : > { %v2732_v59 = vpop.f32.mrf.mxu3 }
 0x352   : > { %v6988_v14 = vadd.f32 %v2732_v59, %v6703_v11  ;;  %v5519_v59 = vld [vmem:[#allocation2 + $0x98] sm:$0xf0] }
 0x354   : > { %7519 = vst [vmem:[#allocation80_spill] sm:$0xff] %v6988_v14 }
 0x355   : > { %3936 = vmatmul.bf16.gmra.mxu1 %v5188_v60  ;;  %v5107_v60 = vld [vmem:[#allocation2 + $0x90] sm:$0xf]  ;;  %v7009_v17 = vpop.f32.mrf.mxu1 }
 0x356   : > { %3723 = vmatmul.bf16.gmra.mxu3 %v5096_v24  ;;  %v5108_v40 = vor.u32 %v5519_v59, %v5107_v60  ;;  %v5119_v59 = vld [vmem:[#allocation2 + $0xa8] sm:$0xf] }
 0x359   : > { %v2735_v19 = vpop.f32.mrf.mxu3 }
 0x35a   : > { %v6995_v20 = vadd.f32 %v2735_v19, %v6711_v30  ;;  %v7004_v30 = vpop.f32.mrf.mxu2 }
 0x35c   : > { %7521 = vst [vmem:[#allocation82_spill] sm:$0xff] %v6995_v20  ;;  %v5544_v20 = vld [vmem:[#allocation2 + $0x160] sm:$0xf0] }
 0x35d   : > { %v5212_v42 = vor.u32 %v5544_v20, %v5211_v34  ;;  %v7016_v60 = vpop.f32.mrf.mxu1  ;;  %v5525_v20 = vld [vmem:[#allocation2 + $0xc8] sm:$0xf0] }
 0x361   : > { %v2737_v11 = vpop.f32.mrf.mxu3 }
 0x362   : > { %v7000_v46 = vadd.f32 %v2737_v11, %v6718_v35  ;;  %v7011_v14 = vpop.f32.mrf.mxu2  ;;  %v5522_v11 = vld [vmem:[#allocation2 + $0xb0] sm:$0xf0] }
 0x364   : > { %7522 = vst [vmem:[#allocation83_spill] sm:$0xff] %v7000_v46  ;;  %v5223_v46 = vld [vmem:[#allocation2 + $0x170] sm:$0xf] }
 0x365   : > { %3941 = vmatmul.bf16.gmra.mxu1 %v5200_v50  ;;  %v5120_v50 = vor.u32 %v5522_v11, %v5119_v59  ;;  %v7023_v63 = vpop.f32.mrf.mxu1  ;;  %v5131_v11 = vld [vmem:[#allocation2 + $0xc0] sm:$0xf] }
 0x366   : > { %3728 = vmatmul.bf16.gmra.mxu3 %v5108_v40 }
 0x369   : > { %v2740_v24 = vpop.f32.mrf.mxu3 }
 0x36a   : > { %v7007_v19 = vadd.f32 %v2740_v24, %v6785_v57  ;;  %v7021_v24 = vpop.f32.mrf.mxu2 }
 0x36c   : > { %7523 = vst [vmem:[#allocation84_spill] sm:$0xff] %v7007_v19  ;;  %v5578_v19 = vld [vmem:[#allocation9] sm:$0xff] }
 0x36d   : > { %4158 = vmatpush.bf16.msra.mxu2 %v5578_v19 }
 0x371   : > { %v2742_v35 = vpop.f32.mrf.mxu3 }
 0x372   : > { %v7014_v29 = vadd.f32 %v2742_v35, %v6796_v21  ;;  %v5224_v35 = vor.u32 %v5547_v6, %v5223_v46  ;;  %v7028_v59 = vpop.f32.mrf.mxu2 }
 0x374   : > { %7524 = vst [vmem:[#allocation85_spill] sm:$0xff] %v7014_v29  ;;  %v5550_v29 = vld [vmem:[#allocation2 + $0x190] sm:$0xf0] }
 0x375   : > { %3946 = vmatmul.bf16.gmra.mxu1 %v5212_v42  ;;  %v5132_v42 = vor.u32 %v5525_v20, %v5131_v11 }
 0x376   : > { %3733 = vmatmul.bf16.gmra.mxu3 %v5120_v50 }
 0x379   : > { %v2745_v57 = vpop.f32.mrf.mxu3 }
 0x37a   : > { %v7019_v40 = vadd.f32 %v2745_v57, %v6808_v18  ;;  %v7033_v57 = vpop.f32.mrf.mxu1  ;;  %v7035_v19 = vpop.f32.mrf.mxu2 }
 0x37c   : > { %7525 = vst [vmem:[#allocation86_spill] sm:$0xff] %v7019_v40  ;;  %v5235_v40 = vld [vmem:[#allocation2 + $0x188] sm:$0xf] }
 0x37d   : > { %v5236_v46 = vor.u32 %v5550_v29, %v5235_v40  ;;  %v2930_v29 = vadd.f32 %v6585_v52, %v6867_v3 }
 0x381   : > { %v2747_v21 = vpop.f32.mrf.mxu3 }
 0x382   : > { %v7026_v34 = vadd.f32 %v2747_v21, %v6815_v56  ;;  %v5528_v56 = vld [vmem:[#allocation2 + $0xe0] sm:$0xf0]  ;;  %v5143_v21 = vld [vmem:[#allocation2 + $0xd8] sm:$0xf] }
 0x383   : > { %v5144_v20 = vor.u32 %v5528_v56, %v5143_v21  ;;  %v3019_v56 = vadd.f32 %v6724_v10, %v2930_v29 }
 0x384   : > { %7526 = vst [vmem:[#allocation87_spill] sm:$0xff] %v7026_v34 }
 0x385   : > { %3951 = vmatmul.bf16.gmra.mxu1 %v5224_v35  ;;  %v7040_v35 = vpop.f32.mrf.mxu1 }
 0x386   : > { %3738 = vmatmul.bf16.gmra.mxu3 %v5132_v42 }
 0x389   : > { %v2750_v18 = vpop.f32.mrf.mxu3 }
 0x38a   : > { %v7031_v50 = vadd.f32 %v2750_v18, %v6827_v13  ;;  %v7042_v13 = vpop.f32.mrf.mxu2 }
 0x38c   : > { %7527 = vst [vmem:[#allocation88_spill] sm:$0xff] %v7031_v50  ;;  %v5531_v50 = vld [vmem:[#allocation2 + $0xf8] sm:$0xf0] }
 0x391   : > { %v2752_v2 = vpop.f32.mrf.mxu3 }
 0x392   : > { %v7038_v6 = vadd.f32 %v2752_v2, %v6838_v44  ;;  %v7050_v44 = vpop.f32.mrf.mxu2  ;;  %v5155_v2 = vld [vmem:[#allocation2 + $0xf0] sm:$0xf] }
 0x393   : > { %v5156_v40 = vor.u32 %v5531_v50, %v5155_v2  ;;  %v5534_v50 = vld [vmem:[#allocation2 + $0x110] sm:$0xf0] }
 0x395   : > { %3956 = vmatmul.bf16.gmra.mxu1 %v5236_v46  ;;  %v7055_v46 = vpop.f32.mrf.mxu0 }
 0x396   : > { %3743 = vmatmul.bf16.gmra.mxu3 %v5144_v20 }
 0x399   : > { %v2755_v11 = vpop.f32.mrf.mxu3 }
 0x39a   : > { %v7045_v42 = vadd.f32 %v2755_v11, %v6848_v7  ;;  %v7057_v7 = vpop.f32.mrf.mxu1  ;;  %v3108_v11 = vadd.f32 %v6767_v25, %v3019_v56  ;;  %v2935_v25 = vadd.f32 %v6603_v51, %v6882_v5 }
 0x39d   : > { %v7067_v2 = vpop.f32.mrf.mxu0 }
 0x3a1   : > { %v2757_v18 = vpop.f32.mrf.mxu3 }
 0x3a2   : > { %v7048_v34 = vadd.f32 %v2757_v18, %v6859_v61  ;;  %v2932_v61 = vadd.f32 %v6592_v1, %v6874_v32  ;;  %v5167_v32 = vld [vmem:[#allocation2 + $0x108] sm:$0xf] }
 0x3a4   : > { %7528 = vst [vmem:[#allocation89_spill] sm:$0xff] %v7048_v34  ;;  %v7064_v34 = vpop.f32.mrf.mxu2  ;;  %v3021_v3 = vadd.f32 %v6733_v55, %v2932_v61  ;;  %v3024_v61 = vadd.f32 %v6741_v23, %v2935_v25 }
 0x3a6   : > { %3748 = vmatmul.bf16.gmra.mxu3 %v5156_v40  ;;  %v3110_v29 = vadd.f32 %v6779_v15, %v3021_v3  ;;  %v5168_v40 = vor.u32 %v5534_v50, %v5167_v32  ;;  %v7529_v15 = vld [vmem:[#allocation16_spill] sm:$0xff]  ;;  %v7530_v32 = vld [vmem:[#allocation33_spill] sm:$0xff] }
 0x3a7   : > { %v2937_v3 = vadd.f32 %v7529_v15, %v6887_v4  ;;  %v5179_v4 = vld [vmem:[#allocation2 + $0x120] sm:$0xf] }
 0x3a9   : > { %v3709_v21 = vpop.f32.mrf.mxu3  ;;  %v3026_v25 = vadd.f32 %v7530_v32, %v2937_v3 }
 0x3aa   : > { %v3799_v20 = vadd.f32 %v6892_v62, %v3709_v21  ;;  %v7072_v62 = vld [vmem:[%s7439_s4] ss:$0 sm:$0xff] }
 0x3ac   : > { %v3888_v18 = vadd.f32 %v7002_v8, %v3799_v20  ;;  %v7077_v8 = vpop.f32.mrf.mxu1  ;;  %v7082_v20 = vpop.f32.mrf.mxu2 }
 0x3ae   : > { %v3967_v52 = vadd.f32 %v3888_v18, %v3108_v11 }
 0x3b0   : > { %v4003_v56 = vadd.f32 %v7072_v62, %v3967_v52  ;;  %v3113_v52 = vadd.f32 %v6789_v58, %v3024_v61 }
 0x3b1   : > { %v3711_v10 = vpop.f32.mrf.mxu3 }
 0x3b2   : > { %v3801_v1 = vadd.f32 %v6902_v31, %v3711_v10  ;;  %v4035_v18 = vmax.f32 %v4003_v56, 0.0  ;;  %v7531_v56 = vld [vmem:[#allocation17_spill] sm:$0xff] }
 0x3b4   : > { %v3890_v55 = vadd.f32 %v7009_v17, %v3801_v1  ;;  %v7089_v17 = vpop.f32.mrf.mxu0  ;;  %v7093_v1 = vpop.f32.mrf.mxu1 }
 0x3b6   : > { %v3968_v21 = vadd.f32 %v3890_v55, %v3110_v29  ;;  %3753 = vmatmul.bf16.gmra.mxu3 %v5168_v40  ;;  %v7096_v29 = vpop.f32.mrf.mxu2 }
 0x3b8   : > { %v4004_v31 = vadd.f32 %v7072_v62, %v3968_v21  ;;  %v2940_v21 = vadd.f32 %v7531_v56, %v6895_v26  ;;  %v7536_v56 = vld [vmem:[#allocation36_spill] sm:$0xff] }
 0x3b9   : > { %v3714_v11 = vpop.f32.mrf.mxu3 }
 0x3ba   : > { %v4036_v51 = vmax.f32 %v4004_v31, 0.0  ;;  %v3804_v5 = vadd.f32 %v6910_v43, %v3714_v11  ;;  %v5537_v43 = vld [vmem:[#allocation2 + $0x128] sm:$0xf0] }
 0x3bb   : > { %v7532_v31 = vld [vmem:[#allocation43_spill] sm:$0xff]  ;;  %v5180_v61 = vor.u32 %v5537_v43, %v5179_v4 }
 0x3bc   : > { %v4067_v10 = vpack.c.bf16 %v4036_v51, %v4035_v18  ;;  %v3893_v50 = vadd.f32 %v7016_v60, %v3804_v5  ;;  %v3115_v58 = vadd.f32 %v7532_v31, %v3026_v25  ;;  %v7103_v11 = vpop.f32.mrf.mxu0  ;;  %v7533_v5 = vld [vmem:[#allocation35_spill] sm:$0xff]  ;;  %v7107_v3 = vpop.f32.mrf.mxu1 }
 0x3bd   : > { %v3029_v15 = vadd.f32 %v7533_v5, %v2940_v21 }
 0x3be   : > { %v3969_v23 = vadd.f32 %v3893_v50, %v3113_v52  ;;  %4159 = vmatmul.bf16.vlgmr.msra.gmra.mxu2 %v4067_v10  ;;  %v7111_v32 = vpop.f32.mrf.mxu2 }
 0x3c0   : > { %v4005_v51 = vadd.f32 %v7072_v62, %v3969_v23 }
 0x3c1   : > { %v3716_v55 = vpop.f32.mrf.mxu3 }
 0x3c2   : > { %v3806_v40 = vadd.f32 %v6918_v37, %v3716_v55  ;;  %v4037_v52 = vmax.f32 %v4005_v51, 0.0  ;;  %v7535_v55 = vld [vmem:[#allocation46_spill] sm:$0xff] }
 0x3c3   : > { %v3118_v43 = vadd.f32 %v7535_v55, %v3029_v15 }
 0x3c4   : > { %v3895_v60 = vadd.f32 %v7023_v63, %v3806_v40  ;;  %v7534_v63 = vld [vmem:[#allocation18_spill] sm:$0xff]  ;;  %v7118_v31 = vpop.f32.mrf.mxu0 }
 0x3c5   : > { %v2942_v25 = vadd.f32 %v7534_v63, %v6900_v49 }
 0x3c6   : > { %v3970_v18 = vadd.f32 %v3895_v60, %v3115_v58  ;;  %3758 = vmatmul.bf16.gmra.mxu3 %v5180_v61  ;;  %v7120_v60 = vpop.f32.mrf.mxu1 }
 0x3c7   : > { %v3031_v21 = vadd.f32 %v7536_v56, %v2942_v25 }
 0x3c8   : > { %v4006_v37 = vadd.f32 %v7072_v62, %v3970_v18  ;;  %v5540_v18 = vld [vmem:[#allocation2 + $0x140] sm:$0xf0] }
 0x3c9   : > { %v3719_v10 = vpop.f32.mrf.mxu3  ;;  %v3120_v49 = vadd.f32 %v6829_v39, %v3031_v21  ;;  %v7540_v21 = vld [vmem:[#allocation40_spill] sm:$0xff] }
 0x3ca   : > { %v3809_v26 = vadd.f32 %v6925_v22, %v3719_v10  ;;  %v4038_v50 = vmax.f32 %v4006_v37, 0.0  ;;  %v5191_v22 = vld [vmem:[#allocation2 + $0x138] sm:$0xf]  ;;  %v7537_v10 = vld [vmem:[#allocation19_spill] sm:$0xff] }
 0x3cb   : > { %v5192_v5 = vor.u32 %v5540_v18, %v5191_v22  ;;  %v5543_v18 = vld [vmem:[#allocation2 + $0x158] sm:$0xf0] }
 0x3cc   : > { %v3898_v23 = vadd.f32 %v7033_v57, %v3809_v26  ;;  %v4068_v40 = vpack.c.bf16 %v4038_v50, %v4037_v52  ;;  %v7125_v57 = vpop.f32.mrf.mxu2  ;;  %v2945_v26 = vadd.f32 %v7537_v10, %v6908_v27  ;;  %v7131_v63 = vpop.f32.mrf.mxu0 }
 0x3ce   : > { %v3971_v4 = vadd.f32 %v3898_v23, %v3118_v43  ;;  %4164 = vmatmul.bf16.gmra.mxu2 %v4068_v40  ;;  %v7539_v43 = vld [vmem:[#allocation20_spill] sm:$0xff]  ;;  %v7137_v40 = vpop.f32.mrf.mxu1 }
 0x3cf   : > { %v2947_v23 = vadd.f32 %v7539_v43, %v6915_v36 }
 0x3d0   : > { %v4007_v37 = vadd.f32 %v7072_v62, %v3971_v4 }
 0x3d1   : > { %v3721_v58 = vpop.f32.mrf.mxu3 }
 0x3d2   : > { %v3811_v61 = vadd.f32 %v6936_v41, %v3721_v58  ;;  %v4039_v39 = vmax.f32 %v4007_v37, 0.0  ;;  %v3036_v58 = vadd.f32 %v7540_v21, %v2947_v23 }
 0x3d4   : > { %v3900_v51 = vadd.f32 %v7040_v35, %v3811_v61  ;;  %v7538_v35 = vld [vmem:[#allocation38_spill] sm:$0xff]  ;;  %v7140_v27 = vpop.f32.mrf.mxu2  ;;  %v5203_v61 = vld [vmem:[#allocation2 + $0x150] sm:$0xf]  ;;  %v3125_v36 = vadd.f32 %v6854_v47, %v3036_v58 }
 0x3d5   : > { %v3034_v55 = vadd.f32 %v7538_v35, %v2945_v26 }
 0x3d6   : > { %v3972_v15 = vadd.f32 %v3900_v51, %v3120_v49  ;;  %3763 = vmatmul.bf16.gmra.mxu3 %v5192_v5  ;;  %v7145_v5 = vpop.f32.mrf.mxu0  ;;  %v7149_v37 = vpop.f32.mrf.mxu1 }
 0x3d7   : > { %v3123_v22 = vadd.f32 %v6843_v45, %v3034_v55  ;;  %v7541_v45 = vld [vmem:[#allocation21_spill] sm:$0xff]  ;;  %v7543_v55 = vld [vmem:[#allocation22_spill] sm:$0xff] }
 0x3d8   : > { %v4008_v52 = vadd.f32 %v7072_v62, %v3972_v15  ;;  %v2952_v43 = vadd.f32 %v7543_v55, %v6928_v12  ;;  %v7546_v55 = vld [vmem:[#allocation48_spill] sm:$0xff] }
 0x3d9   : > { %v3724_v50 = vpop.f32.mrf.mxu3 }
 0x3da   : > { %v3814_v41 = vadd.f32 %v7055_v46, %v3724_v50  ;;  %v4040_v25 = vmax.f32 %v4008_v52, 0.0  ;;  %v2950_v52 = vadd.f32 %v7541_v45, %v6921_v9  ;;  %v7544_v9 = vld [vmem:[#allocation45_spill] sm:$0xff]  ;;  %v5247_v45 = vld [vmem:[#allocation2 + $0x1a0] sm:$0xf] }
 0x3db   : > { %v3041_v21 = vadd.f32 %v7544_v9, %v2952_v43 }
 0x3dc   : > { %v4069_v4 = vpack.c.bf16 %v4040_v25, %v4039_v39  ;;  %v3903_v56 = vadd.f32 %v7057_v7, %v3814_v41  ;;  %v5204_v7 = vor.u32 %v5543_v18, %v5203_v61  ;;  %v7155_v41 = vpop.f32.mrf.mxu2  ;;  %v5546_v61 = vld [vmem:[#allocation2 + $0x170] sm:$0xf0] }
 0x3dd   : > { %v3130_v12 = vadd.f32 %v6997_v54, %v3041_v21 }
 0x3de   : > { %4169 = vmatmul.bf16.gmra.mxu2 %v4069_v4  ;;  %v3973_v49 = vadd.f32 %v3903_v56, %v3123_v22  ;;  %v7161_v4 = vpop.f32.mrf.mxu0  ;;  %v7165_v58 = vpop.f32.mrf.mxu1 }
 0x3e0   : > { %v4009_v26 = vadd.f32 %v7072_v62, %v3973_v49 }
 0x3e1   : > { %v3726_v46 = vpop.f32.mrf.mxu3 }
 0x3e2   : > { %v3816_v51 = vadd.f32 %v7067_v2, %v3726_v46  ;;  %v4041_v47 = vmax.f32 %v4009_v26, 0.0  ;;  %v5215_v46 = vld [vmem:[#allocation2 + $0x168] sm:$0xf] }
 0x3e3   : > { %v5241_v26 = vld [vmem:[#allocation2 + $0x1a4] sm:$0xf0] }
 0x3e4   : > { %v3905_v15 = vadd.f32 %v7077_v8, %v3816_v51  ;;  %v7542_v8 = vld [vmem:[#allocation42_spill] sm:$0xff]  ;;  %v7169_v51 = vpop.f32.mrf.mxu2 }
 0x3e5   : > { %v3039_v35 = vadd.f32 %v7542_v8, %v2950_v52  ;;  %v5553_v52 = vld [vmem:[#allocation2 + $0x1a8] sm:$0xf0] }
 0x3e6   : > { %v3974_v10 = vadd.f32 %v3905_v15, %v3125_v36  ;;  %3768 = vmatmul.bf16.gmra.mxu3 %v5204_v7  ;;  %v5248_v54 = vor.u32 %v5553_v52, %v5247_v45  ;;  %v7551_v52 = vld [vmem:[#allocation25_spill] sm:$0xff] }
 0x3e7   : > { %v3128_v22 = vadd.f32 %v6990_v0, %v3039_v35 }
 0x3e8   : > { %v4010_v50 = vadd.f32 %v7072_v62, %v3974_v10  ;;  %v5551_v10 = vld [vmem:[#allocation2 + $0x19c] sm:$0xf]  ;;  %3961 = vmatmul.bf16.gmra.mxu1 %v5248_v54 }
 0x3e9   : > { %v3729_v2 = vpop.f32.mrf.mxu3  ;;  %v5244_v0 = vor.u32 %v5551_v10, %v5241_v26 }
 0x3ea   : > { %v3819_v39 = vadd.f32 %v7089_v17, %v3729_v2  ;;  %v4042_v25 = vmax.f32 %v4010_v50, 0.0  ;;  %v7545_v50 = vld [vmem:[#allocation23_spill] sm:$0xff] }
 0x3eb   : > { %v2955_v2 = vadd.f32 %v7545_v50, %v6934_v28  ;;  %3872 = vmatmul.bf16.gmra.mxu0 %v5244_v0 }
 0x3ec   : > { %v4070_v23 = vpack.c.bf16 %v4042_v25, %v4041_v47  ;;  %v3908_v56 = vadd.f32 %v7093_v1, %v3819_v39  ;;  %v5216_v1 = vor.u32 %v5546_v61, %v5215_v46  ;;  %v7185_v21 = vpop.f32.mrf.mxu2 }
 0x3ed   : > { %v3044_v43 = vadd.f32 %v7546_v55, %v2955_v2 }
 0x3ee   : > { %4174 = vmatmul.bf16.gmra.mxu2 %v4070_v23  ;;  %v3975_v18 = vadd.f32 %v3908_v56, %v3128_v22  ;;  %v7547_v23 = vld [vmem:[#allocation67_spill] sm:$0xff]  ;;  %v7548_v56 = vld [vmem:[#allocation24_spill] sm:$0xff] }
 0x3ef   : > { %v2957_v9 = vadd.f32 %v7548_v56, %v7547_v23  ;;  %v3133_v61 = vadd.f32 %v7004_v30, %v3044_v43  ;;  %v7550_v30 = vld [vmem:[#allocation69_spill] sm:$0xff] }
 0x3f0   : > { %v4011_v7 = vadd.f32 %v7072_v62, %v3975_v18  ;;  %v2960_v50 = vadd.f32 %v7551_v52, %v7550_v30  ;;  %v5239_v56 = vld [vmem:[#allocation2 + $0x198] sm:$0xf] }
 0x3f1   : > { %v3731_v17 = vpop.f32.mrf.mxu3 }
 0x3f2   : > { %v3821_v49 = vadd.f32 %v7103_v11, %v3731_v17  ;;  %v7176_v11 = vpop.f32.mrf.mxu0  ;;  %v4043_v8 = vmax.f32 %v4011_v7, 0.0  ;;  %v7549_v17 = vld [vmem:[#allocation50_spill] sm:$0xff] }
 0x3f3   : > { %v3046_v46 = vadd.f32 %v7549_v17, %v2957_v9  ;;  %v5552_v9 = vld [vmem:[#allocation2 + $0x1a0] sm:$0xf0] }
 0x3f4   : > { %v3910_v36 = vadd.f32 %v7107_v3, %v3821_v49  ;;  %v7179_v3 = vpop.f32.mrf.mxu1  ;;  %v5549_v49 = vld [vmem:[#allocation2 + $0x188] sm:$0xf0]  ;;  %v7194_v45 = vpop.f32.mrf.mxu2 }
 0x3f5   : > { %v3135_v7 = vadd.f32 %v7011_v14, %v3046_v46  ;;  %v7552_v14 = vld [vmem:[#allocation52_spill] sm:$0xff] }
 0x3f6   : > { %v3976_v15 = vadd.f32 %v3910_v36, %v3130_v12  ;;  %3773 = vmatmul.bf16.gmra.mxu3 %v5216_v1 }
 0x3f8   : > { %v4012_v39 = vadd.f32 %v7072_v62, %v3976_v15 }
 0x3f9   : > { %v3734_v47 = vpop.f32.mrf.mxu3 }
 0x3fa   : > { %v3824_v25 = vadd.f32 %v7118_v31, %v3734_v47  ;;  %v4044_v35 = vmax.f32 %v4012_v39, 0.0  ;;  %v5227_v31 = vld [vmem:[#allocation2 + $0x180] sm:$0xf]  ;;  %v3835_v12 = vpop.f32.mrf.mxu0 }
 0x3fb   : > { %v5228_v26 = vor.u32 %v5549_v49, %v5227_v31  ;;  %v5240_v31 = vor.u32 %v5552_v9, %v5239_v56 }
 0x3fc   : > { %v4071_v28 = vpack.c.bf16 %v4044_v35, %v4043_v8  ;;  %v3913_v22 = vadd.f32 %v7120_v60, %v3824_v25  ;;  %v3924_v15 = vpop.f32.mrf.mxu1  ;;  %v3049_v25 = vadd.f32 %v7552_v14, %v2960_v50  ;;  %v7557_v50 = vld [vmem:[#allocation28_spill] sm:$0xff] }
 0x3fe   : > { %4179 = vmatmul.bf16.gmra.mxu2 %v4071_v28  ;;  %v3977_v36 = vadd.f32 %v3913_v22, %v3133_v61  ;;  %v7554_v28 = vld [vmem:[#allocation54_spill] sm:$0xff]  ;;  %v3138_v17 = vadd.f32 %v7021_v24, %v3049_v25 }
 0x400   : > { %v4013_v60 = vadd.f32 %v7072_v62, %v3977_v36 }
 0x401   : > { %v3736_v18 = vpop.f32.mrf.mxu3 }
 0x402   : > { %v3826_v1 = vadd.f32 %v7131_v63, %v3736_v18  ;;  %v4045_v54 = vmax.f32 %v4013_v60, 0.0  ;;  %v3838_v35 = vpop.f32.mrf.mxu0 }
 0x404   : > { %v3915_v10 = vadd.f32 %v7137_v40, %v3826_v1  ;;  %v7553_v40 = vld [vmem:[#allocation26_spill] sm:$0xff]  ;;  %v3927_v43 = vpop.f32.mrf.mxu1 }
 0x405   : > { %v2962_v8 = vadd.f32 %v7553_v40, %v6950_v33 }
 0x406   : > { %v3978_v0 = vadd.f32 %v3915_v10, %v3135_v7  ;;  %3778 = vmatmul.bf16.gmra.mxu3 %v5228_v26  ;;  %v7555_v7 = vld [vmem:[#allocation27_spill] sm:$0xff] }
 0x407   : > { %v3051_v22 = vadd.f32 %v7554_v28, %v2962_v8  ;;  %v2965_v10 = vadd.f32 %v7555_v7, %v6955_v38  ;;  %v7558_v38 = vld [vmem:[#allocation58_spill] sm:$0xff]  ;;  %v7562_v7 = vld [vmem:[#allocation61_spill] sm:$0xff] }
 0x408   : > { %v4014_v2 = vadd.f32 %v7072_v62, %v3978_v0 }
 0x409   : > { %v3739_v39 = vpop.f32.mrf.mxu3  ;;  %v3140_v33 = vadd.f32 %v7028_v59, %v3051_v22  ;;  %v7556_v59 = vld [vmem:[#allocation56_spill] sm:$0xff] }
 0x40a   : > { %v3829_v63 = vadd.f32 %v7145_v5, %v3739_v39  ;;  %v4046_v47 = vmax.f32 %v4014_v2, 0.0  ;;  %v7206_v5 = vpop.f32.mrf.mxu2  ;;  %v3840_v36 = vpop.f32.mrf.mxu0  ;;  %v2967_v2 = vadd.f32 %v7557_v50, %v6960_v53  ;;  %v7564_v50 = vld [vmem:[#allocation31_spill] sm:$0xff] }
 0x40c   : > { %v4072_v55 = vpack.c.bf16 %v4046_v47, %v4045_v54  ;;  %v3918_v23 = vadd.f32 %v7149_v37, %v3829_v63  ;;  %v3929_v24 = vpop.f32.mrf.mxu1  ;;  %v3056_v54 = vadd.f32 %v7558_v38, %v2967_v2 }
 0x40e   : > { %4184 = vmatmul.bf16.gmra.mxu2 %v4072_v55  ;;  %v3979_v61 = vadd.f32 %v3918_v23, %v3138_v17  ;;  %v3145_v55 = vadd.f32 %v7042_v13, %v3056_v54  ;;  %v7561_v13 = vld [vmem:[#allocation30_spill] sm:$0xff] }
 0x410   : > { %v4015_v1 = vadd.f32 %v7072_v62, %v3979_v61 }
 0x411   : > { %v3741_v46 = vpop.f32.mrf.mxu3 }
 0x412   : > { %v3831_v18 = vadd.f32 %v7161_v4, %v3741_v46  ;;  %v4047_v4 = vmax.f32 %v4015_v1, 0.0  ;;  %v7216_v52 = vpop.f32.mrf.mxu2  ;;  %v3843_v47 = vpop.f32.mrf.mxu0 }
 0x414   : > { %v3920_v49 = vadd.f32 %v7165_v58, %v3831_v18  ;;  %v3054_v58 = vadd.f32 %v7556_v59, %v2965_v10 }
 0x416   : > { %v3980_v37 = vadd.f32 %v3920_v49, %v3140_v33  ;;  %3783 = vmatmul.bf16.gmra.mxu3 %v5240_v31  ;;  %v3143_v14 = vadd.f32 %v7035_v19, %v3054_v58  ;;  %v7560_v31 = vld [vmem:[#allocation60_spill] sm:$0xff] }
 0x418   : > { %v4016_v26 = vadd.f32 %v7072_v62, %v3980_v37 }
 0x419   : > { %v3744_v0 = vpop.f32.mrf.mxu3 }
 0x41a   : > { %v3834_v60 = vadd.f32 %v7176_v11, %v3744_v0  ;;  %v4048_v30 = vmax.f32 %v4016_v26, 0.0  ;;  %v3932_v11 = vpop.f32.mrf.mxu1  ;;  %v7225_v56 = vpop.f32.mrf.mxu2 }
 0x41b   : > { %v3845_v46 = vpop.f32.mrf.mxu0 }
 0x41c   : > { %v4073_v39 = vpack.c.bf16 %v4048_v30, %v4047_v4  ;;  %v3923_v63 = vadd.f32 %v7179_v3, %v3834_v60  ;;  %v7559_v3 = vld [vmem:[#allocation29_spill] sm:$0xff] }
 0x41d   : > { %v2970_v28 = vadd.f32 %v7559_v3, %v6965_v16  ;;  %v7568_v3 = vld [vmem:[#allocation63_spill] sm:$0xff] }
 0x41e   : > { %4189 = vmatmul.bf16.gmra.mxu2 %v4073_v39  ;;  %v3981_v40 = vadd.f32 %v3923_v63, %v3143_v14  ;;  %v7565_v14 = vld [vmem:[#allocation62_spill] sm:$0xff] }
 0x420   : > { %v4017_v53 = vadd.f32 %v7072_v62, %v3981_v40  ;;  %v7566_v40 = vld [vmem:[#allocation76_spill] sm:$0xff] }
 0x421   : > { %v3746_v25 = vpop.f32.mrf.mxu3 }
 0x422   : > { %v3836_v8 = vadd.f32 %v3835_v12, %v3746_v25  ;;  %v4049_v61 = vmax.f32 %v4017_v53, 0.0  ;;  %v3059_v12 = vadd.f32 %v7560_v31, %v2970_v28  ;;  %v3934_v33 = vpop.f32.mrf.mxu1  ;;  %v7234_v1 = vpop.f32.mrf.mxu2  ;;  %v7252_v53 = vld [vmem:[%s7441_s6] ss:$0 sm:$0xff] }
 0x423   : > { %v3848_v60 = vpop.f32.mrf.mxu0 }
 0x424   : > { %v3925_v23 = vadd.f32 %v3924_v15, %v3836_v8  ;;  %v2972_v15 = vadd.f32 %v7561_v13, %v6970_v48  ;;  %v3148_v10 = vadd.f32 %v7050_v44, %v3059_v12 }
 0x426   : > { %v3982_v9 = vadd.f32 %v3925_v23, %v3145_v55  ;;  %v3061_v16 = vadd.f32 %v7562_v7, %v2972_v15  ;;  %v5588_v55 = vld [vmem:[%s6145_s23] sm:$0xff]  }
 0x428   : > { %v4018_v22 = vadd.f32 %v7072_v62, %v3982_v9  ;;  %v3150_v4 = vadd.f32 %v7064_v34, %v3061_v16  ;;  %v7567_v34 = vld [vmem:[#allocation32_spill] sm:$0xff]  ;;  %v7569_v16 = vld [vmem:[#allocation78_spill] sm:$0xff] }
 0x429   : > { %v3749_v17 = vpop.f32.mrf.mxu3 }
 0x42a   : > { %v3839_v19 = vadd.f32 %v3838_v35, %v3749_v17  ;;  %v4050_v18 = vmax.f32 %v4018_v22, 0.0  ;;  %v3937_v59 = vpop.f32.mrf.mxu1  ;;  %v7243_v63 = vpop.f32.mrf.mxu2  ;;  %v5589_v17 = vunpack.c.l.bf16 %v5588_v55 }
 0x42b   : > { %v3850_v23 = vpop.f32.mrf.mxu0 }
 0x42c   : > { %v4074_v49 = vpack.c.bf16 %v4050_v18, %v4049_v61  ;;  %v3928_v37 = vadd.f32 %v3927_v43, %v3839_v19  ;;  %v7563_v43 = vld [vmem:[#allocation74_spill] sm:$0xff] }
 0x42d   : > { %v2975_v2 = vadd.f32 %v7564_v50, %v7563_v43  ;;  %v7571_v43 = vld [vmem:[#allocation64_spill] sm:$0xff] }
 0x42e   : > { %4194 = vmatmul.bf16.gmra.mxu2 %v4074_v49  ;;  %v3983_v0 = vadd.f32 %v3928_v37, %v3148_v10  ;;  %v7570_v10 = vld [vmem:[#allocation34_spill] sm:$0xff] }
 0x42f   : > { %v3064_v25 = vadd.f32 %v7565_v14, %v2975_v2  ;;  %v7572_v2 = vld [vmem:[#allocation80_spill] sm:$0xff] }
 0x430   : > { %v4019_v58 = vadd.f32 %v7072_v62, %v3983_v0 }
 0x431   : > { %v3751_v26 = vpop.f32.mrf.mxu3  ;;  %v3153_v22 = vadd.f32 %v7082_v20, %v3064_v25 }
 0x432   : > { %v3841_v35 = vadd.f32 %v3840_v36, %v3751_v26  ;;  %v4051_v54 = vmax.f32 %v4019_v58, 0.0  ;;  %v3939_v28 = vpop.f32.mrf.mxu1  ;;  %v2980_v26 = vadd.f32 %v7570_v10, %v7569_v16  ;;  %v7577_v10 = vld [vmem:[#allocation66_spill] sm:$0xff] }
 0x433   : > { %v3853_v20 = vpop.f32.mrf.mxu0 }
 0x434   : > { %v3930_v30 = vadd.f32 %v3929_v24, %v3841_v35  ;;  %v2977_v24 = vadd.f32 %v7567_v34, %v7566_v40  ;;  %v3069_v50 = vadd.f32 %v7571_v43, %v2980_v26  ;;  %v7574_v40 = vld [vmem:[#allocation65_spill] sm:$0xff] }
 0x436   : > { %v3984_v48 = vadd.f32 %v3930_v30, %v3150_v4 }
 0x438   : > { %v4020_v39 = vadd.f32 %v7072_v62, %v3984_v48 }
 0x439   : > { %v3754_v44 = vpop.f32.mrf.mxu3 }
 0x43a   : > { %v3844_v38 = vadd.f32 %v3843_v47, %v3754_v44  ;;  %v4052_v36 = vmax.f32 %v4020_v39, 0.0  ;;  %v3066_v47 = vadd.f32 %v7568_v3, %v2977_v24  ;;  %v7573_v39 = vld [vmem:[#allocation37_spill] sm:$0xff]  ;;  %v3158_v24 = vadd.f32 %v7111_v32, %v3069_v50  ;;  %v7575_v32 = vld [vmem:[#allocation82_spill] sm:$0xff] }
 0x43b   : > { %v2982_v44 = vadd.f32 %v7573_v39, %v7572_v2  ;;  %v7580_v2 = vld [vmem:[#allocation68_spill] sm:$0xff] }
 0x43c   : > { %v4075_v8 = vpack.c.bf16 %v4052_v36, %v4051_v54  ;;  %v3933_v9 = vadd.f32 %v3932_v11, %v3844_v38  ;;  %v3155_v11 = vadd.f32 %v7096_v29, %v3066_v47  ;;  %v5651_v36 = vld [vmem:[%s6145_s23 + $0x8] sm:$0xff]  }
 0x43d   : > { %v3071_v34 = vadd.f32 %v7574_v40, %v2982_v44 }
 0x43e   : > { %4199 = vmatmul.bf16.gmra.mxu2 %v4075_v8  ;;  %v3985_v18 = vadd.f32 %v3933_v9, %v3153_v22  ;;  %v3855_v9 = vpop.f32.mrf.mxu0 }
 0x440   : > { %v4021_v7 = vadd.f32 %v7072_v62, %v3985_v18 }
 0x441   : > { %v3756_v19 = vpop.f32.mrf.mxu3  ;;  %v4160_v61 = vpop.f32.mrf.mxu2 }
 0x442   : > { %v3846_v31 = vadd.f32 %v3845_v46, %v3756_v19  ;;  %v4161_v12 = vadd.f32 %v7252_v53, %v4160_v61  ;;  %v5590_v46 = vunpack.c.h.bf16 %v5588_v55  ;;  %v4053_v48 = vmax.f32 %v4021_v7, 0.0 }
 0x443   : > { %v3160_v19 = vadd.f32 %v7125_v57, %v3071_v34 }
 0x444   : > { %v3935_v13 = vadd.f32 %v3934_v33, %v3846_v31  ;;  %v4304_v15 = vadd.f32 %v5589_v17, %v4161_v12  ;;  %v3942_v33 = vpop.f32.mrf.mxu1 }
 0x446   : > { %v3986_v49 = vadd.f32 %v3935_v13, %v3155_v11  ;;  %v4336_v37 = vmax.f32 %v4304_v15, 0.0  ;;  %v7576_v11 = vld [vmem:[#allocation39_spill] sm:$0xff]  ;;  %v5594_v15 = vunpack.c.h.bf16 %v5651_v36 }
 0x447   : > { %v2985_v13 = vadd.f32 %v7576_v11, %v7575_v32  ;;  %v7584_v11 = vld [vmem:[#allocation85_spill] sm:$0xff] }
 0x448   : > { %4368 = vst [vmem:[%s7262_s21] sm:$0xff] %v4336_v37  ;;  %v4022_v0 = vadd.f32 %v7072_v62, %v3986_v49 }
 0x449   : > { %v3759_v35 = vpop.f32.mrf.mxu3  ;;  %v4162_v29 = vpop.f32.mrf.mxu2  ;;  %v3074_v26 = vadd.f32 %v7577_v10, %v2985_v13  ;;  %v7585_v13 = vld [vmem:[#allocation47_spill] sm:$0xff] }
 0x44a   : > { %v3849_v4 = vadd.f32 %v3848_v60, %v3759_v35  ;;  %v4163_v30 = vadd.f32 %v7252_v53, %v4162_v29  ;;  %v4054_v58 = vmax.f32 %v4022_v0, 0.0  ;;  %v5593_v60 = vunpack.c.l.bf16 %v5651_v36  ;;  %v7578_v0 = vld [vmem:[#allocation83_spill] sm:$0xff]  ;;  %v7579_v35 = vld [vmem:[#allocation41_spill] sm:$0xff] }
 0x44b   : > { %v2987_v29 = vadd.f32 %v7579_v35, %v7578_v0  ;;  %v3163_v39 = vadd.f32 %v7140_v27, %v3074_v26  ;;  %v7582_v27 = vld [vmem:[#allocation44_spill] sm:$0xff] }
 0x44c   : > { %v4305_v38 = vadd.f32 %v5590_v46, %v4163_v30  ;;  %v4076_v54 = vpack.c.bf16 %v4054_v58, %v4053_v48  ;;  %v3938_v14 = vadd.f32 %v3937_v59, %v3849_v4  ;;  %v3944_v17 = vpop.f32.mrf.mxu1  ;;  %v3858_v46 = vpop.f32.mrf.mxu0  ;;  %v5652_v48 = vld [vmem:[%s6145_s23 + $0x10] sm:$0xff]  }
 0x44d   : > { %v5597_v44 = vunpack.c.l.bf16 %v5652_v48 }
 0x44e   : > { %v4337_v25 = vmax.f32 %v4305_v38, 0.0  ;;  %4204 = vmatmul.bf16.gmra.mxu2 %v4076_v54  ;;  %v3987_v3 = vadd.f32 %v3938_v14, %v3158_v24 }
 0x450   : > { %4369 = vst [vmem:[%s7262_s21 + $0x8] sm:$0xff] %v4337_v25  ;;  %v4023_v12 = vadd.f32 %v7072_v62, %v3987_v3  ;;  %v7581_v3 = vld [vmem:[#allocation84_spill] sm:$0xff] }
 0x451   : > { %v3761_v8 = vpop.f32.mrf.mxu3  ;;  %v4165_v55 = vpop.f32.mrf.mxu2 }
 0x452   : > { %v3851_v47 = vadd.f32 %v3850_v23, %v3761_v8  ;;  %v4166_v22 = vadd.f32 %v7252_v53, %v4165_v55 }
 0x454   : > { %v3940_v59 = vadd.f32 %v3939_v28, %v3851_v47  ;;  %v4306_v61 = vadd.f32 %v5593_v60, %v4166_v22  ;;  %v4055_v28 = vmax.f32 %v4023_v12, 0.0  ;;  %v3947_v58 = vpop.f32.mrf.mxu1  ;;  %v2990_v47 = vadd.f32 %v7582_v27, %v7581_v3  ;;  %v7583_v12 = vld [vmem:[#allocation70_spill] sm:$0xff]  ;;  %v7591_v3 = vld [vmem:[#allocation51_spill] sm:$0xff] }
 0x456   : > { %v3988_v18 = vadd.f32 %v3940_v59, %v3160_v19  ;;  %v4338_v31 = vmax.f32 %v4306_v61, 0.0  ;;  %v5598_v19 = vunpack.c.h.bf16 %v5652_v48  ;;  %v3079_v32 = vadd.f32 %v7583_v12, %v2990_v47 }
 0x458   : > { %4370 = vst [vmem:[%s7262_s21 + $0x10] sm:$0xff] %v4338_v31  ;;  %v4024_v49 = vadd.f32 %v7072_v62, %v3988_v18  ;;  %v3168_v26 = vadd.f32 %v7169_v51, %v3079_v32  ;;  %v7588_v51 = vld [vmem:[#allocation49_spill] sm:$0xff] }
 0x459   : > { %v3764_v23 = vpop.f32.mrf.mxu3  ;;  %v4167_v37 = vpop.f32.mrf.mxu2 }
 0x45a   : > { %v3854_v7 = vadd.f32 %v3853_v20, %v3764_v23  ;;  %v4168_v57 = vadd.f32 %v7252_v53, %v4167_v37  ;;  %v4056_v16 = vmax.f32 %v4024_v49, 0.0  ;;  %v3076_v20 = vadd.f32 %v7580_v2, %v2987_v29  ;;  %v5653_v37 = vld [vmem:[%s6145_s23 + $0x18] sm:$0xff]  }
 0x45c   : > { %v4307_v4 = vadd.f32 %v5594_v15, %v4168_v57  ;;  %v4077_v30 = vpack.c.bf16 %v4056_v16, %v4055_v28  ;;  %v3943_v43 = vadd.f32 %v3942_v33, %v3854_v7  ;;  %v3165_v40 = vadd.f32 %v7155_v41, %v3076_v20  ;;  %v3860_v33 = vpop.f32.mrf.mxu0  ;;  %v3949_v22 = vpop.f32.mrf.mxu1  ;;  %v7586_v16 = vld [vmem:[#allocation71_spill] sm:$0xff] }
 0x45d   : > { %v2992_v15 = vadd.f32 %v7585_v13, %v7584_v11 }
 0x45e   : > { %v4339_v50 = vmax.f32 %v4307_v4, 0.0  ;;  %4209 = vmatmul.bf16.gmra.mxu2 %v4077_v30  ;;  %v3989_v36 = vadd.f32 %v3943_v43, %v3163_v39 }
 0x45f   : > { %v3081_v10 = vadd.f32 %v7586_v16, %v2992_v15 }
 0x460   : > { %4371 = vst [vmem:[%s7262_s21 + $0x18] sm:$0xff] %v4339_v50  ;;  %v4025_v55 = vadd.f32 %v7072_v62, %v3989_v36 }
 0x461   : > { %v3766_v38 = vpop.f32.mrf.mxu3  ;;  %v4170_v54 = vpop.f32.mrf.mxu2  ;;  %v3170_v43 = vadd.f32 %v7185_v21, %v3081_v10  ;;  %v7593_v10 = vld [vmem:[#allocation88_spill] sm:$0xff] }
 0x462   : > { %v3856_v14 = vadd.f32 %v3855_v9, %v3766_v38  ;;  %v4171_v25 = vadd.f32 %v7252_v53, %v4170_v54  ;;  %v4057_v18 = vmax.f32 %v4025_v55, 0.0  ;;  %v5602_v54 = vunpack.c.h.bf16 %v5653_v37  ;;  %v7590_v55 = vld [vmem:[#allocation87_spill] sm:$0xff] }
 0x463   : > { %v2997_v27 = vadd.f32 %v7591_v3, %v7590_v55 }
 0x464   : > { %v3945_v34 = vadd.f32 %v3944_v17, %v3856_v14  ;;  %v4308_v24 = vadd.f32 %v5597_v44, %v4171_v25  ;;  %v3863_v28 = vpop.f32.mrf.mxu0  ;;  %v3952_v29 = vpop.f32.mrf.mxu1  ;;  %v7587_v44 = vld [vmem:[#allocation86_spill] sm:$0xff] }
 0x465   : > { %v2995_v38 = vadd.f32 %v7588_v51, %v7587_v44  ;;  %v5655_v51 = vld [vmem:[%s6145_s23 + $0x28] sm:$0xff]  }
 0x466   : > { %v3990_v60 = vadd.f32 %v3945_v34, %v3165_v40  ;;  %v4340_v8 = vmax.f32 %v4308_v24, 0.0 }
 0x468   : > { %4372 = vst [vmem:[%s7262_s21 + $0x20] sm:$0xff] %v4340_v8  ;;  %v4026_v9 = vadd.f32 %v7072_v62, %v3990_v60  ;;  %v7589_v60 = vld [vmem:[#allocation72_spill] sm:$0xff] }
 0x469   : > { %v3769_v59 = vpop.f32.mrf.mxu3  ;;  %v4172_v61 = vpop.f32.mrf.mxu2  ;;  %v3084_v8 = vadd.f32 %v7589_v60, %v2995_v38 }
 0x46a   : > { %v3859_v41 = vadd.f32 %v3858_v46, %v3769_v59  ;;  %v4173_v17 = vadd.f32 %v7252_v53, %v4172_v61  ;;  %v4058_v31 = vmax.f32 %v4026_v9, 0.0  ;;  %v5601_v46 = vunpack.c.l.bf16 %v5653_v37  ;;  %v5654_v9 = vld [vmem:[%s6145_s23 + $0x20] sm:$0xff]  }
 0x46c   : > { %v4309_v49 = vadd.f32 %v5598_v19, %v4173_v17  ;;  %v4078_v23 = vpack.c.bf16 %v4058_v31, %v4057_v18  ;;  %v3948_v7 = vadd.f32 %v3947_v58, %v3859_v41  ;;  %v3865_v40 = vpop.f32.mrf.mxu0  ;;  %v3954_v47 = vpop.f32.mrf.mxu1  ;;  %v7592_v41 = vld [vmem:[#allocation73_spill] sm:$0xff]  ;;  %v3173_v18 = vadd.f32 %v7194_v45, %v3084_v8 }
 0x46d   : > { %v3086_v17 = vadd.f32 %v7592_v41, %v2997_v27  ;;  %v5605_v31 = vunpack.c.l.bf16 %v5654_v9  ;;  %v5610_v41 = vunpack.c.h.bf16 %v5655_v51 }
 0x46e   : > { %v4341_v57 = vmax.f32 %v4309_v49, 0.0  ;;  %4214 = vmatmul.bf16.gmra.mxu2 %v4078_v23  ;;  %v3991_v4 = vadd.f32 %v3948_v7, %v3168_v26  ;;  %v7594_v26 = vld [vmem:[#allocation53_spill] sm:$0xff] }
 0x46f   : > { %v3175_v23 = vadd.f32 %v7206_v5, %v3086_v17 }
 0x470   : > { %4373 = vst [vmem:[%s7262_s21 + $0x28] sm:$0xff] %v4341_v57  ;;  %v4027_v39 = vadd.f32 %v7072_v62, %v3991_v4 }
 0x471   : > { %v3771_v0 = vpop.f32.mrf.mxu3  ;;  %v4175_v35 = vpop.f32.mrf.mxu2 }
 0x472   : > { %v3861_v30 = vadd.f32 %v3860_v33, %v3771_v0  ;;  %v4176_v48 = vadd.f32 %v7252_v53, %v4175_v35  ;;  %v4059_v24 = vmax.f32 %v4027_v39, 0.0  ;;  %v5606_v0 = vunpack.c.h.bf16 %v5654_v9 }
 0x474   : > { %v3950_v58 = vadd.f32 %v3949_v22, %v3861_v30  ;;  %v4310_v50 = vadd.f32 %v5601_v46, %v4176_v48  ;;  %v3868_v49 = vpop.f32.mrf.mxu0  ;;  %v3957_v57 = vpop.f32.mrf.mxu1  ;;  %v3000_v46 = vadd.f32 %v7594_v26, %v7593_v10 }
 0x476   : > { %v3992_v2 = vadd.f32 %v3950_v58, %v3170_v43  ;;  %v4342_v20 = vmax.f32 %v4310_v50, 0.0  ;;  %v7595_v58 = vld [vmem:[#allocation75_spill] sm:$0xff] }
 0x477   : > { %v3089_v50 = vadd.f32 %v7595_v58, %v3000_v46 }
 0x478   : > { %4374 = vst [vmem:[%s7262_s21 + $0x30] sm:$0xff] %v4342_v20  ;;  %v4028_v36 = vadd.f32 %v7072_v62, %v3992_v2  ;;  %v7596_v2 = vld [vmem:[#allocation55_spill] sm:$0xff] }
 0x479   : > { %v3774_v14 = vpop.f32.mrf.mxu3  ;;  %v4177_v25 = vpop.f32.mrf.mxu2  ;;  %v3002_v20 = vadd.f32 %v7596_v2, %v7038_v6 }
 0x47a   : > { %v3864_v34 = vadd.f32 %v3863_v28, %v3774_v14  ;;  %v4178_v21 = vadd.f32 %v7252_v53, %v4177_v25  ;;  %v4060_v33 = vmax.f32 %v4028_v36, 0.0  ;;  %v7597_v14 = vld [vmem:[#allocation77_spill] sm:$0xff] }
 0x47b   : > { %v3091_v25 = vadd.f32 %v7597_v14, %v3002_v20 }
 0x47c   : > { %v4311_v22 = vadd.f32 %v5602_v54, %v4178_v21  ;;  %v4079_v19 = vpack.c.bf16 %v4060_v33, %v4059_v24  ;;  %v3953_v59 = vadd.f32 %v3952_v29, %v3864_v34  ;;  %v3870_v38 = vpop.f32.mrf.mxu0  ;;  %v3178_v34 = vadd.f32 %v7216_v52, %v3089_v50  ;;  %v7598_v52 = vld [vmem:[#allocation57_spill] sm:$0xff] }
 0x47d   : > { %v5609_v21 = vunpack.c.l.bf16 %v5655_v51  ;;  %v3180_v55 = vadd.f32 %v7225_v56, %v3091_v25  ;;  %v5657_v25 = vld [vmem:[%s6145_s23 + $0x38] sm:$0xff]  }
 0x47e   : > { %v4343_v61 = vmax.f32 %v4311_v22, 0.0  ;;  %4219 = vmatmul.bf16.gmra.mxu2 %v4079_v19  ;;  %v3993_v11 = vadd.f32 %v3953_v59, %v3173_v18  ;;  %v3005_v59 = vadd.f32 %v7598_v52, %v7045_v42 }
 0x480   : > { %4375 = vst [vmem:[%s7262_s21 + $0x38] sm:$0xff] %v4343_v61  ;;  %v4029_v45 = vadd.f32 %v7072_v62, %v3993_v11 }
 0x481   : > { %v3776_v12 = vpop.f32.mrf.mxu3  ;;  %v4180_v32 = vpop.f32.mrf.mxu2 }
 0x482   : > { %v3866_v13 = vadd.f32 %v3865_v40, %v3776_v12  ;;  %v4181_v15 = vadd.f32 %v7252_v53, %v4180_v32  ;;  %v4061_v48 = vmax.f32 %v4029_v45, 0.0  ;;  %v3959_v40 = vpop.f32.mrf.mxu1  ;;  %v7602_v45 = vld [vmem:[#allocation81_spill] sm:$0xff] }
 0x484   : > { %v3955_v37 = vadd.f32 %v3954_v47, %v3866_v13  ;;  %v4312_v7 = vadd.f32 %v5605_v31, %v4181_v15  ;;  %v3873_v22 = vpop.f32.mrf.mxu0  ;;  %v7599_v13 = vld [vmem:[#allocation79_spill] sm:$0xff] }
 0x485   : > { %v3094_v15 = vadd.f32 %v7599_v13, %v3005_v59 }
 0x486   : > { %v3994_v28 = vadd.f32 %v3955_v37, %v3175_v23  ;;  %v4344_v16 = vmax.f32 %v4312_v7, 0.0  ;;  %v7601_v23 = vld [vmem:[#allocation59_spill] sm:$0xff] }
 0x487   : > { %v3183_v26 = vadd.f32 %v7234_v1, %v3094_v15 }
 0x488   : > { %4376 = vst [vmem:[%s7262_s21 + $0x40] sm:$0xff] %v4344_v16  ;;  %v4030_v35 = vadd.f32 %v7072_v62, %v3994_v28 }
 0x489   : > { %v3779_v29 = vpop.f32.mrf.mxu3  ;;  %v4182_v4 = vpop.f32.mrf.mxu2 }
 0x48a   : > { %v3869_v30 = vadd.f32 %v3868_v49, %v3779_v29  ;;  %v4183_v5 = vadd.f32 %v7252_v53, %v4182_v4  ;;  %v4062_v43 = vmax.f32 %v4030_v35, 0.0  ;;  %v3962_v61 = vpop.f32.mrf.mxu1  ;;  %v7600_v49 = vld [vmem:[#allocation89_spill] sm:$0xff] }
 0x48b   : > { %v3007_v37 = vadd.f32 %v7601_v23, %v7600_v49 }
 0x48c   : > { %v4313_v39 = vadd.f32 %v5606_v0, %v4183_v5  ;;  %v4080_v44 = vpack.c.bf16 %v4062_v43, %v4061_v48  ;;  %v3958_v54 = vadd.f32 %v3957_v57, %v3869_v30  ;;  %v5656_v57 = vld [vmem:[%s6145_s23 + $0x30] sm:$0xff]   ;;  %v3875_v46 = vpop.f32.mrf.mxu0 }
 0x48d   : > { %v3096_v10 = vadd.f32 %v7602_v45, %v3007_v37  ;;  %v5613_v0 = vunpack.c.l.bf16 %v5656_v57 }
 0x48e   : > { %v4345_v36 = vmax.f32 %v4313_v39, 0.0  ;;  %4224 = vmatmul.bf16.gmra.mxu2 %v4080_v44  ;;  %v3995_v60 = vadd.f32 %v3958_v54, %v3178_v34  ;;  %v5614_v39 = vunpack.c.h.bf16 %v5656_v57  ;;  %v5617_v34 = vunpack.c.l.bf16 %v5657_v25 }
 0x48f   : > { %v3185_v43 = vadd.f32 %v7243_v63, %v3096_v10 }
 0x490   : > { %4377 = vst [vmem:[%s7262_s21 + $0x48] sm:$0xff] %v4345_v36  ;;  %v4031_v9 = vadd.f32 %v7072_v62, %v3995_v60  ;;  %v5618_v60 = vunpack.c.h.bf16 %v5657_v25 }
 0x491   : > { %v3781_v24 = vpop.f32.mrf.mxu3  ;;  %v4185_v33 = vpop.f32.mrf.mxu2 }
 0x492   : > { %v3871_v8 = vadd.f32 %v3870_v38, %v3781_v24  ;;  %v4186_v6 = vadd.f32 %v7252_v53, %v4185_v33  ;;  %v4063_v32 = vmax.f32 %v4031_v9, 0.0  ;;  %v3964_v48 = vpop.f32.mrf.mxu1 }
 0x494   : > { %v3960_v3 = vadd.f32 %v3959_v40, %v3871_v8  ;;  %v4314_v27 = vadd.f32 %v5609_v21, %v4186_v6 }
 0x496   : > { %v3996_v47 = vadd.f32 %v3960_v3, %v3180_v55  ;;  %v4346_v19 = vmax.f32 %v4314_v27, 0.0  ;;  %v5658_v3 = vld [vmem:[%s6145_s23 + $0x40] sm:$0xff]  }
 0x497   : > { %v5622_v59 = vunpack.c.h.bf16 %v5658_v3 }
 0x498   : > { %4378 = vst [vmem:[%s7262_s21 + $0x50] sm:$0xff] %v4346_v19  ;;  %v4032_v17 = vadd.f32 %v7072_v62, %v3996_v47  ;;  %v5621_v47 = vunpack.c.l.bf16 %v5658_v3 }
 0x499   : > { %v3784_v18 = vpop.f32.mrf.mxu3  ;;  %v4187_v31 = vpop.f32.mrf.mxu2 }
 0x49a   : > { %v3874_v56 = vadd.f32 %v3873_v22, %v3784_v18  ;;  %v4188_v12 = vadd.f32 %v7252_v53, %v4187_v31  ;;  %v4064_v11 = vmax.f32 %v4032_v17, 0.0  ;;  %v5659_v18 = vld [vmem:[%s6145_s23 + $0x48] sm:$0xff]  }
 0x49b   : > { %v5626_v15 = vunpack.c.h.bf16 %v5659_v18 }
 0x49c   : > { %v4315_v7 = vadd.f32 %v5610_v41, %v4188_v12  ;;  %v4081_v42 = vpack.c.bf16 %v4064_v11, %v4063_v32  ;;  %v3963_v28 = vadd.f32 %v3962_v61, %v3874_v56  ;;  %v5625_v56 = vunpack.c.l.bf16 %v5659_v18 }
 0x49e   : > { %v4347_v16 = vmax.f32 %v4315_v7, 0.0  ;;  %4229 = vmatmul.bf16.gmra.mxu2 %v4081_v42  ;;  %v3997_v4 = vadd.f32 %v3963_v28, %v3183_v26  ;;  %v5660_v7 = vld [vmem:[%s6145_s23 + $0x50] sm:$0xff]  }
 0x49f   : > { %v5629_v57 = vunpack.c.l.bf16 %v5660_v7  ;;  %v5630_v26 = vunpack.c.h.bf16 %v5660_v7 }
 0x4a0   : > { %4379 = vst [vmem:[%s7262_s21 + $0x58] sm:$0xff] %v4347_v16  ;;  %v4033_v1 = vadd.f32 %v7072_v62, %v3997_v4 }
 0x4a1   : > { %v3786_v35 = vpop.f32.mrf.mxu3  ;;  %v4190_v29 = vpop.f32.mrf.mxu2 }
 0x4a2   : > { %v3876_v30 = vadd.f32 %v3875_v46, %v3786_v35  ;;  %v4191_v5 = vadd.f32 %v7252_v53, %v4190_v29  ;;  %v4065_v54 = vmax.f32 %v4033_v1, 0.0  ;;  %v5661_v29 = vld [vmem:[%s6145_s23 + $0x58] sm:$0xff]  }
 0x4a4   : > { %v3965_v58 = vadd.f32 %v3964_v48, %v3876_v30  ;;  %v4316_v50 = vadd.f32 %v5613_v0, %v4191_v5  ;;  %v5633_v30 = vunpack.c.l.bf16 %v5661_v29 }
 0x4a6   : > { %v3998_v2 = vadd.f32 %v3965_v58, %v3185_v43  ;;  %v4348_v20 = vmax.f32 %v4316_v50, 0.0  ;;  %v5634_v50 = vunpack.c.h.bf16 %v5661_v29 }
 0x4a8   : > { %4380 = vst [vmem:[%s7262_s21 + $0x60] sm:$0xff] %v4348_v20  ;;  %v4034_v44 = vadd.f32 %v7072_v62, %v3998_v2 }
 0x4a9   : > { %v4192_v51 = vpop.f32.mrf.mxu2 }
 0x4aa   : > { %v4193_v38 = vadd.f32 %v7252_v53, %v4192_v51  ;;  %v4066_v36 = vmax.f32 %v4034_v44, 0.0 }
 0x4ac   : > { %v4317_v14 = vadd.f32 %v5614_v39, %v4193_v38  ;;  %v4082_v63 = vpack.c.bf16 %v4066_v36, %v4065_v54  ;;  %v5662_v39 = vld [vmem:[%s6145_s23 + $0x60] sm:$0xff]  }
 0x4ad   : > { %v5637_v51 = vunpack.c.l.bf16 %v5662_v39 }
 0x4ae   : > { %v4349_v40 = vmax.f32 %v4317_v14, 0.0  ;;  %4234 = vmatmul.bf16.gmra.mxu2 %v4082_v63  ;;  %v5638_v63 = vunpack.c.h.bf16 %v5662_v39 }
 0x4b0   : > { %4381 = vst [vmem:[%s7262_s21 + $0x68] sm:$0xff] %v4349_v40 }
 0x4b1   : > { %v4195_v21 = vpop.f32.mrf.mxu2 }
 0x4b2   : > { %v4196_v24 = vadd.f32 %v7252_v53, %v4195_v21  ;;  %v5663_v21 = vld [vmem:[%s6145_s23 + $0x68] sm:$0xff]  }
 0x4b4   : > { %v4318_v62 = vadd.f32 %v5617_v34, %v4196_v24 }
 0x4b6   : > { %v4350_v33 = vmax.f32 %v4318_v62, 0.0  ;;  %v5641_v62 = vunpack.c.l.bf16 %v5663_v21 }
 0x4b8   : > { %4382 = vst [vmem:[%s7262_s21 + $0x70] sm:$0xff] %v4350_v33 }
 0x4b9   : > { %v4197_v8 = vpop.f32.mrf.mxu2 }
 0x4ba   : > { %v4198_v6 = vadd.f32 %v7252_v53, %v4197_v8 }
 0x4bc   : > { %v4319_v55 = vadd.f32 %v5618_v60, %v4198_v6 }
 0x4be   : > { %v4351_v27 = vmax.f32 %v4319_v55, 0.0  ;;  %v5642_v55 = vunpack.c.h.bf16 %v5663_v21 }
 0x4c0   : > { %4383 = vst [vmem:[%s7262_s21 + $0x78] sm:$0xff] %v4351_v27 }
 0x4c1   : > { %v4200_v22 = vpop.f32.mrf.mxu2 }
 0x4c2   : > { %v4201_v19 = vadd.f32 %v7252_v53, %v4200_v22  ;;  %v5664_v22 = vld [vmem:[%s6145_s23 + $0x70] sm:$0xff]  }
 0x4c4   : > { %v4320_v9 = vadd.f32 %v5621_v47, %v4201_v19 }
 0x4c6   : > { %v4352_v52 = vmax.f32 %v4320_v9, 0.0  ;;  %v5645_v9 = vunpack.c.l.bf16 %v5664_v22 }
 0x4c8   : > { %4384 = vst [vmem:[%s7262_s21 + $0x80] sm:$0xff] %v4352_v52 }
 0x4c9   : > { %v4202_v61 = vpop.f32.mrf.mxu2 }
 0x4ca   : > { %v4203_v41 = vadd.f32 %v7252_v53, %v4202_v61 }
 0x4cc   : > { %v4321_v17 = vadd.f32 %v5622_v59, %v4203_v41 }
 0x4ce   : > { %v4353_v31 = vmax.f32 %v4321_v17, 0.0  ;;  %v5646_v17 = vunpack.c.h.bf16 %v5664_v22 }
 0x4d0   : > { %4385 = vst [vmem:[%s7262_s21 + $0x88] sm:$0xff] %v4353_v31 }
 0x4d1   : > { %v4205_v12 = vpop.f32.mrf.mxu2 }
 0x4d2   : > { %v4206_v32 = vadd.f32 %v7252_v53, %v4205_v12  ;;  %v5665_v12 = vld [vmem:[%s6145_s23 + $0x78] sm:$0xff]   ;;  %s4413_s23 = sshll.u32 %s7262_s21, 4  ;;  %s4414_s23 = int_to_ptr.vmem [resolvable:$true] %s4413_s23 }
 0x4d4   : > { %v4322_v11 = vadd.f32 %v5625_v56, %v4206_v32 }
 0x4d6   : > { %v4354_v13 = vmax.f32 %v4322_v11, 0.0  ;;  %v5649_v11 = vunpack.c.l.bf16 %v5665_v12 }
 0x4d8   : > { %4386 = vst [vmem:[%s7262_s21 + $0x90] sm:$0xff] %v4354_v13 }
 0x4d9   : > { %v4207_v49 = vpop.f32.mrf.mxu2 }
 0x4da   : > { %v4208_v23 = vadd.f32 %v7252_v53, %v4207_v49 }
 0x4dc   : > { %v4323_v37 = vadd.f32 %v5626_v15, %v4208_v23 }
 0x4de   : > { %v4355_v42 = vmax.f32 %v4323_v37, 0.0  ;;  %v5650_v37 = vunpack.c.h.bf16 %v5665_v12 }
 0x4e0   : > { %4387 = vst [vmem:[%s7262_s21 + $0x98] sm:$0xff] %v4355_v42 }
 0x4e1   : > { %v4210_v28 = vpop.f32.mrf.mxu2 }
 0x4e2   : > { %v4211_v16 = vadd.f32 %v7252_v53, %v4210_v28 }
 0x4e4   : > { %v4324_v45 = vadd.f32 %v5629_v57, %v4211_v16 }
 0x4e6   : > { %v4356_v10 = vmax.f32 %v4324_v45, 0.0 }
 0x4e8   : > { %4388 = vst [vmem:[%s7262_s21 + $0xa0] sm:$0xff] %v4356_v10 }
 0x4e9   : > { %v4212_v46 = vpop.f32.mrf.mxu2 }
 0x4ea   : > { %v4213_v0 = vadd.f32 %v7252_v53, %v4212_v46 }
 0x4ec   : > { %v4325_v35 = vadd.f32 %v5630_v26, %v4213_v0 }
 0x4ee   : > { %v4357_v4 = vmax.f32 %v4325_v35, 0.0 }
 0x4f0   : > { %4389 = vst [vmem:[%s7262_s21 + $0xa8] sm:$0xff] %v4357_v4 }
 0x4f1   : > { %v4215_v5 = vpop.f32.mrf.mxu2 }
 0x4f2   : > { %v4216_v48 = vadd.f32 %v7252_v53, %v4215_v5 }
 0x4f4   : > { %v4326_v43 = vadd.f32 %v5633_v30, %v4216_v48 }
 0x4f6   : > { %v4358_v58 = vmax.f32 %v4326_v43, 0.0 }
 0x4f8   : > { %4390 = vst [vmem:[%s7262_s21 + $0xb0] sm:$0xff] %v4358_v58 }
 0x4f9   : > { %v4217_v2 = vpop.f32.mrf.mxu2 }
 0x4fa   : > { %v4218_v20 = vadd.f32 %v7252_v53, %v4217_v2 }
 0x4fc   : > { %v4327_v1 = vadd.f32 %v5634_v50, %v4218_v20 }
 0x4fe   : > { %v4359_v44 = vmax.f32 %v4327_v1, 0.0 }
 0x500   : > { %4391 = vst [vmem:[%s7262_s21 + $0xb8] sm:$0xff] %v4359_v44 }
 0x501   : > { %v4220_v38 = vpop.f32.mrf.mxu2 }
 0x502   : > { %v4221_v54 = vadd.f32 %v7252_v53, %v4220_v38 }
 0x504   : > { %v4328_v36 = vadd.f32 %v5637_v51, %v4221_v54 }
 0x506   : > { %v4360_v14 = vmax.f32 %v4328_v36, 0.0 }
 0x508   : > { %4392 = vst [vmem:[%s7262_s21 + $0xc0] sm:$0xff] %v4360_v14 }
 0x509   : > { %v4222_v25 = vpop.f32.mrf.mxu2 }
 0x50a   : > { %v4223_v40 = vadd.f32 %v7252_v53, %v4222_v25 }
 0x50c   : > { %v4329_v34 = vadd.f32 %v5638_v63, %v4223_v40 }
 0x50e   : > { %v4361_v24 = vmax.f32 %v4329_v34, 0.0 }
 0x510   : > { %4393 = vst [vmem:[%s7262_s21 + $0xc8] sm:$0xff] %v4361_v24 }
 0x511   : > { %v4225_v33 = vpop.f32.mrf.mxu2 }
 0x512   : > { %v4226_v60 = vadd.f32 %v7252_v53, %v4225_v33 }
 0x514   : > { %v4330_v8 = vadd.f32 %v5641_v62, %v4226_v60 }
 0x516   : > { %v4362_v6 = vmax.f32 %v4330_v8, 0.0 }
 0x518   : > { %4394 = vst [vmem:[%s7262_s21 + $0xd0] sm:$0xff] %v4362_v6 }
 0x519   : > { %v4227_v3 = vpop.f32.mrf.mxu2 }
 0x51a   : > { %v4228_v27 = vadd.f32 %v7252_v53, %v4227_v3 }
 0x51c   : > { %v4331_v47 = vadd.f32 %v5642_v55, %v4228_v27 }
 0x51e   : > { %v4363_v19 = vmax.f32 %v4331_v47, 0.0 }
 0x520   : > { %4395 = vst [vmem:[%s7262_s21 + $0xd8] sm:$0xff] %v4363_v19 }
 0x521   : > { %v4230_v52 = vpop.f32.mrf.mxu2 }
 0x522   : > { %v4231_v59 = vadd.f32 %v7252_v53, %v4230_v52 }
 0x524   : > { %v4332_v61 = vadd.f32 %v5645_v9, %v4231_v59 }
 0x526   : > { %v4364_v41 = vmax.f32 %v4332_v61, 0.0 }
 0x528   : > { %4396 = vst [vmem:[%s7262_s21 + $0xe0] sm:$0xff] %v4364_v41 }
 0x529   : > { %v4232_v18 = vpop.f32.mrf.mxu2 }
 0x52a   : > { %v4233_v31 = vadd.f32 %v7252_v53, %v4232_v18 }
 0x52c   : > { %v4333_v56 = vadd.f32 %v5646_v17, %v4233_v31 }
 0x52e   : > { %v4365_v32 = vmax.f32 %v4333_v56, 0.0 }
 0x530   : > { %4397 = vst [vmem:[%s7262_s21 + $0xe8] sm:$0xff] %v4365_v32 }
 0x531   : > { %v4235_v13 = vpop.f32.mrf.mxu2 }
 0x532   : > { %v4236_v15 = vadd.f32 %v7252_v53, %v4235_v13 }
 0x534   : > { %v4334_v49 = vadd.f32 %v5649_v11, %v4236_v15 }
 0x536   : > { %v4366_v23 = vmax.f32 %v4334_v49, 0.0 }
 0x538   : > { %4398 = vst [vmem:[%s7262_s21 + $0xf0] sm:$0xff] %v4366_v23 }
 0x539   : > { %v4237_v7 = vpop.f32.mrf.mxu2 }
 0x53a   : > { %v4238_v42 = vadd.f32 %v7252_v53, %v4237_v7 }
 0x53c   : > { %v4335_v57 = vadd.f32 %v5650_v37, %v4238_v42 }
 0x53e   : > { %v4367_v28 = vmax.f32 %v4335_v57, 0.0 }
 0x540   : > { %4399 = vst [vmem:[%s7262_s21 + $0xf8] sm:$0xff] %v4367_v28 }
 0x541   : > { %5923 = shalt.err (!%p5920_p10)
}
 0x542   : > { %s5978_s15 = smov 128   ;;  %s5979_s21 = smov 8  }
 0x543   : > { %5704 = dma.vmem_to_hbm [thread:$0]  (%p6111_p3), %s4414_s23, 4096, %s4416_s12, %s4401_s19, %s5978_s15, %s5978_s15, %s5979_s21  }
 0x544 PF: > { %s4430_s11 = sand.u32 1, %s5958_s24   ;;  %p7603_p12 = scmp.ge.s32.totalorder %s5970_s27, 2 }
 0x545   : > { %s4431_s20 = scalar_lea.sflag [#allocation5], %s4430_s11 }
 0x546   : > { %p5721_p13 = pnand %p7603_p12, %p6055_p6 }
 0x548   : > { %p5722_p0 = pneg %p5721_p13 }
 0x54a   : > { %5953 = dma.done.wait (%p5722_p0), %s4431_s20, 4096  }
 0x54b   : > { %5955 = vsyncadd (%p5722_p0), %s4431_s20, 4294963200  ;;  %p22_p5 = scmp.ge.s32.totalorder %s6093_s13, 4   ;;  %s7604_s24 = smov %s5962_s25 }
 0x54c   : > { %s7605_s25 = smov %s5966_s26  ;;  %s7606_s26 = smov %s6107_s17 }
 0x54d   : > { %s7607_s27 = smov %s6093_s13  ;;  %24 = sbr.rel (!%p22_p5) target bundleno = 9 (0x9), region = 107 }
 0x552   :  { %4437 = vsyncpa [#allocation4], 1 }
 0x553   :  { %4439 = vsyncpa [#allocation4 + $0x1], 1 }
 0x554   :  { %4440 = vsyncpa [#allocation7], 1 }
 0x555   :  { %4441 = vsyncpa [#allocation10], 1 }
 0x556   :  { %4442 = vsyncpa [#allocation5], 1 }
 0x557   :  { %4444 = vsyncpa [#allocation5 + $0x1], 1 }

</bundles_post_ra>
